<compile_context>
chip_gen: v7x
topology: tpu7x:2x2x1
jax: 0.10.0
libtpu: 0.0.40
codegen_flags: <defaults>
</compile_context>

<pallas_src>
import math

import jax
import jax.numpy as jnp
import numpy as np
from jax.experimental import pallas as pl
from jax.experimental.pallas import tpu as pltpu

# ---------------- config (small, constructor-consistent shapes) ----------------
N_VAR = 10                  # n_var_embs
NVP = 16                    # one-hot width (N_VAR padded; rows 10..15 of the table are zero)
D = 64                      # dim_embed (TPU-friendly lane width; original default 52)
H_CVE = int(math.sqrt(D))   # CVE hidden units = int(sqrt(dim_embed)) = 8
N_LAYERS = 2
N_HEADS = 4
HD = D // N_HEADS
D_FF = 2 * D                # dim_ff (STraTS convention: 2 * dim_embed) = 128
N_CLASSES = 2
B = 2
T = 16
LN_EPS = 1e-5
DROPOUT = 0.0               # dropout=0.0 -> identity

# exact softmax normalization by default; set True to use the EUP approximate reciprocal
APPROX_SOFTMAX_RECIP = False


def _layer_norm(x, g, b):
    mu = jnp.mean(x, axis=-1, keepdims=True)
    var = jnp.mean((x - mu) ** 2, axis=-1, keepdims=True)
    return (x - mu) * jax.lax.rsqrt(var + LN_EPS) * g + b


def _recip(x):
    return pl.reciprocal(x, approx=APPROX_SOFTMAX_RECIP)


# ---------------- Pallas kernel: whole (B*T) batch in one invocation ----------------
def _strats_kernel(data_ref, e0_ref, cve_ref, wqkv_ref, bqkv_ref, wp_ref, lvec_ref,
                   fw1_ref, fw2_ref, aw_ref, avec_ref, pw_ref, out_ref):
    f32 = jnp.float32
    bt = B * T

    d = data_ref[...]                       # (BT, 3): [values, times, variables(as f32)]
    vals = d[:, 0:1]                        # (BT, 1)
    tims = d[:, 1:2]                        # (BT, 1)
    ids = d[:, 2:3].astype(jnp.int32)       # (BT, 1)

    # ---- input embedding: one-hot var gather + fused CVE(values)+CVE(times), ONE matmul ----
    w1c = cve_ref[0:1, :]                   # (1, 16) = [vW1 | tW1]
    b1c = cve_ref[1:2, :]                   # (1, 16) = [vb1 | tb1]
    iota = jax.lax.broadcasted_iota(jnp.int32, (bt, NVP), 1)
    onehot = (ids == iota).astype(f32)                                  # (BT, 16)
    src = jnp.concatenate(
        [jnp.broadcast_to(vals, (bt, H_CVE)),
         jnp.broadcast_to(tims, (bt, H_CVE))], axis=1)                  # (BT, 16)
    h = jnp.tanh(src * w1c + b1c)                                       # (BT, 16)
    feat = jnp.concatenate([onehot, h], axis=1)                         # (BT, 32)
    x = jnp.dot(feat, e0_ref[...], preferred_element_type=f32)          # (BT, D)

    for l in range(N_LAYERS):
        # --- multi-head self attention ---
        # single lane-dense QKV projection (1/sqrt(HD) already folded into Wq / bq)
        qkv = jnp.dot(x, wqkv_ref[l], preferred_element_type=f32) + bqkv_ref[l]   # (BT, 3D)

        def heads(off):
            # (B*H, T, HD) via static slices + leading-dim stack (no MXU work)
            return jnp.stack(
                [qkv[bi * T:(bi + 1) * T, off + hh * HD: off + (hh + 1) * HD]
                 for bi in range(B) for hh in range(N_HEADS)], axis=0)

        q = heads(0)          # (B*H, T, HD)
        k = heads(D)
        v = heads(2 * D)

        s = jnp.einsum('gqe,gke->gqk', q, k, preferred_element_type=f32)   # (B*H, T, T)
        m = jnp.max(s, axis=-1, keepdims=True)
        p = jnp.exp(s - m)
        p = p * _recip(jnp.sum(p, axis=-1, keepdims=True))
        o = jnp.einsum('gqk,gke->gqe', p, v, preferred_element_type=f32)   # (B*H, T, HD)

        # merge heads back to (BT, D), then ONE output-projection matmul against original Wp
        o2 = jnp.concatenate(
            [jnp.concatenate([o[bi * N_HEADS + hh] for hh in range(N_HEADS)], axis=-1)
             for bi in range(B)], axis=0)                                   # (BT, D)
        mha = jnp.dot(o2, wp_ref[l], preferred_element_type=f32) + lvec_ref[l, 0:1, 0:D]
        x = _layer_norm(x + mha, lvec_ref[l, 1:2, 0:D], lvec_ref[l, 2:3, 0:D])

        # --- feed forward (ReLU) ---
        ff = jnp.maximum(
            jnp.dot(x, fw1_ref[l], preferred_element_type=f32) + lvec_ref[l, 3:4, :], 0.0)
        ff = jnp.dot(ff, fw2_ref[l], preferred_element_type=f32) + lvec_ref[l, 4:5, 0:D]
        x = _layer_norm(x + ff, lvec_ref[l, 5:6, 0:D], lvec_ref[l, 6:7, 0:D])

    # --- STraTS fusion attention over time + prediction head ---
    e = jnp.tanh(jnp.dot(x, aw_ref[...], preferred_element_type=f32)
                 + avec_ref[0:1, :])                                        # (BT, 2D)
    sc = jnp.sum(e * avec_ref[1:2, :], axis=-1, keepdims=True) + avec_ref[2:3, 0:1]  # (BT, 1)
    sc = sc.reshape(B, T, 1)
    mx = jnp.max(sc, axis=1, keepdims=True)
    w = jnp.exp(sc - mx)
    w = w * _recip(jnp.sum(w, axis=1, keepdims=True))                       # (B, T, 1)
    fused = jnp.sum(w * x.reshape(B, T, D), axis=1)                         # (B, D)
    out_ref[...] = (jnp.dot(fused, pw_ref[...], preferred_element_type=f32)
                    + avec_ref[3:4, 0:N_CLASSES])                           # (B, NC)


# ---------------- host-side parameter packing ----------------
def pack_params(P):
    # fused embedding/CVE projection table: [emb (padded to NVP rows); vW2; tW2] -> (32, D)
    e0 = jnp.zeros((NVP + 2 * H_CVE, D), jnp.float32)
    e0 = e0.at[0:N_VAR].set(P["emb"])
    e0 = e0.at[NVP:NVP + H_CVE].set(P["vW2"])
    e0 = e0.at[NVP + H_CVE:].set(P["tW2"])

    # CVE hidden-layer constants: row0 = [vW1 | tW1], row1 = [vb1 | tb1]   -> (2, 16)
    cve = jnp.concatenate(
        [jnp.concatenate([P["vW1"], P["tW1"]], axis=1),
         jnp.concatenate([P["vb1"], P["tb1"]], axis=1)], axis=0)

    # attention: keep original 2D layouts; fold 1/sqrt(HD)=0.25 into the Q columns (bit exact)
    scale = 1.0 / math.sqrt(HD)
    col_scale = jnp.concatenate(
        [jnp.full((D,), scale, jnp.float32), jnp.ones((2 * D,), jnp.float32)])   # (3D,)
    wqkv = P["Wqkv"] * col_scale[None, None, :]                 # (L, D, 3D)
    bqkv = (P["bqkv"] * col_scale[None, :]).reshape(N_LAYERS, 1, 3 * D)
    wp = P["Wp"]                                                # (L, D, D)

    # per-layer vectors: (L, 7, D_FF) rows [bp, ln1g, ln1b, fb1, fb2, ln2g, ln2b]
    lvec = jnp.zeros((N_LAYERS, 7, D_FF), jnp.float32)
    lvec = lvec.at[:, 0, 0:D].set(P["bp"])
    lvec = lvec.at[:, 1, 0:D].set(P["ln1g"])
    lvec = lvec.at[:, 2, 0:D].set(P["ln1b"])
    lvec = lvec.at[:, 3, :].set(P["fb1"])
    lvec = lvec.at[:, 4, 0:D].set(P["fb2"])
    lvec = lvec.at[:, 5, 0:D].set(P["ln2g"])
    lvec = lvec.at[:, 6, 0:D].set(P["ln2b"])

    # fusion-attention vectors: rows [ab, au^T, aub@lane0, pb@lanes0:NC]   -> (4, 2D)
    avec = jnp.zeros((4, 2 * D), jnp.float32)
    avec = avec.at[0, :].set(P["ab"][0])
    avec = avec.at[1, :].set(P["au"][:, 0])
    avec = avec.at[2, 0].set(P["aub"][0, 0])
    avec = avec.at[3, 0:N_CLASSES].set(P["pb"][0])

    return dict(e0=e0, cve=cve, wqkv=wqkv, bqkv=bqkv, wp=wp, lvec=lvec,
                fw1=P["fW1"], fw2=P["fW2"], aw=P["aW"], avec=avec, pw=P["pW"])


_SLAB_ORDER = ("e0", "cve", "wqkv", "bqkv", "wp", "lvec", "fw1", "fw2", "aw", "avec", "pw")


def strats_forward(values, times, variables, packed):
    b, t = values.shape
    data = jnp.stack([values.astype(jnp.float32), times.astype(jnp.float32),
                      variables.astype(jnp.float32)], axis=-1).reshape(b * t, 3)
    args = [packed[k] for k in _SLAB_ORDER]

    vmem = pl.BlockSpec(memory_space=pltpu.MemorySpace.VMEM)   # whole array, VMEM resident
    out = pl.pallas_call(
        _strats_kernel,
        out_shape=jax.ShapeDtypeStruct((b, N_CLASSES), jnp.float32),
        in_specs=[vmem] * (1 + len(args)),
        out_specs=vmem,
    )(data, *args)
    # PyTorch .squeeze(): no-op for (B>1, n_classes>1)
    return out


# ---------------- pure-JAX reference (same math, raw params) ----------------
def reference_forward(values, times, variables, P):
    def one(v, t, var):
        x = P["emb"][var]
        x = x + jnp.tanh(v[:, None] * P["vW1"] + P["vb1"]) @ P["vW2"]
        x = x + jnp.tanh(t[:, None] * P["tW1"] + P["tb1"]) @ P["tW2"]
        for l in range(N_LAYERS):
            qkv = x @ P["Wqkv"][l] + P["bqkv"][l]
            heads = []
            for h in range(N_HEADS):
                q = qkv[:, h * HD:(h + 1) * HD]
                k = qkv[:, D + h * HD: D + (h + 1) * HD]
                vv = qkv[:, 2 * D + h * HD: 2 * D + (h + 1) * HD]
                s = (q @ k.T) / math.sqrt(HD)
                heads.append(jax.nn.softmax(s, axis=-1) @ vv)
            mha = jnp.concatenate(heads, axis=-1) @ P["Wp"][l] + P["bp"][l]
            x = _layer_norm(x + mha, P["ln1g"][l], P["ln1b"][l])
            ff = jax.nn.relu(x @ P["fW1"][l] + P["fb1"][l]) @ P["fW2"][l] + P["fb2"][l]
            x = _layer_norm(x + ff, P["ln2g"][l], P["ln2b"][l])
        e = jnp.tanh(x @ P["aW"] + P["ab"])
        sc = e @ P["au"] + P["aub"]
        w = jax.nn.softmax(sc, axis=0)
        fused = jnp.sum(x * w, axis=0)
        return fused @ P["pW"] + P["pb"][0]
    return jax.vmap(one)(values, times, variables)


# ---------------- deterministic parameter init ----------------
def init_params(key):
    keys = iter(jax.random.split(key, 32))

    def nrm(shape, scale=0.1):
        return scale * jax.random.normal(next(keys), shape, dtype=jnp.float32)

    P = {}
    P["emb"] = nrm((N_VAR, D))
    P["vW1"], P["vb1"], P["vW2"] = nrm((1, H_CVE)), nrm((1, H_CVE)), nrm((H_CVE, D))
    P["tW1"], P["tb1"], P["tW2"] = nrm((1, H_CVE)), nrm((1, H_CVE)), nrm((H_CVE, D))
    P["Wqkv"], P["bqkv"] = nrm((N_LAYERS, D, 3 * D)), nrm((N_LAYERS, 3 * D))
    P["Wp"], P["bp"] = nrm((N_LAYERS, D, D)), nrm((N_LAYERS, D))
    P["ln1g"] = jnp.ones((N_LAYERS, D), jnp.float32)
    P["ln1b"] = jnp.zeros((N_LAYERS, D), jnp.float32)
    P["fW1"], P["fb1"] = nrm((N_LAYERS, D, D_FF)), nrm((N_LAYERS, D_FF))
    P["fW2"], P["fb2"] = nrm((N_LAYERS, D_FF, D)), nrm((N_LAYERS, D))
    P["ln2g"] = jnp.ones((N_LAYERS, D), jnp.float32)
    P["ln2b"] = jnp.zeros((N_LAYERS, D), jnp.float32)
    P["aW"], P["ab"] = nrm((D, 2 * D)), nrm((1, 2 * D))
    P["au"], P["aub"] = nrm((2 * D, 1)), nrm((1, 1))
    P["pW"], P["pb"] = nrm((D, N_CLASSES)), nrm((1, N_CLASSES))
    return P


if __name__ == "__main__":
    key = jax.random.PRNGKey(0)
    kp, kv, kt, kvar = jax.random.split(key, 4)
    P = init_params(kp)
    packed = pack_params(P)

    values = jax.random.normal(kv, (B, T), dtype=jnp.float32)
    times = jax.random.uniform(kt, (B, T), dtype=jnp.float32) * 10.0
    variables = jax.random.randint(kvar, (B, T), 0, N_VAR, dtype=jnp.int32)

    out = strats_forward(values, times, variables, packed)
    out = jax.block_until_ready(out)

    ref = reference_forward(values, times, variables, P)
    np.testing.assert_allclose(np.asarray(out), np.asarray(ref), rtol=2e-3, atol=2e-3)

    print("KERNEL_OK")
</pallas_src>

<mosaic_0001>
module attributes {stable_mosaic.version = 11 : i64} {
  func.func @_strats_kernel(%arg0: memref<32x3xf32, #tpu.memory_space<vmem>>, %arg1: memref<32x64xf32, #tpu.memory_space<vmem>>, %arg2: memref<2x16xf32, #tpu.memory_space<vmem>>, %arg3: memref<2x64x192xf32, #tpu.memory_space<vmem>>, %arg4: memref<2x1x192xf32, #tpu.memory_space<vmem>>, %arg5: memref<2x64x64xf32, #tpu.memory_space<vmem>>, %arg6: memref<2x7x128xf32, #tpu.memory_space<vmem>>, %arg7: memref<2x64x128xf32, #tpu.memory_space<vmem>>, %arg8: memref<2x128x64xf32, #tpu.memory_space<vmem>>, %arg9: memref<64x128xf32, #tpu.memory_space<vmem>>, %arg10: memref<4x128xf32, #tpu.memory_space<vmem>>, %arg11: memref<64x2xf32, #tpu.memory_space<vmem>>, %arg12: memref<2x2xf32, #tpu.memory_space<vmem>>) attributes {dimension_semantics = [], scalar_prefetch = 0 : i64, scratch_operands = 0 : i64, tpu.core_type = #tpu.core_type<tc>} {
    %c0 = arith.constant 0 : index
    %c0_0 = arith.constant 0 : index
    %0 = vector.load %arg0[%c0, %c0_0] : memref<32x3xf32, #tpu.memory_space<vmem>>, vector<32x3xf32>
    %1 = vector.extract_strided_slice %0 {offsets = [0, 0], sizes = [32, 1], strides = [1, 1]} : vector<32x3xf32> to vector<32x1xf32>
    %2 = vector.extract_strided_slice %0 {offsets = [0, 1], sizes = [32, 1], strides = [1, 1]} : vector<32x3xf32> to vector<32x1xf32>
    %3 = vector.extract_strided_slice %0 {offsets = [0, 2], sizes = [32, 1], strides = [1, 1]} : vector<32x3xf32> to vector<32x1xf32>
    %4 = arith.fptosi %3 : vector<32x1xf32> to vector<32x1xi32>
    %c0_1 = arith.constant 0 : index
    %c0_2 = arith.constant 0 : index
    %5 = vector.load %arg2[%c0_1, %c0_2] : memref<2x16xf32, #tpu.memory_space<vmem>>, vector<1x16xf32>
    %c1 = arith.constant 1 : index
    %c0_3 = arith.constant 0 : index
    %6 = vector.load %arg2[%c1, %c0_3] : memref<2x16xf32, #tpu.memory_space<vmem>>, vector<1x16xf32>
    %7 = tpu.iota {dimensions = array<i32: 1>} : vector<32x16xi32>
    %8 = vector.broadcast %4 : vector<32x1xi32> to vector<32x16xi32>
    %9 = arith.cmpi eq, %8, %7 : vector<32x16xi32>
    %10 = arith.extui %9 : vector<32x16xi1> to vector<32x16xi32>
    %11 = arith.sitofp %10 : vector<32x16xi32> to vector<32x16xf32>
    %12 = vector.shape_cast %1 : vector<32x1xf32> to vector<32x1xf32>
    %13 = vector.broadcast %12 : vector<32x1xf32> to vector<32x8xf32>
    %14 = vector.shape_cast %2 : vector<32x1xf32> to vector<32x1xf32>
    %15 = vector.broadcast %14 : vector<32x1xf32> to vector<32x8xf32>
    %16 = tpu.concatenate %13, %15 in 1 : vector<32x8xf32>, vector<32x8xf32> -> vector<32x16xf32>
    %17 = vector.broadcast %5 : vector<1x16xf32> to vector<32x16xf32>
    %18 = arith.mulf %16, %17 : vector<32x16xf32>
    %19 = vector.broadcast %6 : vector<1x16xf32> to vector<32x16xf32>
    %20 = arith.addf %18, %19 : vector<32x16xf32>
    %21 = math.tanh %20 : vector<32x16xf32>
    %22 = tpu.concatenate %11, %21 in 1 : vector<32x16xf32>, vector<32x16xf32> -> vector<32x32xf32>
    %c0_4 = arith.constant 0 : index
    %c0_5 = arith.constant 0 : index
    %23 = vector.load %arg1[%c0_4, %c0_5] : memref<32x64xf32, #tpu.memory_space<vmem>>, vector<32x64xf32>
    %cst = arith.constant dense<0.000000e+00> : vector<32x64xf32>
    %24 = tpu.matmul %22, %23, %cst {dimension_numbers = #tpu.dot_dimension_numbers<[1], [0], [0], [1], [0, 0, 1, 1], [], []>} : vector<32x32xf32>, vector<32x64xf32>, vector<32x64xf32> -> vector<32x64xf32>
    %c0_6 = arith.constant 0 : index
    %c0_7 = arith.constant 0 : index
    %c0_8 = arith.constant 0 : index
    %25 = vector.load %arg3[%c0_6, %c0_7, %c0_8] : memref<2x64x192xf32, #tpu.memory_space<vmem>>, vector<1x64x192xf32>
    %26 = vector.shape_cast %25 : vector<1x64x192xf32> to vector<64x192xf32>
    %cst_9 = arith.constant dense<0.000000e+00> : vector<32x192xf32>
    %27 = tpu.matmul %24, %26, %cst_9 {dimension_numbers = #tpu.dot_dimension_numbers<[1], [0], [0], [1], [0, 0, 1, 1], [], []>} : vector<32x64xf32>, vector<64x192xf32>, vector<32x192xf32> -> vector<32x192xf32>
    %c0_10 = arith.constant 0 : index
    %c0_11 = arith.constant 0 : index
    %c0_12 = arith.constant 0 : index
    %28 = vector.load %arg4[%c0_10, %c0_11, %c0_12] : memref<2x1x192xf32, #tpu.memory_space<vmem>>, vector<1x1x192xf32>
    %29 = vector.shape_cast %28 : vector<1x1x192xf32> to vector<1x192xf32>
    %30 = vector.broadcast %29 : vector<1x192xf32> to vector<32x192xf32>
    %31 = arith.addf %27, %30 : vector<32x192xf32>
    %32 = vector.extract_strided_slice %31 {offsets = [0, 0], sizes = [16, 16], strides = [1, 1]} : vector<32x192xf32> to vector<16x16xf32>
    %33 = vector.extract_strided_slice %31 {offsets = [0, 16], sizes = [16, 16], strides = [1, 1]} : vector<32x192xf32> to vector<16x16xf32>
    %34 = vector.extract_strided_slice %31 {offsets = [0, 32], sizes = [16, 16], strides = [1, 1]} : vector<32x192xf32> to vector<16x16xf32>
    %35 = vector.extract_strided_slice %31 {offsets = [0, 48], sizes = [16, 16], strides = [1, 1]} : vector<32x192xf32> to vector<16x16xf32>
    %36 = vector.extract_strided_slice %31 {offsets = [16, 0], sizes = [16, 16], strides = [1, 1]} : vector<32x192xf32> to vector<16x16xf32>
    %37 = vector.extract_strided_slice %31 {offsets = [16, 16], sizes = [16, 16], strides = [1, 1]} : vector<32x192xf32> to vector<16x16xf32>
    %38 = vector.extract_strided_slice %31 {offsets = [16, 32], sizes = [16, 16], strides = [1, 1]} : vector<32x192xf32> to vector<16x16xf32>
    %39 = vector.extract_strided_slice %31 {offsets = [16, 48], sizes = [16, 16], strides = [1, 1]} : vector<32x192xf32> to vector<16x16xf32>
    %40 = vector.shape_cast %32 : vector<16x16xf32> to vector<1x16x16xf32>
    %41 = vector.shape_cast %33 : vector<16x16xf32> to vector<1x16x16xf32>
    %42 = vector.shape_cast %34 : vector<16x16xf32> to vector<1x16x16xf32>
    %43 = vector.shape_cast %35 : vector<16x16xf32> to vector<1x16x16xf32>
    %44 = vector.shape_cast %36 : vector<16x16xf32> to vector<1x16x16xf32>
    %45 = vector.shape_cast %37 : vector<16x16xf32> to vector<1x16x16xf32>
    %46 = vector.shape_cast %38 : vector<16x16xf32> to vector<1x16x16xf32>
    %47 = vector.shape_cast %39 : vector<16x16xf32> to vector<1x16x16xf32>
    %48 = tpu.concatenate %40, %41, %42, %43, %44, %45, %46, %47 in 0 : vector<1x16x16xf32>, vector<1x16x16xf32>, vector<1x16x16xf32>, vector<1x16x16xf32>, vector<1x16x16xf32>, vector<1x16x16xf32>, vector<1x16x16xf32>, vector<1x16x16xf32> -> vector<8x16x16xf32>
    %49 = vector.extract_strided_slice %31 {offsets = [0, 64], sizes = [16, 16], strides = [1, 1]} : vector<32x192xf32> to vector<16x16xf32>
    %50 = vector.extract_strided_slice %31 {offsets = [0, 80], sizes = [16, 16], strides = [1, 1]} : vector<32x192xf32> to vector<16x16xf32>
    %51 = vector.extract_strided_slice %31 {offsets = [0, 96], sizes = [16, 16], strides = [1, 1]} : vector<32x192xf32> to vector<16x16xf32>
    %52 = vector.extract_strided_slice %31 {offsets = [0, 112], sizes = [16, 16], strides = [1, 1]} : vector<32x192xf32> to vector<16x16xf32>
    %53 = vector.extract_strided_slice %31 {offsets = [16, 64], sizes = [16, 16], strides = [1, 1]} : vector<32x192xf32> to vector<16x16xf32>
    %54 = vector.extract_strided_slice %31 {offsets = [16, 80], sizes = [16, 16], strides = [1, 1]} : vector<32x192xf32> to vector<16x16xf32>
    %55 = vector.extract_strided_slice %31 {offsets = [16, 96], sizes = [16, 16], strides = [1, 1]} : vector<32x192xf32> to vector<16x16xf32>
    %56 = vector.extract_strided_slice %31 {offsets = [16, 112], sizes = [16, 16], strides = [1, 1]} : vector<32x192xf32> to vector<16x16xf32>
    %57 = vector.shape_cast %49 : vector<16x16xf32> to vector<1x16x16xf32>
    %58 = vector.shape_cast %50 : vector<16x16xf32> to vector<1x16x16xf32>
    %59 = vector.shape_cast %51 : vector<16x16xf32> to vector<1x16x16xf32>
    %60 = vector.shape_cast %52 : vector<16x16xf32> to vector<1x16x16xf32>
    %61 = vector.shape_cast %53 : vector<16x16xf32> to vector<1x16x16xf32>
    %62 = vector.shape_cast %54 : vector<16x16xf32> to vector<1x16x16xf32>
    %63 = vector.shape_cast %55 : vector<16x16xf32> to vector<1x16x16xf32>
    %64 = vector.shape_cast %56 : vector<16x16xf32> to vector<1x16x16xf32>
    %65 = tpu.concatenate %57, %58, %59, %60, %61, %62, %63, %64 in 0 : vector<1x16x16xf32>, vector<1x16x16xf32>, vector<1x16x16xf32>, vector<1x16x16xf32>, vector<1x16x16xf32>, vector<1x16x16xf32>, vector<1x16x16xf32>, vector<1x16x16xf32> -> vector<8x16x16xf32>
    %66 = vector.extract_strided_slice %31 {offsets = [0, 128], sizes = [16, 16], strides = [1, 1]} : vector<32x192xf32> to vector<16x16xf32>
    %67 = vector.extract_strided_slice %31 {offsets = [0, 144], sizes = [16, 16], strides = [1, 1]} : vector<32x192xf32> to vector<16x16xf32>
    %68 = vector.extract_strided_slice %31 {offsets = [0, 160], sizes = [16, 16], strides = [1, 1]} : vector<32x192xf32> to vector<16x16xf32>
    %69 = vector.extract_strided_slice %31 {offsets = [0, 176], sizes = [16, 16], strides = [1, 1]} : vector<32x192xf32> to vector<16x16xf32>
    %70 = vector.extract_strided_slice %31 {offsets = [16, 128], sizes = [16, 16], strides = [1, 1]} : vector<32x192xf32> to vector<16x16xf32>
    %71 = vector.extract_strided_slice %31 {offsets = [16, 144], sizes = [16, 16], strides = [1, 1]} : vector<32x192xf32> to vector<16x16xf32>
    %72 = vector.extract_strided_slice %31 {offsets = [16, 160], sizes = [16, 16], strides = [1, 1]} : vector<32x192xf32> to vector<16x16xf32>
    %73 = vector.extract_strided_slice %31 {offsets = [16, 176], sizes = [16, 16], strides = [1, 1]} : vector<32x192xf32> to vector<16x16xf32>
    %74 = vector.shape_cast %66 : vector<16x16xf32> to vector<1x16x16xf32>
    %75 = vector.shape_cast %67 : vector<16x16xf32> to vector<1x16x16xf32>
    %76 = vector.shape_cast %68 : vector<16x16xf32> to vector<1x16x16xf32>
    %77 = vector.shape_cast %69 : vector<16x16xf32> to vector<1x16x16xf32>
    %78 = vector.shape_cast %70 : vector<16x16xf32> to vector<1x16x16xf32>
    %79 = vector.shape_cast %71 : vector<16x16xf32> to vector<1x16x16xf32>
    %80 = vector.shape_cast %72 : vector<16x16xf32> to vector<1x16x16xf32>
    %81 = vector.shape_cast %73 : vector<16x16xf32> to vector<1x16x16xf32>
    %82 = tpu.concatenate %74, %75, %76, %77, %78, %79, %80, %81 in 0 : vector<1x16x16xf32>, vector<1x16x16xf32>, vector<1x16x16xf32>, vector<1x16x16xf32>, vector<1x16x16xf32>, vector<1x16x16xf32>, vector<1x16x16xf32>, vector<1x16x16xf32> -> vector<8x16x16xf32>
    "tpu.trace_start"() <{level = 10 : i32, message = "gqe,gke->gqk"}> : () -> ()
    %cst_13 = arith.constant dense<0.000000e+00> : vector<8x16x16xf32>
    %83 = tpu.matmul %48, %65, %cst_13 {dimension_numbers = #tpu.dot_dimension_numbers<[2], [2], [1], [1], [0, 0, 0, 1, 1, 1], [0], [0]>} : vector<8x16x16xf32>, vector<8x16x16xf32>, vector<8x16x16xf32> -> vector<8x16x16xf32>
    "tpu.trace_stop"() : () -> ()
    %cst_14 = arith.constant dense<0xFF800000> : vector<8x16xf32>
    %84 = vector.multi_reduction <maximumf>, %83, %cst_14 [2] : vector<8x16x16xf32> to vector<8x16xf32>
    %85 = vector.shape_cast %84 : vector<8x16xf32> to vector<8x16x1xf32>
    %86 = vector.broadcast %85 : vector<8x16x1xf32> to vector<8x16x16xf32>
    %87 = arith.subf %83, %86 : vector<8x16x16xf32>
    %88 = math.exp %87 : vector<8x16x16xf32>
    %cst_15 = arith.constant dense<0.000000e+00> : vector<8x16xf32>
    %89 = vector.multi_reduction <add>, %88, %cst_15 [2] : vector<8x16x16xf32> to vector<8x16xf32>
    %90 = vector.shape_cast %89 : vector<8x16xf32> to vector<8x16x1xf32>
    %91 = tpu.reciprocal %90 : vector<8x16x1xf32> -> vector<8x16x1xf32>
    %92 = vector.broadcast %91 : vector<8x16x1xf32> to vector<8x16x16xf32>
    %93 = arith.mulf %88, %92 : vector<8x16x16xf32>
    "tpu.trace_start"() <{level = 10 : i32, message = "gqk,gke->gqe"}> : () -> ()
    %cst_16 = arith.constant dense<0.000000e+00> : vector<8x16x16xf32>
    %94 = tpu.matmul %93, %82, %cst_16 {dimension_numbers = #tpu.dot_dimension_numbers<[2], [1], [1], [2], [0, 0, 0, 1, 1, 2], [0], [0]>} : vector<8x16x16xf32>, vector<8x16x16xf32>, vector<8x16x16xf32> -> vector<8x16x16xf32>
    "tpu.trace_stop"() : () -> ()
    %95 = vector.extract_strided_slice %94 {offsets = [0, 0, 0], sizes = [1, 16, 16], strides = [1, 1, 1]} : vector<8x16x16xf32> to vector<1x16x16xf32>
    %96 = vector.shape_cast %95 : vector<1x16x16xf32> to vector<16x16xf32>
    %97 = vector.extract_strided_slice %94 {offsets = [1, 0, 0], sizes = [1, 16, 16], strides = [1, 1, 1]} : vector<8x16x16xf32> to vector<1x16x16xf32>
    %98 = vector.shape_cast %97 : vector<1x16x16xf32> to vector<16x16xf32>
    %99 = vector.extract_strided_slice %94 {offsets = [2, 0, 0], sizes = [1, 16, 16], strides = [1, 1, 1]} : vector<8x16x16xf32> to vector<1x16x16xf32>
    %100 = vector.shape_cast %99 : vector<1x16x16xf32> to vector<16x16xf32>
    %101 = vector.extract_strided_slice %94 {offsets = [3, 0, 0], sizes = [1, 16, 16], strides = [1, 1, 1]} : vector<8x16x16xf32> to vector<1x16x16xf32>
    %102 = vector.shape_cast %101 : vector<1x16x16xf32> to vector<16x16xf32>
    %103 = tpu.concatenate %96, %98, %100, %102 in 1 : vector<16x16xf32>, vector<16x16xf32>, vector<16x16xf32>, vector<16x16xf32> -> vector<16x64xf32>
    %104 = vector.extract_strided_slice %94 {offsets = [4, 0, 0], sizes = [1, 16, 16], strides = [1, 1, 1]} : vector<8x16x16xf32> to vector<1x16x16xf32>
    %105 = vector.shape_cast %104 : vector<1x16x16xf32> to vector<16x16xf32>
    %106 = vector.extract_strided_slice %94 {offsets = [5, 0, 0], sizes = [1, 16, 16], strides = [1, 1, 1]} : vector<8x16x16xf32> to vector<1x16x16xf32>
    %107 = vector.shape_cast %106 : vector<1x16x16xf32> to vector<16x16xf32>
    %108 = vector.extract_strided_slice %94 {offsets = [6, 0, 0], sizes = [1, 16, 16], strides = [1, 1, 1]} : vector<8x16x16xf32> to vector<1x16x16xf32>
    %109 = vector.shape_cast %108 : vector<1x16x16xf32> to vector<16x16xf32>
    %110 = vector.extract_strided_slice %94 {offsets = [7, 0, 0], sizes = [1, 16, 16], strides = [1, 1, 1]} : vector<8x16x16xf32> to vector<1x16x16xf32>
    %111 = vector.shape_cast %110 : vector<1x16x16xf32> to vector<16x16xf32>
    %112 = tpu.concatenate %105, %107, %109, %111 in 1 : vector<16x16xf32>, vector<16x16xf32>, vector<16x16xf32>, vector<16x16xf32> -> vector<16x64xf32>
    %113 = tpu.concatenate %103, %112 in 0 : vector<16x64xf32>, vector<16x64xf32> -> vector<32x64xf32>
    %c0_17 = arith.constant 0 : index
    %c0_18 = arith.constant 0 : index
    %c0_19 = arith.constant 0 : index
    %114 = vector.load %arg5[%c0_17, %c0_18, %c0_19] : memref<2x64x64xf32, #tpu.memory_space<vmem>>, vector<1x64x64xf32>
    %115 = vector.shape_cast %114 : vector<1x64x64xf32> to vector<64x64xf32>
    %cst_20 = arith.constant dense<0.000000e+00> : vector<32x64xf32>
    %116 = tpu.matmul %113, %115, %cst_20 {dimension_numbers = #tpu.dot_dimension_numbers<[1], [0], [0], [1], [0, 0, 1, 1], [], []>} : vector<32x64xf32>, vector<64x64xf32>, vector<32x64xf32> -> vector<32x64xf32>
    %c0_21 = arith.constant 0 : index
    %c0_22 = arith.constant 0 : index
    %c0_23 = arith.constant 0 : index
    %117 = vector.load %arg6[%c0_21, %c0_22, %c0_23] : memref<2x7x128xf32, #tpu.memory_space<vmem>>, vector<1x1x64xf32>
    %118 = vector.shape_cast %117 : vector<1x1x64xf32> to vector<1x64xf32>
    %119 = vector.broadcast %118 : vector<1x64xf32> to vector<32x64xf32>
    %120 = arith.addf %116, %119 : vector<32x64xf32>
    %121 = arith.addf %24, %120 : vector<32x64xf32>
    %c0_24 = arith.constant 0 : index
    %c1_25 = arith.constant 1 : index
    %c0_26 = arith.constant 0 : index
    %122 = vector.load %arg6[%c0_24, %c1_25, %c0_26] : memref<2x7x128xf32, #tpu.memory_space<vmem>>, vector<1x1x64xf32>
    %123 = vector.shape_cast %122 : vector<1x1x64xf32> to vector<1x64xf32>
    %c0_27 = arith.constant 0 : index
    %c2 = arith.constant 2 : index
    %c0_28 = arith.constant 0 : index
    %124 = vector.load %arg6[%c0_27, %c2, %c0_28] : memref<2x7x128xf32, #tpu.memory_space<vmem>>, vector<1x1x64xf32>
    %125 = vector.shape_cast %124 : vector<1x1x64xf32> to vector<1x64xf32>
    %cst_29 = arith.constant dense<0.000000e+00> : vector<32xf32>
    %126 = vector.multi_reduction <add>, %121, %cst_29 [1] : vector<32x64xf32> to vector<32xf32>
    %127 = vector.shape_cast %126 : vector<32xf32> to vector<32x1xf32>
    %cst_30 = arith.constant 6.400000e+01 : f32
    %128 = vector.broadcast %cst_30 : f32 to vector<32x1xf32>
    %129 = arith.divf %127, %128 : vector<32x1xf32>
    %130 = vector.broadcast %129 : vector<32x1xf32> to vector<32x64xf32>
    %131 = arith.subf %121, %130 : vector<32x64xf32>
    %132 = arith.mulf %131, %131 : vector<32x64xf32>
    %cst_31 = arith.constant dense<0.000000e+00> : vector<32xf32>
    %133 = vector.multi_reduction <add>, %132, %cst_31 [1] : vector<32x64xf32> to vector<32xf32>
    %134 = vector.shape_cast %133 : vector<32xf32> to vector<32x1xf32>
    %cst_32 = arith.constant 6.400000e+01 : f32
    %135 = vector.broadcast %cst_32 : f32 to vector<32x1xf32>
    %136 = arith.divf %134, %135 : vector<32x1xf32>
    %137 = vector.broadcast %129 : vector<32x1xf32> to vector<32x64xf32>
    %138 = arith.subf %121, %137 : vector<32x64xf32>
    %cst_33 = arith.constant 9.99999974E-6 : f32
    %139 = vector.broadcast %cst_33 : f32 to vector<32x1xf32>
    %140 = arith.addf %136, %139 : vector<32x1xf32>
    %141 = math.rsqrt %140 : vector<32x1xf32>
    %142 = vector.broadcast %141 : vector<32x1xf32> to vector<32x64xf32>
    %143 = arith.mulf %138, %142 : vector<32x64xf32>
    %144 = vector.broadcast %123 : vector<1x64xf32> to vector<32x64xf32>
    %145 = arith.mulf %143, %144 : vector<32x64xf32>
    %146 = vector.broadcast %125 : vector<1x64xf32> to vector<32x64xf32>
    %147 = arith.addf %145, %146 : vector<32x64xf32>
    %c0_34 = arith.constant 0 : index
    %c0_35 = arith.constant 0 : index
    %c0_36 = arith.constant 0 : index
    %148 = vector.load %arg7[%c0_34, %c0_35, %c0_36] : memref<2x64x128xf32, #tpu.memory_space<vmem>>, vector<1x64x128xf32>
    %149 = vector.shape_cast %148 : vector<1x64x128xf32> to vector<64x128xf32>
    %cst_37 = arith.constant dense<0.000000e+00> : vector<32x128xf32>
    %150 = tpu.matmul %147, %149, %cst_37 {dimension_numbers = #tpu.dot_dimension_numbers<[1], [0], [0], [1], [0, 0, 1, 1], [], []>} : vector<32x64xf32>, vector<64x128xf32>, vector<32x128xf32> -> vector<32x128xf32>
    %c0_38 = arith.constant 0 : index
    %c3 = arith.constant 3 : index
    %c0_39 = arith.constant 0 : index
    %151 = vector.load %arg6[%c0_38, %c3, %c0_39] : memref<2x7x128xf32, #tpu.memory_space<vmem>>, vector<1x1x128xf32>
    %152 = vector.shape_cast %151 : vector<1x1x128xf32> to vector<1x128xf32>
    %153 = vector.broadcast %152 : vector<1x128xf32> to vector<32x128xf32>
    %154 = arith.addf %150, %153 : vector<32x128xf32>
    %cst_40 = arith.constant 0.000000e+00 : f32
    %155 = vector.broadcast %cst_40 : f32 to vector<32x128xf32>
    %156 = arith.maximumf %154, %155 : vector<32x128xf32>
    %c0_41 = arith.constant 0 : index
    %c0_42 = arith.constant 0 : index
    %c0_43 = arith.constant 0 : index
    %157 = vector.load %arg8[%c0_41, %c0_42, %c0_43] : memref<2x128x64xf32, #tpu.memory_space<vmem>>, vector<1x128x64xf32>
    %158 = vector.shape_cast %157 : vector<1x128x64xf32> to vector<128x64xf32>
    %cst_44 = arith.constant dense<0.000000e+00> : vector<32x64xf32>
    %159 = tpu.matmul %156, %158, %cst_44 {dimension_numbers = #tpu.dot_dimension_numbers<[1], [0], [0], [1], [0, 0, 1, 1], [], []>} : vector<32x128xf32>, vector<128x64xf32>, vector<32x64xf32> -> vector<32x64xf32>
    %c0_45 = arith.constant 0 : index
    %c4 = arith.constant 4 : index
    %c0_46 = arith.constant 0 : index
    %160 = vector.load %arg6[%c0_45, %c4, %c0_46] : memref<2x7x128xf32, #tpu.memory_space<vmem>>, vector<1x1x64xf32>
    %161 = vector.shape_cast %160 : vector<1x1x64xf32> to vector<1x64xf32>
    %162 = vector.broadcast %161 : vector<1x64xf32> to vector<32x64xf32>
    %163 = arith.addf %159, %162 : vector<32x64xf32>
    %164 = arith.addf %147, %163 : vector<32x64xf32>
    %c0_47 = arith.constant 0 : index
    %c5 = arith.constant 5 : index
    %c0_48 = arith.constant 0 : index
    %165 = vector.load %arg6[%c0_47, %c5, %c0_48] : memref<2x7x128xf32, #tpu.memory_space<vmem>>, vector<1x1x64xf32>
    %166 = vector.shape_cast %165 : vector<1x1x64xf32> to vector<1x64xf32>
    %c0_49 = arith.constant 0 : index
    %c6 = arith.constant 6 : index
    %c0_50 = arith.constant 0 : index
    %167 = vector.load %arg6[%c0_49, %c6, %c0_50] : memref<2x7x128xf32, #tpu.memory_space<vmem>>, vector<1x1x64xf32>
    %168 = vector.shape_cast %167 : vector<1x1x64xf32> to vector<1x64xf32>
    %cst_51 = arith.constant dense<0.000000e+00> : vector<32xf32>
    %169 = vector.multi_reduction <add>, %164, %cst_51 [1] : vector<32x64xf32> to vector<32xf32>
    %170 = vector.shape_cast %169 : vector<32xf32> to vector<32x1xf32>
    %cst_52 = arith.constant 6.400000e+01 : f32
    %171 = vector.broadcast %cst_52 : f32 to vector<32x1xf32>
    %172 = arith.divf %170, %171 : vector<32x1xf32>
    %173 = vector.broadcast %172 : vector<32x1xf32> to vector<32x64xf32>
    %174 = arith.subf %164, %173 : vector<32x64xf32>
    %175 = arith.mulf %174, %174 : vector<32x64xf32>
    %cst_53 = arith.constant dense<0.000000e+00> : vector<32xf32>
    %176 = vector.multi_reduction <add>, %175, %cst_53 [1] : vector<32x64xf32> to vector<32xf32>
    %177 = vector.shape_cast %176 : vector<32xf32> to vector<32x1xf32>
    %cst_54 = arith.constant 6.400000e+01 : f32
    %178 = vector.broadcast %cst_54 : f32 to vector<32x1xf32>
    %179 = arith.divf %177, %178 : vector<32x1xf32>
    %180 = vector.broadcast %172 : vector<32x1xf32> to vector<32x64xf32>
    %181 = arith.subf %164, %180 : vector<32x64xf32>
    %cst_55 = arith.constant 9.99999974E-6 : f32
    %182 = vector.broadcast %cst_55 : f32 to vector<32x1xf32>
    %183 = arith.addf %179, %182 : vector<32x1xf32>
    %184 = math.rsqrt %183 : vector<32x1xf32>
    %185 = vector.broadcast %184 : vector<32x1xf32> to vector<32x64xf32>
    %186 = arith.mulf %181, %185 : vector<32x64xf32>
    %187 = vector.broadcast %166 : vector<1x64xf32> to vector<32x64xf32>
    %188 = arith.mulf %186, %187 : vector<32x64xf32>
    %189 = vector.broadcast %168 : vector<1x64xf32> to vector<32x64xf32>
    %190 = arith.addf %188, %189 : vector<32x64xf32>
    %c1_56 = arith.constant 1 : index
    %c0_57 = arith.constant 0 : index
    %c0_58 = arith.constant 0 : index
    %191 = vector.load %arg3[%c1_56, %c0_57, %c0_58] : memref<2x64x192xf32, #tpu.memory_space<vmem>>, vector<1x64x192xf32>
    %192 = vector.shape_cast %191 : vector<1x64x192xf32> to vector<64x192xf32>
    %cst_59 = arith.constant dense<0.000000e+00> : vector<32x192xf32>
    %193 = tpu.matmul %190, %192, %cst_59 {dimension_numbers = #tpu.dot_dimension_numbers<[1], [0], [0], [1], [0, 0, 1, 1], [], []>} : vector<32x64xf32>, vector<64x192xf32>, vector<32x192xf32> -> vector<32x192xf32>
    %c1_60 = arith.constant 1 : index
    %c0_61 = arith.constant 0 : index
    %c0_62 = arith.constant 0 : index
    %194 = vector.load %arg4[%c1_60, %c0_61, %c0_62] : memref<2x1x192xf32, #tpu.memory_space<vmem>>, vector<1x1x192xf32>
    %195 = vector.shape_cast %194 : vector<1x1x192xf32> to vector<1x192xf32>
    %196 = vector.broadcast %195 : vector<1x192xf32> to vector<32x192xf32>
    %197 = arith.addf %193, %196 : vector<32x192xf32>
    %198 = vector.extract_strided_slice %197 {offsets = [0, 0], sizes = [16, 16], strides = [1, 1]} : vector<32x192xf32> to vector<16x16xf32>
    %199 = vector.extract_strided_slice %197 {offsets = [0, 16], sizes = [16, 16], strides = [1, 1]} : vector<32x192xf32> to vector<16x16xf32>
    %200 = vector.extract_strided_slice %197 {offsets = [0, 32], sizes = [16, 16], strides = [1, 1]} : vector<32x192xf32> to vector<16x16xf32>
    %201 = vector.extract_strided_slice %197 {offsets = [0, 48], sizes = [16, 16], strides = [1, 1]} : vector<32x192xf32> to vector<16x16xf32>
    %202 = vector.extract_strided_slice %197 {offsets = [16, 0], sizes = [16, 16], strides = [1, 1]} : vector<32x192xf32> to vector<16x16xf32>
    %203 = vector.extract_strided_slice %197 {offsets = [16, 16], sizes = [16, 16], strides = [1, 1]} : vector<32x192xf32> to vector<16x16xf32>
    %204 = vector.extract_strided_slice %197 {offsets = [16, 32], sizes = [16, 16], strides = [1, 1]} : vector<32x192xf32> to vector<16x16xf32>
    %205 = vector.extract_strided_slice %197 {offsets = [16, 48], sizes = [16, 16], strides = [1, 1]} : vector<32x192xf32> to vector<16x16xf32>
    %206 = vector.shape_cast %198 : vector<16x16xf32> to vector<1x16x16xf32>
    %207 = vector.shape_cast %199 : vector<16x16xf32> to vector<1x16x16xf32>
    %208 = vector.shape_cast %200 : vector<16x16xf32> to vector<1x16x16xf32>
    %209 = vector.shape_cast %201 : vector<16x16xf32> to vector<1x16x16xf32>
    %210 = vector.shape_cast %202 : vector<16x16xf32> to vector<1x16x16xf32>
    %211 = vector.shape_cast %203 : vector<16x16xf32> to vector<1x16x16xf32>
    %212 = vector.shape_cast %204 : vector<16x16xf32> to vector<1x16x16xf32>
    %213 = vector.shape_cast %205 : vector<16x16xf32> to vector<1x16x16xf32>
    %214 = tpu.concatenate %206, %207, %208, %209, %210, %211, %212, %213 in 0 : vector<1x16x16xf32>, vector<1x16x16xf32>, vector<1x16x16xf32>, vector<1x16x16xf32>, vector<1x16x16xf32>, vector<1x16x16xf32>, vector<1x16x16xf32>, vector<1x16x16xf32> -> vector<8x16x16xf32>
    %215 = vector.extract_strided_slice %197 {offsets = [0, 64], sizes = [16, 16], strides = [1, 1]} : vector<32x192xf32> to vector<16x16xf32>
    %216 = vector.extract_strided_slice %197 {offsets = [0, 80], sizes = [16, 16], strides = [1, 1]} : vector<32x192xf32> to vector<16x16xf32>
    %217 = vector.extract_strided_slice %197 {offsets = [0, 96], sizes = [16, 16], strides = [1, 1]} : vector<32x192xf32> to vector<16x16xf32>
    %218 = vector.extract_strided_slice %197 {offsets = [0, 112], sizes = [16, 16], strides = [1, 1]} : vector<32x192xf32> to vector<16x16xf32>
    %219 = vector.extract_strided_slice %197 {offsets = [16, 64], sizes = [16, 16], strides = [1, 1]} : vector<32x192xf32> to vector<16x16xf32>
    %220 = vector.extract_strided_slice %197 {offsets = [16, 80], sizes = [16, 16], strides = [1, 1]} : vector<32x192xf32> to vector<16x16xf32>
    %221 = vector.extract_strided_slice %197 {offsets = [16, 96], sizes = [16, 16], strides = [1, 1]} : vector<32x192xf32> to vector<16x16xf32>
    %222 = vector.extract_strided_slice %197 {offsets = [16, 112], sizes = [16, 16], strides = [1, 1]} : vector<32x192xf32> to vector<16x16xf32>
    %223 = vector.shape_cast %215 : vector<16x16xf32> to vector<1x16x16xf32>
    %224 = vector.shape_cast %216 : vector<16x16xf32> to vector<1x16x16xf32>
    %225 = vector.shape_cast %217 : vector<16x16xf32> to vector<1x16x16xf32>
    %226 = vector.shape_cast %218 : vector<16x16xf32> to vector<1x16x16xf32>
    %227 = vector.shape_cast %219 : vector<16x16xf32> to vector<1x16x16xf32>
    %228 = vector.shape_cast %220 : vector<16x16xf32> to vector<1x16x16xf32>
    %229 = vector.shape_cast %221 : vector<16x16xf32> to vector<1x16x16xf32>
    %230 = vector.shape_cast %222 : vector<16x16xf32> to vector<1x16x16xf32>
    %231 = tpu.concatenate %223, %224, %225, %226, %227, %228, %229, %230 in 0 : vector<1x16x16xf32>, vector<1x16x16xf32>, vector<1x16x16xf32>, vector<1x16x16xf32>, vector<1x16x16xf32>, vector<1x16x16xf32>, vector<1x16x16xf32>, vector<1x16x16xf32> -> vector<8x16x16xf32>
    %232 = vector.extract_strided_slice %197 {offsets = [0, 128], sizes = [16, 16], strides = [1, 1]} : vector<32x192xf32> to vector<16x16xf32>
    %233 = vector.extract_strided_slice %197 {offsets = [0, 144], sizes = [16, 16], strides = [1, 1]} : vector<32x192xf32> to vector<16x16xf32>
    %234 = vector.extract_strided_slice %197 {offsets = [0, 160], sizes = [16, 16], strides = [1, 1]} : vector<32x192xf32> to vector<16x16xf32>
    %235 = vector.extract_strided_slice %197 {offsets = [0, 176], sizes = [16, 16], strides = [1, 1]} : vector<32x192xf32> to vector<16x16xf32>
    %236 = vector.extract_strided_slice %197 {offsets = [16, 128], sizes = [16, 16], strides = [1, 1]} : vector<32x192xf32> to vector<16x16xf32>
    %237 = vector.extract_strided_slice %197 {offsets = [16, 144], sizes = [16, 16], strides = [1, 1]} : vector<32x192xf32> to vector<16x16xf32>
    %238 = vector.extract_strided_slice %197 {offsets = [16, 160], sizes = [16, 16], strides = [1, 1]} : vector<32x192xf32> to vector<16x16xf32>
    %239 = vector.extract_strided_slice %197 {offsets = [16, 176], sizes = [16, 16], strides = [1, 1]} : vector<32x192xf32> to vector<16x16xf32>
    %240 = vector.shape_cast %232 : vector<16x16xf32> to vector<1x16x16xf32>
    %241 = vector.shape_cast %233 : vector<16x16xf32> to vector<1x16x16xf32>
    %242 = vector.shape_cast %234 : vector<16x16xf32> to vector<1x16x16xf32>
    %243 = vector.shape_cast %235 : vector<16x16xf32> to vector<1x16x16xf32>
    %244 = vector.shape_cast %236 : vector<16x16xf32> to vector<1x16x16xf32>
    %245 = vector.shape_cast %237 : vector<16x16xf32> to vector<1x16x16xf32>
    %246 = vector.shape_cast %238 : vector<16x16xf32> to vector<1x16x16xf32>
    %247 = vector.shape_cast %239 : vector<16x16xf32> to vector<1x16x16xf32>
    %248 = tpu.concatenate %240, %241, %242, %243, %244, %245, %246, %247 in 0 : vector<1x16x16xf32>, vector<1x16x16xf32>, vector<1x16x16xf32>, vector<1x16x16xf32>, vector<1x16x16xf32>, vector<1x16x16xf32>, vector<1x16x16xf32>, vector<1x16x16xf32> -> vector<8x16x16xf32>
    "tpu.trace_start"() <{level = 10 : i32, message = "gqe,gke->gqk"}> : () -> ()
    %cst_63 = arith.constant dense<0.000000e+00> : vector<8x16x16xf32>
    %249 = tpu.matmul %214, %231, %cst_63 {dimension_numbers = #tpu.dot_dimension_numbers<[2], [2], [1], [1], [0, 0, 0, 1, 1, 1], [0], [0]>} : vector<8x16x16xf32>, vector<8x16x16xf32>, vector<8x16x16xf32> -> vector<8x16x16xf32>
    "tpu.trace_stop"() : () -> ()
    %cst_64 = arith.constant dense<0xFF800000> : vector<8x16xf32>
    %250 = vector.multi_reduction <maximumf>, %249, %cst_64 [2] : vector<8x16x16xf32> to vector<8x16xf32>
    %251 = vector.shape_cast %250 : vector<8x16xf32> to vector<8x16x1xf32>
    %252 = vector.broadcast %251 : vector<8x16x1xf32> to vector<8x16x16xf32>
    %253 = arith.subf %249, %252 : vector<8x16x16xf32>
    %254 = math.exp %253 : vector<8x16x16xf32>
    %cst_65 = arith.constant dense<0.000000e+00> : vector<8x16xf32>
    %255 = vector.multi_reduction <add>, %254, %cst_65 [2] : vector<8x16x16xf32> to vector<8x16xf32>
    %256 = vector.shape_cast %255 : vector<8x16xf32> to vector<8x16x1xf32>
    %257 = tpu.reciprocal %256 : vector<8x16x1xf32> -> vector<8x16x1xf32>
    %258 = vector.broadcast %257 : vector<8x16x1xf32> to vector<8x16x16xf32>
    %259 = arith.mulf %254, %258 : vector<8x16x16xf32>
    "tpu.trace_start"() <{level = 10 : i32, message = "gqk,gke->gqe"}> : () -> ()
    %cst_66 = arith.constant dense<0.000000e+00> : vector<8x16x16xf32>
    %260 = tpu.matmul %259, %248, %cst_66 {dimension_numbers = #tpu.dot_dimension_numbers<[2], [1], [1], [2], [0, 0, 0, 1, 1, 2], [0], [0]>} : vector<8x16x16xf32>, vector<8x16x16xf32>, vector<8x16x16xf32> -> vector<8x16x16xf32>
    "tpu.trace_stop"() : () -> ()
    %261 = vector.extract_strided_slice %260 {offsets = [0, 0, 0], sizes = [1, 16, 16], strides = [1, 1, 1]} : vector<8x16x16xf32> to vector<1x16x16xf32>
    %262 = vector.shape_cast %261 : vector<1x16x16xf32> to vector<16x16xf32>
    %263 = vector.extract_strided_slice %260 {offsets = [1, 0, 0], sizes = [1, 16, 16], strides = [1, 1, 1]} : vector<8x16x16xf32> to vector<1x16x16xf32>
    %264 = vector.shape_cast %263 : vector<1x16x16xf32> to vector<16x16xf32>
    %265 = vector.extract_strided_slice %260 {offsets = [2, 0, 0], sizes = [1, 16, 16], strides = [1, 1, 1]} : vector<8x16x16xf32> to vector<1x16x16xf32>
    %266 = vector.shape_cast %265 : vector<1x16x16xf32> to vector<16x16xf32>
    %267 = vector.extract_strided_slice %260 {offsets = [3, 0, 0], sizes = [1, 16, 16], strides = [1, 1, 1]} : vector<8x16x16xf32> to vector<1x16x16xf32>
    %268 = vector.shape_cast %267 : vector<1x16x16xf32> to vector<16x16xf32>
    %269 = tpu.concatenate %262, %264, %266, %268 in 1 : vector<16x16xf32>, vector<16x16xf32>, vector<16x16xf32>, vector<16x16xf32> -> vector<16x64xf32>
    %270 = vector.extract_strided_slice %260 {offsets = [4, 0, 0], sizes = [1, 16, 16], strides = [1, 1, 1]} : vector<8x16x16xf32> to vector<1x16x16xf32>
    %271 = vector.shape_cast %270 : vector<1x16x16xf32> to vector<16x16xf32>
    %272 = vector.extract_strided_slice %260 {offsets = [5, 0, 0], sizes = [1, 16, 16], strides = [1, 1, 1]} : vector<8x16x16xf32> to vector<1x16x16xf32>
    %273 = vector.shape_cast %272 : vector<1x16x16xf32> to vector<16x16xf32>
    %274 = vector.extract_strided_slice %260 {offsets = [6, 0, 0], sizes = [1, 16, 16], strides = [1, 1, 1]} : vector<8x16x16xf32> to vector<1x16x16xf32>
    %275 = vector.shape_cast %274 : vector<1x16x16xf32> to vector<16x16xf32>
    %276 = vector.extract_strided_slice %260 {offsets = [7, 0, 0], sizes = [1, 16, 16], strides = [1, 1, 1]} : vector<8x16x16xf32> to vector<1x16x16xf32>
    %277 = vector.shape_cast %276 : vector<1x16x16xf32> to vector<16x16xf32>
    %278 = tpu.concatenate %271, %273, %275, %277 in 1 : vector<16x16xf32>, vector<16x16xf32>, vector<16x16xf32>, vector<16x16xf32> -> vector<16x64xf32>
    %279 = tpu.concatenate %269, %278 in 0 : vector<16x64xf32>, vector<16x64xf32> -> vector<32x64xf32>
    %c1_67 = arith.constant 1 : index
    %c0_68 = arith.constant 0 : index
    %c0_69 = arith.constant 0 : index
    %280 = vector.load %arg5[%c1_67, %c0_68, %c0_69] : memref<2x64x64xf32, #tpu.memory_space<vmem>>, vector<1x64x64xf32>
    %281 = vector.shape_cast %280 : vector<1x64x64xf32> to vector<64x64xf32>
    %cst_70 = arith.constant dense<0.000000e+00> : vector<32x64xf32>
    %282 = tpu.matmul %279, %281, %cst_70 {dimension_numbers = #tpu.dot_dimension_numbers<[1], [0], [0], [1], [0, 0, 1, 1], [], []>} : vector<32x64xf32>, vector<64x64xf32>, vector<32x64xf32> -> vector<32x64xf32>
    %c1_71 = arith.constant 1 : index
    %c0_72 = arith.constant 0 : index
    %c0_73 = arith.constant 0 : index
    %283 = vector.load %arg6[%c1_71, %c0_72, %c0_73] : memref<2x7x128xf32, #tpu.memory_space<vmem>>, vector<1x1x64xf32>
    %284 = vector.shape_cast %283 : vector<1x1x64xf32> to vector<1x64xf32>
    %285 = vector.broadcast %284 : vector<1x64xf32> to vector<32x64xf32>
    %286 = arith.addf %282, %285 : vector<32x64xf32>
    %287 = arith.addf %190, %286 : vector<32x64xf32>
    %c1_74 = arith.constant 1 : index
    %c1_75 = arith.constant 1 : index
    %c0_76 = arith.constant 0 : index
    %288 = vector.load %arg6[%c1_74, %c1_75, %c0_76] : memref<2x7x128xf32, #tpu.memory_space<vmem>>, vector<1x1x64xf32>
    %289 = vector.shape_cast %288 : vector<1x1x64xf32> to vector<1x64xf32>
    %c1_77 = arith.constant 1 : index
    %c2_78 = arith.constant 2 : index
    %c0_79 = arith.constant 0 : index
    %290 = vector.load %arg6[%c1_77, %c2_78, %c0_79] : memref<2x7x128xf32, #tpu.memory_space<vmem>>, vector<1x1x64xf32>
    %291 = vector.shape_cast %290 : vector<1x1x64xf32> to vector<1x64xf32>
    %cst_80 = arith.constant dense<0.000000e+00> : vector<32xf32>
    %292 = vector.multi_reduction <add>, %287, %cst_80 [1] : vector<32x64xf32> to vector<32xf32>
    %293 = vector.shape_cast %292 : vector<32xf32> to vector<32x1xf32>
    %cst_81 = arith.constant 6.400000e+01 : f32
    %294 = vector.broadcast %cst_81 : f32 to vector<32x1xf32>
    %295 = arith.divf %293, %294 : vector<32x1xf32>
    %296 = vector.broadcast %295 : vector<32x1xf32> to vector<32x64xf32>
    %297 = arith.subf %287, %296 : vector<32x64xf32>
    %298 = arith.mulf %297, %297 : vector<32x64xf32>
    %cst_82 = arith.constant dense<0.000000e+00> : vector<32xf32>
    %299 = vector.multi_reduction <add>, %298, %cst_82 [1] : vector<32x64xf32> to vector<32xf32>
    %300 = vector.shape_cast %299 : vector<32xf32> to vector<32x1xf32>
    %cst_83 = arith.constant 6.400000e+01 : f32
    %301 = vector.broadcast %cst_83 : f32 to vector<32x1xf32>
    %302 = arith.divf %300, %301 : vector<32x1xf32>
    %303 = vector.broadcast %295 : vector<32x1xf32> to vector<32x64xf32>
    %304 = arith.subf %287, %303 : vector<32x64xf32>
    %cst_84 = arith.constant 9.99999974E-6 : f32
    %305 = vector.broadcast %cst_84 : f32 to vector<32x1xf32>
    %306 = arith.addf %302, %305 : vector<32x1xf32>
    %307 = math.rsqrt %306 : vector<32x1xf32>
    %308 = vector.broadcast %307 : vector<32x1xf32> to vector<32x64xf32>
    %309 = arith.mulf %304, %308 : vector<32x64xf32>
    %310 = vector.broadcast %289 : vector<1x64xf32> to vector<32x64xf32>
    %311 = arith.mulf %309, %310 : vector<32x64xf32>
    %312 = vector.broadcast %291 : vector<1x64xf32> to vector<32x64xf32>
    %313 = arith.addf %311, %312 : vector<32x64xf32>
    %c1_85 = arith.constant 1 : index
    %c0_86 = arith.constant 0 : index
    %c0_87 = arith.constant 0 : index
    %314 = vector.load %arg7[%c1_85, %c0_86, %c0_87] : memref<2x64x128xf32, #tpu.memory_space<vmem>>, vector<1x64x128xf32>
    %315 = vector.shape_cast %314 : vector<1x64x128xf32> to vector<64x128xf32>
    %cst_88 = arith.constant dense<0.000000e+00> : vector<32x128xf32>
    %316 = tpu.matmul %313, %315, %cst_88 {dimension_numbers = #tpu.dot_dimension_numbers<[1], [0], [0], [1], [0, 0, 1, 1], [], []>} : vector<32x64xf32>, vector<64x128xf32>, vector<32x128xf32> -> vector<32x128xf32>
    %c1_89 = arith.constant 1 : index
    %c3_90 = arith.constant 3 : index
    %c0_91 = arith.constant 0 : index
    %317 = vector.load %arg6[%c1_89, %c3_90, %c0_91] : memref<2x7x128xf32, #tpu.memory_space<vmem>>, vector<1x1x128xf32>
    %318 = vector.shape_cast %317 : vector<1x1x128xf32> to vector<1x128xf32>
    %319 = vector.broadcast %318 : vector<1x128xf32> to vector<32x128xf32>
    %320 = arith.addf %316, %319 : vector<32x128xf32>
    %cst_92 = arith.constant 0.000000e+00 : f32
    %321 = vector.broadcast %cst_92 : f32 to vector<32x128xf32>
    %322 = arith.maximumf %320, %321 : vector<32x128xf32>
    %c1_93 = arith.constant 1 : index
    %c0_94 = arith.constant 0 : index
    %c0_95 = arith.constant 0 : index
    %323 = vector.load %arg8[%c1_93, %c0_94, %c0_95] : memref<2x128x64xf32, #tpu.memory_space<vmem>>, vector<1x128x64xf32>
    %324 = vector.shape_cast %323 : vector<1x128x64xf32> to vector<128x64xf32>
    %cst_96 = arith.constant dense<0.000000e+00> : vector<32x64xf32>
    %325 = tpu.matmul %322, %324, %cst_96 {dimension_numbers = #tpu.dot_dimension_numbers<[1], [0], [0], [1], [0, 0, 1, 1], [], []>} : vector<32x128xf32>, vector<128x64xf32>, vector<32x64xf32> -> vector<32x64xf32>
    %c1_97 = arith.constant 1 : index
    %c4_98 = arith.constant 4 : index
    %c0_99 = arith.constant 0 : index
    %326 = vector.load %arg6[%c1_97, %c4_98, %c0_99] : memref<2x7x128xf32, #tpu.memory_space<vmem>>, vector<1x1x64xf32>
    %327 = vector.shape_cast %326 : vector<1x1x64xf32> to vector<1x64xf32>
    %328 = vector.broadcast %327 : vector<1x64xf32> to vector<32x64xf32>
    %329 = arith.addf %325, %328 : vector<32x64xf32>
    %330 = arith.addf %313, %329 : vector<32x64xf32>
    %c1_100 = arith.constant 1 : index
    %c5_101 = arith.constant 5 : index
    %c0_102 = arith.constant 0 : index
    %331 = vector.load %arg6[%c1_100, %c5_101, %c0_102] : memref<2x7x128xf32, #tpu.memory_space<vmem>>, vector<1x1x64xf32>
    %332 = vector.shape_cast %331 : vector<1x1x64xf32> to vector<1x64xf32>
    %c1_103 = arith.constant 1 : index
    %c6_104 = arith.constant 6 : index
    %c0_105 = arith.constant 0 : index
    %333 = vector.load %arg6[%c1_103, %c6_104, %c0_105] : memref<2x7x128xf32, #tpu.memory_space<vmem>>, vector<1x1x64xf32>
    %334 = vector.shape_cast %333 : vector<1x1x64xf32> to vector<1x64xf32>
    %cst_106 = arith.constant dense<0.000000e+00> : vector<32xf32>
    %335 = vector.multi_reduction <add>, %330, %cst_106 [1] : vector<32x64xf32> to vector<32xf32>
    %336 = vector.shape_cast %335 : vector<32xf32> to vector<32x1xf32>
    %cst_107 = arith.constant 6.400000e+01 : f32
    %337 = vector.broadcast %cst_107 : f32 to vector<32x1xf32>
    %338 = arith.divf %336, %337 : vector<32x1xf32>
    %339 = vector.broadcast %338 : vector<32x1xf32> to vector<32x64xf32>
    %340 = arith.subf %330, %339 : vector<32x64xf32>
    %341 = arith.mulf %340, %340 : vector<32x64xf32>
    %cst_108 = arith.constant dense<0.000000e+00> : vector<32xf32>
    %342 = vector.multi_reduction <add>, %341, %cst_108 [1] : vector<32x64xf32> to vector<32xf32>
    %343 = vector.shape_cast %342 : vector<32xf32> to vector<32x1xf32>
    %cst_109 = arith.constant 6.400000e+01 : f32
    %344 = vector.broadcast %cst_109 : f32 to vector<32x1xf32>
    %345 = arith.divf %343, %344 : vector<32x1xf32>
    %346 = vector.broadcast %338 : vector<32x1xf32> to vector<32x64xf32>
    %347 = arith.subf %330, %346 : vector<32x64xf32>
    %cst_110 = arith.constant 9.99999974E-6 : f32
    %348 = vector.broadcast %cst_110 : f32 to vector<32x1xf32>
    %349 = arith.addf %345, %348 : vector<32x1xf32>
    %350 = math.rsqrt %349 : vector<32x1xf32>
    %351 = vector.broadcast %350 : vector<32x1xf32> to vector<32x64xf32>
    %352 = arith.mulf %347, %351 : vector<32x64xf32>
    %353 = vector.broadcast %332 : vector<1x64xf32> to vector<32x64xf32>
    %354 = arith.mulf %352, %353 : vector<32x64xf32>
    %355 = vector.broadcast %334 : vector<1x64xf32> to vector<32x64xf32>
    %356 = arith.addf %354, %355 : vector<32x64xf32>
    %c0_111 = arith.constant 0 : index
    %c0_112 = arith.constant 0 : index
    %357 = vector.load %arg9[%c0_111, %c0_112] : memref<64x128xf32, #tpu.memory_space<vmem>>, vector<64x128xf32>
    %cst_113 = arith.constant dense<0.000000e+00> : vector<32x128xf32>
    %358 = tpu.matmul %356, %357, %cst_113 {dimension_numbers = #tpu.dot_dimension_numbers<[1], [0], [0], [1], [0, 0, 1, 1], [], []>} : vector<32x64xf32>, vector<64x128xf32>, vector<32x128xf32> -> vector<32x128xf32>
    %c0_114 = arith.constant 0 : index
    %c0_115 = arith.constant 0 : index
    %359 = vector.load %arg10[%c0_114, %c0_115] : memref<4x128xf32, #tpu.memory_space<vmem>>, vector<1x128xf32>
    %360 = vector.broadcast %359 : vector<1x128xf32> to vector<32x128xf32>
    %361 = arith.addf %358, %360 : vector<32x128xf32>
    %362 = math.tanh %361 : vector<32x128xf32>
    %c1_116 = arith.constant 1 : index
    %c0_117 = arith.constant 0 : index
    %363 = vector.load %arg10[%c1_116, %c0_117] : memref<4x128xf32, #tpu.memory_space<vmem>>, vector<1x128xf32>
    %364 = vector.broadcast %363 : vector<1x128xf32> to vector<32x128xf32>
    %365 = arith.mulf %362, %364 : vector<32x128xf32>
    %cst_118 = arith.constant dense<0.000000e+00> : vector<32xf32>
    %366 = vector.multi_reduction <add>, %365, %cst_118 [1] : vector<32x128xf32> to vector<32xf32>
    %367 = vector.shape_cast %366 : vector<32xf32> to vector<32x1xf32>
    %c2_119 = arith.constant 2 : index
    %c0_120 = arith.constant 0 : index
    %368 = vector.load %arg10[%c2_119, %c0_120] : memref<4x128xf32, #tpu.memory_space<vmem>>, vector<1x1xf32>
    %369 = vector.broadcast %368 : vector<1x1xf32> to vector<32x1xf32>
    %370 = arith.addf %367, %369 : vector<32x1xf32>
    %371 = vector.shape_cast %370 : vector<32x1xf32> to vector<2x16x1xf32>
    %cst_121 = arith.constant dense<0xFF800000> : vector<2x1xf32>
    %372 = vector.multi_reduction <maximumf>, %371, %cst_121 [1] : vector<2x16x1xf32> to vector<2x1xf32>
    %373 = vector.shape_cast %372 : vector<2x1xf32> to vector<2x1x1xf32>
    %374 = vector.broadcast %373 : vector<2x1x1xf32> to vector<2x16x1xf32>
    %375 = arith.subf %371, %374 : vector<2x16x1xf32>
    %376 = math.exp %375 : vector<2x16x1xf32>
    %cst_122 = arith.constant dense<0.000000e+00> : vector<2x1xf32>
    %377 = vector.multi_reduction <add>, %376, %cst_122 [1] : vector<2x16x1xf32> to vector<2x1xf32>
    %378 = vector.shape_cast %377 : vector<2x1xf32> to vector<2x1x1xf32>
    %379 = tpu.reciprocal %378 : vector<2x1x1xf32> -> vector<2x1x1xf32>
    %380 = vector.broadcast %379 : vector<2x1x1xf32> to vector<2x16x1xf32>
    %381 = arith.mulf %376, %380 : vector<2x16x1xf32>
    %382 = vector.shape_cast %356 : vector<32x64xf32> to vector<2x16x64xf32>
    %383 = vector.broadcast %381 : vector<2x16x1xf32> to vector<2x16x64xf32>
    %384 = arith.mulf %383, %382 : vector<2x16x64xf32>
    %cst_123 = arith.constant dense<0.000000e+00> : vector<2x64xf32>
    %385 = vector.multi_reduction <add>, %384, %cst_123 [1] : vector<2x16x64xf32> to vector<2x64xf32>
    %c0_124 = arith.constant 0 : index
    %c0_125 = arith.constant 0 : index
    %386 = vector.load %arg11[%c0_124, %c0_125] : memref<64x2xf32, #tpu.memory_space<vmem>>, vector<64x2xf32>
    %cst_126 = arith.constant dense<0.000000e+00> : vector<2x2xf32>
    %387 = tpu.matmul %385, %386, %cst_126 {dimension_numbers = #tpu.dot_dimension_numbers<[1], [0], [0], [1], [0, 0, 1, 1], [], []>} : vector<2x64xf32>, vector<64x2xf32>, vector<2x2xf32> -> vector<2x2xf32>
    %c3_127 = arith.constant 3 : index
    %c0_128 = arith.constant 0 : index
    %388 = vector.load %arg10[%c3_127, %c0_128] : memref<4x128xf32, #tpu.memory_space<vmem>>, vector<1x2xf32>
    %389 = vector.broadcast %388 : vector<1x2xf32> to vector<2x2xf32>
    %390 = arith.addf %387, %389 : vector<2x2xf32>
    %c0_129 = arith.constant 0 : index
    %c0_130 = arith.constant 0 : index
    %391 = vector.load %arg12[%c0_129, %c0_130] : memref<2x2xf32, #tpu.memory_space<vmem>>, vector<2x2xf32>
    tpu.vector_store %arg12[%c0_129, %c0_130], %390 {strides = array<i32>} : memref<2x2xf32, #tpu.memory_space<vmem>>, vector<2x2xf32>,
    return
  }
}

</mosaic_0001>

<bundles_post_ra>
// kernel: tpu_custom_call.1
= control target key start
LH: loop header
LB: loop body
LE: loop exit
PB: predicated region body
PF: predicated region fallthrough
CT: control target
= control target key end

     0   :  { %17 = vsyncpa [#allocation3], 0  ;;  %s8210_s0 = inlined_call_operand.vmem [shape: f32[32,3], index: 0, kind: input, shape index: {}]   ;;  %s8211_s1 = inlined_call_operand.vmem [shape: f32[32,64], index: 1, kind: input, shape index: {}]   ;;  %s8212_s2 = inlined_call_operand.vmem [shape: f32[2,16], index: 2, kind: input, shape index: {}]   ;;  %s8213_s3 = inlined_call_operand.vmem [shape: f32[2,64,192], index: 3, kind: input, shape index: {}]   ;;  %s8214_s4 = inlined_call_operand.hbm [shape: f32[2,1,192], index: 4, kind: input, shape index: {}]   ;;  %s8215_s5 = inlined_call_operand.vmem [shape: f32[2,64,64], index: 5, kind: input, shape index: {}]   ;;  %s8216_s6 = inlined_call_operand.vmem [shape: f32[2,7,128], index: 6, kind: input, shape index: {}]   ;;  %s8217_s7 = inlined_call_operand.hbm [shape: f32[2,64,128], index: 7, kind: input, shape index: {}]   ;;  %s8218_s8 = inlined_call_operand.vmem [shape: f32[2,128,64], index: 8, kind: input, shape index: {}]   ;;  %s8219_s9 = inlined_call_operand.hbm [shape: f32[64,128], index: 9, kind: input, shape index: {}]   ;;  %s8220_s10 = inlined_call_operand.vmem [shape: f32[4,128], index: 10, kind: input, shape index: {}]   ;;  %s8221_s11 = inlined_call_operand.vmem [shape: f32[64,2], index: 11, kind: input, shape index: {}]   ;;  %s8222_s12 = inlined_call_operand.hbm [shape: f32[2,2], index: 12, kind: output, shape index: {}]  }
   0x1   :  { %18 = vsyncpa [#allocation6], 0 }
   0x2   :  { %19 = vsyncpa [#allocation4], 0  ;;  %s6869_s21 = smov [#allocation5]   ;;  %s6775_s25 = scalar_lea.hbm %s8217_s7, 2048 }
   0x3   :  { %s49_s22 = sshll.u32 %s6869_s21, 4  ;;  %p6776_p0 = scmp.ne.s32.totalorder %s8217_s7, %s6775_s25  ;;  %s50_s22 = int_to_ptr.vmem [resolvable:$true] %s49_s22 }
   0x4   :  { %p6779_p1 = scmp.lt.u32.totalorder %s6775_s25, %s8217_s7 }
   0x6   :  { %p6781_p2 = pnand %p6779_p1, %p6776_p0 }
   0x8   :  { %6784 = shalt.err (!%p6781_p2)
}
   0x9   :  { %s6785_s30 = scalar_lea.vmem %s50_s22, 2048  ;;  %p6790_p4 = scmp.lt.s32.totalorder %s50_s22, %s50_s22 }
   0xa   :  { %p6786_p3 = scmp.ne.s32.totalorder %s50_s22, %s6785_s30  ;;  %p6791_p5 = scmp.lt.s32.totalorder %s6785_s30, %s6785_s30 }
   0xc   :  { %p6792_p6 = por %p6791_p5, %p6790_p4 }
   0xe   :  { %p6793_p7 = pnand %p6792_p6, %p6786_p3 }
  0x10   :  { %6796 = shalt.err (!%p6793_p7)
}
  0x11   :  { %s6870_s13 = smov 128   ;;  %s6871_s14 = smov 8  }
  0x12   :  { %55 = dma.hbm_to_vmem [thread:$0]  %s8217_s7, 2048, %s50_s22, [#allocation6], %s6870_s13, %s6870_s13, %s6871_s14  }
  0x13   :  { %s6872_s17 = smov [#allocation2]   ;;  %s6797_s21 = scalar_lea.hbm %s8214_s4, 64 }
  0x14   :  { %s33_s18 = sshll.u32 %s6872_s17, 4  ;;  %p6798_p8 = scmp.ne.s32.totalorder %s8214_s4, %s6797_s21  ;;  %s34_s18 = int_to_ptr.vmem [resolvable:$true] %s33_s18 }
  0x15   :  { %p6801_p9 = scmp.lt.u32.totalorder %s6797_s21, %s8214_s4 }
  0x17   :  { %p6803_p10 = pnand %p6801_p9, %p6798_p8 }
  0x19   :  { %6806 = shalt.err (!%p6803_p10)
}
  0x1a   :  { %s6807_s27 = scalar_lea.vmem %s34_s18, 64  ;;  %p6812_p12 = scmp.lt.s32.totalorder %s34_s18, %s34_s18 }
  0x1b   :  { %p6808_p11 = scmp.ne.s32.totalorder %s34_s18, %s6807_s27  ;;  %p6813_p13 = scmp.lt.s32.totalorder %s6807_s27, %s6807_s27 }
  0x1d   :  { %p6814_p0 = por %p6813_p13, %p6812_p12 }
  0x1f   :  { %p6815_p1 = pnand %p6814_p0, %p6808_p11 }
  0x21   :  { %6818 = shalt.err (!%p6815_p1)
}
  0x22   :  { %s6873_s7 = smov 32   ;;  %s6874_s22 = smov 2  }
  0x23   :  { %39 = dma.hbm_to_vmem [thread:$0]  %s8214_s4, 64, %s34_s18, [#allocation3], %s6873_s7, %s6873_s7, %s6874_s22  }
  0x24   :  { %s6875_s30 = smov [#allocation7]   ;;  %s6819_s19 = scalar_lea.hbm %s8219_s9, 1024 }
  0x25   :  { %s63_s15 = sshll.u32 %s6875_s30, 4  ;;  %p6820_p2 = scmp.ne.s32.totalorder %s8219_s9, %s6819_s19  ;;  %s64_s15 = int_to_ptr.vmem [resolvable:$true] %s63_s15 }
  0x26   :  { %p6823_p3 = scmp.lt.u32.totalorder %s6819_s19, %s8219_s9 }
  0x28   :  { %p6825_p4 = pnand %p6823_p3, %p6820_p2 }
  0x2a   :  { %6828 = shalt.err (!%p6825_p4)
}
  0x2b   :  { %s6829_s25 = scalar_lea.vmem %s64_s15, 1024  ;;  %p6834_p6 = scmp.lt.s32.totalorder %s64_s15, %s64_s15 }
  0x2c   :  { %p6830_p5 = scmp.ne.s32.totalorder %s64_s15, %s6829_s25  ;;  %p6835_p7 = scmp.lt.s32.totalorder %s6829_s25, %s6829_s25 }
  0x2e   :  { %p6836_p8 = por %p6835_p7, %p6834_p6 }
  0x30   :  { %p6837_p9 = pnand %p6836_p8, %p6830_p5 }
  0x32   :  { %6840 = shalt.err (!%p6837_p9)
}
  0x33   :  { %69 = dma.hbm_to_vmem [thread:$0]  %s8219_s9, 1024, %s64_s15, [#allocation6], %s6870_s13, %s6870_s13, %s6871_s14  }
  0x34   :  { %6863 = dma.done.wait [#allocation3], 64  }
  0x35   :  { %6864 = vsyncadd [#allocation3], 4294967232 }
  0x36   :  { %6865 = dma.done.wait [#allocation6], 3072  }
  0x37   :  { %6866 = vsyncadd [#allocation6], 4294964224  ;;  %v6876_v0 = vmov 0   ;;  %v84_v1 = vld [vmem:[%s8210_s0 + $0x8] sm:$0xff]  ;;  %v83_v2 = vld [vmem:[%s8210_s0] sm:$0xff]  ;;  %v6877_v3 = vmov 1  }
  0x38   :  { %6440 = vset.pattern.permute.xlu1 %v6876_v0  ;;  %6438 = vset.pattern.permute.xlu0 %v6876_v0  ;;  %v85_v4 = vld [vmem:[%s8210_s0 + $0x10] sm:$0xff]  ;;  %v6412_v5 = vtrunc.f32 %v84_v1  ;;  %v86_v6 = vld [vmem:[%s8210_s0 + $0x18] sm:$0xff]  ;;  %v6410_v7 = vtrunc.f32 %v83_v2  ;;  %v6878_v11 = vmov 2   ;;  %v201_v13 = vld [vmem:[%s8211_s1] sm:$0xff]  ;;  %v6879_v16 = vmov 0.0   ;;  %s6881_s30 = smov 112  }
  0x39   :  { %126 = vperm.xlu1 %6440, %v84_v1   ;;  %121 = vperm.xlu0 %6438, %v83_v2   ;;  %v6414_v8 = vtrunc.f32 %v85_v4  ;;  %v202_v14 = vld [vmem:[%s8211_s1 + $0x8] sm:$0xff]  ;;  %vm155_vm0 = vcmask 64512   ;;  %v5170_v19 = vld [vmem:[%s8212_s2] ss:$0 sm:$0xff]  ;;  %v5171_v22 = vld [vmem:[%s8212_s2 + $0x1] ss:$0 sm:$0xff]  ;;  %v6416_v43 = vtrunc.f32 %v86_v6 }
  0x3a   :  { %v6413_v9 = vcvt.f32.s32 %v6412_v5  ;;  %v6411_v10 = vcvt.f32.s32 %v6410_v7  ;;  %v6054_v15 = vpack.c.bf16 %v202_v14, %v201_v13  ;;  %408 = vmatprep.mubr.f32.mxu1 %v6879_v16  ;;  %v203_v27 = vld [vmem:[%s8211_s1 + $0x10] sm:$0xff]  ;;  %v204_v28 = vld [vmem:[%s8211_s1 + $0x18] sm:$0xff]  ;;  %s6880_s1 = smov 16   ;;  %v304_v48 = vld [vmem:[%s8213_s3 + $0x8] sm:$0xff]  ;;  %vm196_vm2 = vcmask 130048   ;;  %s6882_s15 = smov 96  }
  0x3b   :  { %v6415_v12 = vcvt.f32.s32 %v6414_v8  ;;  %v6058_v31 = vpack.c.bf16 %v204_v28, %v203_v27  ;;  %v6417_v46 = vcvt.f32.s32 %v6416_v43  ;;  %v306_v49 = vld [vmem:[%s8213_s3 + $0x18] sm:$0xff]  ;;  %v303_v50 = vld [vmem:[%s8213_s3] sm:$0xff]  ;;  %v305_v52 = vld [vmem:[%s8213_s3 + $0x10] sm:$0xff]  ;;  %v93_v8 = vlaneseq  ;;  %s6883_s0 = smov 80   ;;  %s6884_s16 = smov 64  }
  0x3c   :  { %6055 = vmatprep.subr.bf16.mxu0 %v6054_v15  ;;  %v6062_v51 = vpack.c.bf16 %v306_v49, %v304_v48  ;;  %v308_v53 = vld [vmem:[%s8213_s3 + $0x28] sm:$0xff]  ;;  %v310_v54 = vld [vmem:[%s8213_s3 + $0x38] sm:$0xff]  ;;  %v6064_v55 = vpack.c.bf16 %v305_v52, %v303_v50  ;;  %v307_v57 = vld [vmem:[%s8213_s3 + $0x20] sm:$0xff]  ;;  %vm205_vm5 = vcmask 261120   ;;  %vm331_vm7 = vcmask 523264   ;;  %s6885_s14 = smov 48  }
  0x3d   :  { %6441 = vset.pattern.permute.xlu1 %v6877_v3  ;;  %6439 = vset.pattern.permute.xlu0 %v6877_v3  ;;  %v6066_v56 = vpack.c.bf16 %v310_v54, %v308_v53  ;;  %v309_v58 = vld [vmem:[%s8213_s3 + $0x30] sm:$0xff]  ;;  %v312_v59 = vld [vmem:[%s8213_s3 + $0x48] sm:$0xff]  ;;  %v314_v60 = vld [vmem:[%s8213_s3 + $0x58] sm:$0xff]  ;;  %vm2049_vm9 = vcmask 392192   ;;  %vm4962_vm10 = vcmask 7168   ;;  %vm6887_vm11 = vmmov 0  }
  0x3e   :  { %144 = vperm.xlu1 %6441, %v84_v1   ;;  %140 = vperm.xlu0 %6439, %v83_v2   ;;  %v6068_v61 = vpack.c.bf16 %v309_v58, %v307_v57  ;;  %v6070_v62 = vpack.c.bf16 %v314_v60, %v312_v59  ;;  %v311_v63 = vld [vmem:[%s8213_s3 + $0x40] sm:$0xff]  ;;  %v316_v1 = vld [vmem:[%s8213_s3 + $0x68] sm:$0xff]  ;;  %v318_v2 = vld [vmem:[%s8213_s3 + $0x78] sm:$0xff]  ;;  %vm5074_vm12 = vcmask 1041409   ;;  %s6888_s2 = smov [#allocation8]   ;;  %vm5148_vm13 = vcmask 9216  }
  0x3f   :  { %6057 = vmatpush3.bf16.msra.mxu0 %v6054_v15  ;;  %6063 = vmatprep.subr.bf16.mxu1 %v6062_v51  ;;  %v315_v5 = vld [vmem:[%s8213_s3 + $0x60] sm:$0xff]  ;;  %vm7193_vm8 = vmpackc.low %vm196_vm2, %vm196_vm2  ;;  %s5156_s18 = sshll.u32 %s6888_s2, 4  ;;  %s5157_s18 = int_to_ptr.vmem [resolvable:$true] %s5156_s18 }
  0x40   :  { %6059 = vmatprep.subr.bf16.mxu0 %v6058_v31  ;;  %6065 = vmatpush1.bf16.msra.mxu1 %v6064_v55  ;;  %s6841_s26 = scalar_lea.vmem %s5157_s18, 32  ;;  %p6846_p11 = scmp.lt.s32.totalorder %s5157_s18, %s5157_s18 }
  0x41   :  { %6067 = vmatprep.subr.bf16.mxu1 %v6066_v56  ;;  %p6842_p10 = scmp.ne.s32.totalorder %s5157_s18, %s6841_s26  ;;  %p6847_p12 = scmp.lt.s32.totalorder %s6841_s26, %s6841_s26 }
  0x42   :  { %6442 = vset.pattern.permute.xlu1 %v6876_v0  ;;  %148 = vperm.xlu0 %6439, %v85_v4  }
  0x43   :  { %131 = vperm.xlu1 %6442, %v85_v4   ;;  %6061 = vmatpush3.bf16.msra.mxu0 %v6058_v31  ;;  %v6074_v4 = vpack.c.bf16 %v318_v2, %v316_v1  ;;  %v7121_v31 = vshrl.u32 %v93_v8, 7  ;;  %p6848_p13 = por %p6847_p12, %p6846_p11 }
  0x44   :  { %6069 = vmatpush1.bf16.msra.mxu1 %v6068_v61 }
  0x45   :  { %6071 = vmatprep.subr.bf16.mxu1 %v6070_v62  ;;  %p6849_p0 = pnand %p6848_p13, %p6842_p10 }
  0x46   :  { %152 = vperm.xlu0 %6439, %v86_v6  }
  0x47   :  { %136 = vperm.xlu1 %6442, %v86_v6   ;;  %v317_v6 = vld [vmem:[%s8213_s3 + $0x70] sm:$0xff] }
  0x48   :  { %v6076_v7 = vpack.c.bf16 %v317_v6, %v315_v5 }
  0x4a   :  { %6444 = vset.pattern.permute.xlu0 %v6878_v11 }
  0x4b   :  { %6443 = vset.pattern.permute.xlu1 %v6878_v11  ;;  %99 = vperm.xlu0 %6444, %v6413_v9   ;;  %v94_v9 = vand.u32 127, %v93_v8 }
  0x4c   :  { %96 = vperm.xlu1 %6443, %v6411_v10  }
  0x4f   :  { %102 = vperm.xlu0 %6444, %v6415_v12  }
  0x53   :  { %6586 = vset.pattern.permute.xlu0 %v6876_v0 }
  0xb8   :  { %v122_v17 = vpop.permute.xlu0 %121  ;;  %v127_v18 = vpop.permute.xlu1 %126 }
  0xbd   :  { %v145_v20 = vpop.permute.xlu1 %144  ;;  %v141_v21 = vpop.permute.xlu0 %140 }
  0xbe   :  { %v157_v23 = vsel %vm155_vm0, %v127_v18, %v145_v20  ;;  %v156_v24 = vsel %vm155_vm0, %v122_v17, %v141_v21 }
  0xbf   :  { %v165_v25 = vmul.f32 %v5170_v19, %v157_v23  ;;  %v164_v26 = vmul.f32 %v5170_v19, %v156_v24 }
  0xc1   :  { %v172_v29 = vadd.f32 %v5171_v22, %v164_v26  ;;  %v149_v30 = vpop.permute.xlu0 %148  ;;  %v173_v33 = vadd.f32 %v5171_v22, %v165_v25 }
  0xc2   :  { %v132_v32 = vpop.permute.xlu1 %131 }
  0xc3   :  { %v158_v34 = vsel %vm155_vm0, %v132_v32, %v149_v30  ;;  %6587 = vtanh.f32 %v172_v29  ;;  %v323_v32 = vsub.s32 0, %v7121_v31 }
  0xc4   :  { %v166_v35 = vmul.f32 %v5170_v19, %v158_v34  ;;  %6589 = vtanh.f32 %v173_v33  ;;  %v319_v33 = vld [vmem:[#allocation2] sm:$0x3] }
  0xc5   :  { %v153_v36 = vpop.permute.xlu0 %152  ;;  %v324_v34 = vrot.slane %v319_v33, %v323_v32 }
  0xc6   :  { %v174_v37 = vadd.f32 %v5171_v22, %v166_v35  ;;  %v137_v38 = vpop.permute.xlu1 %136  ;;  %v327_v35 = vsub.s32 1, %v7121_v31 }
  0xc7   :  { %v159_v39 = vsel %vm155_vm0, %v137_v38, %v153_v36 }
  0xc8   :  { %6591 = vtanh.f32 %v174_v37  ;;  %v167_v40 = vmul.f32 %v5170_v19, %v159_v39  ;;  %v328_v39 = vrot.slane %v319_v33, %v327_v35 }
  0xca   :  { %v175_v41 = vadd.f32 %v5171_v22, %v167_v40  ;;  %v100_v10 = vpop.permute.xlu0 %99 }
  0xcb   :  { %v97_v11 = vpop.permute.xlu1 %96  ;;  %vm108_vm3 = vcmp.eq.s32.totalorder %v100_v10, %v94_v9 }
  0xcc   :  { %6593 = vtanh.f32 %v175_v41  ;;  %vm107_vm1 = vcmp.eq.s32.totalorder %v97_v11, %v94_v9  ;;  %v5167_v17 = vsel %vm108_vm3, 1.0, %v6879_v16 }
  0xcd   :  { %v6588_v42 = vpop.eup %6587  ;;  %v5166_v13 = vsel %vm107_vm1, 1.0, %v6879_v16 }
  0xce   :  { %184 = vrot.lane.b32.xlu1 %v6588_v42, %s6880_s1  ;;  %v6590_v44 = vpop.eup %6589  ;;  %v103_v12 = vpop.permute.xlu0 %102 }
  0xcf   :  { %vm109_vm4 = vcmp.eq.s32.totalorder %v103_v12, %v94_v9 }
  0xd0   :  { %v5168_v18 = vsel %vm109_vm4, 1.0, %v6879_v16 }
  0xd2   :  { %v6592_v45 = vpop.eup %6591  ;;  %186 = vrot.lane.b32.xlu1 %v6590_v44, %s6880_s1 }
  0xd3   :  { %188 = vrot.lane.b32.xlu0 %v6592_v45, %s6880_s1 }
  0xd6   :  { %105 = vperm.xlu1 %6443, %v6417_v46   ;;  %v6594_v47 = vpop.eup %6593 }
  0xda   :  { %190 = vrot.lane.b32.xlu1 %v6594_v47, %s6880_s1 }
  0xdb   :  { %6585 = vset.pattern.permute.xlu1 %v6876_v0  ;;  %v313_v0 = vld [vmem:[%s8213_s3 + $0x50] sm:$0xff] }
  0xdc   :  { %v6072_v3 = vpack.c.bf16 %v313_v0, %v311_v63 }
  0xde   :  { %6073 = vmatpush1.bf16.msra.mxu1 %v6072_v3 }
  0xdf   :  { %6075 = vmatprep.subr.bf16.mxu1 %v6074_v4 }
  0xe2   :  { %6077 = vmatpush1.bf16.msra.mxu1 %v6076_v7 }
 0x140   :  { %v185_v14 = vpop.permute.xlu1 %184 }
 0x141   :  { %v197_v15 = vsel %vm196_vm2, %v5166_v13, %v185_v14 }
 0x142   :  { %5619 = vmatprep.mubr.msk.f32.mxu0 %vm205_vm5, %v197_v15 }
 0x144   :  { %v187_v19 = vpop.permute.xlu1 %186 }
 0x145   :  { %v189_v20 = vpop.permute.xlu0 %188  ;;  %v198_v21 = vsel %vm196_vm2, %v5167_v17, %v187_v19 }
 0x146   :  { %v199_v22 = vsel %vm196_vm2, %v5168_v18, %v189_v20  ;;  %5620 = vmatmul.mubr.msk.f32.vlgmr.msra.gmra.mrb[0].mxu0 %vm205_vm5, %v198_v21 }
 0x147   :  { %5622 = vmatprep.mubr.msk.f32.mxu0 %vm205_vm5, %v199_v22 }
 0x155   :  { %v106_v23 = vpop.permute.xlu1 %105 }
 0x156   :  { %vm110_vm6 = vcmp.eq.s32.totalorder %v106_v23, %v94_v9 }
 0x157   :  { %v5169_v24 = vsel %vm110_vm6, 1.0, %v6879_v16 }
 0x159   :  { %v191_v25 = vpop.permute.xlu1 %190 }
 0x15a   :  { %v200_v26 = vsel %vm196_vm2, %v5169_v24, %v191_v25 }
 0x15b   :  { %5623 = vmatmul.mubr.msk.f32.gmra.mrb[2].mxu0 %vm205_vm5, %v200_v26 }
 0x219   :  { %v7102_v27 = vpop.f32.mrb[0].mxu0 }
 0x21a   :  { %v7104_v28 = vpop.f32.mrb[1].mxu0 }
 0x21b   :  { %5176 = vmatmul.mubr.msk.f32.vlgmr.msra.gmra.mrb[0].mxu1 %vm331_vm7, %v7104_v28 }
 0x21c   :  { %414 = vmatprep.mubr.f32.mxu1 %v6879_v16 }
 0x21f   :  { %5177 = vmatmul.mubr.msk.f32.gmra.mrb[2].mxu1 %vm331_vm7, %v7102_v27 }
 0x220   :  { %420 = vmatprep.mubr.f32.mxu1 %v6879_v16 }
 0x22e   :  { %v7112_v29 = vpop.f32.mrb[2].mxu0 }
 0x22f   :  { %v7114_v30 = vpop.f32.mrb[3].mxu0 }
 0x230   :  { %5178 = vmatmul.mubr.msk.f32.gmra.mrb[4].mxu1 %vm331_vm7, %v7114_v30 }
 0x231   :  { %426 = vmatprep.mubr.f32.mxu1 %v6879_v16 }
 0x234   :  { %5179 = vmatmul.mubr.msk.f32.gmra.mrb[6].mxu1 %vm331_vm7, %v7112_v29 }
 0x2ee   :  { %v410_v36 = vpop.f32.mrb[0].mxu1 }
 0x2ef   :  { %v411_v37 = vadd.f32 %v410_v36, %v324_v34  ;;  %v412_v38 = vpop.f32.mrb[1].mxu1 }
 0x2f0   :  { %v413_v43 = vadd.f32 %v412_v38, %v328_v39 }
 0x2f1   :  { %435 = vrot.lane.b32.xlu0 %v411_v37, %s6881_s30  ;;  %5629 = vmatprep.mubr.msk.f32.mxu0 %vm196_vm2, %v411_v37 }
 0x2f2   :  { %v416_v40 = vpop.f32.mrb[2].mxu1 }
 0x2f3   :  { %v7131_v41 = vadd.f32 %v416_v40, %v324_v34  ;;  %v418_v42 = vpop.f32.mrb[3].mxu1 }
 0x2f4   :  { %v419_v44 = vadd.f32 %v418_v42, %v328_v39 }
 0x2f5   :  { %437 = vrot.lane.b32.xlu1 %v7131_v41, %s6881_s30  ;;  %439 = vrot.lane.b32.xlu0 %v411_v37, %s6882_s15  ;;  %v6445_v57 = vpack.i.bf16 %v7131_v41, %v411_v37 }
 0x2f6   :  { %v7136_v45 = vpack.i.bf16 %v419_v44, %v413_v43  ;;  %v7138_v46 = vpack.c.bf16 %v419_v44, %v413_v43 }
 0x2f9   :  { %441 = vrot.lane.b32.xlu1 %v7131_v41, %s6882_s15  ;;  %443 = vrot.lane.b32.xlu0 %v411_v37, %s6883_s0 }
 0x2fd   :  { %445 = vrot.lane.b32.xlu1 %v7131_v41, %s6883_s0 }
 0x303   :  { %v422_v47 = vpop.f32.mrb[4].mxu1 }
 0x304   :  { %v7145_v48 = vadd.f32 %v422_v47, %v324_v34  ;;  %v424_v49 = vpop.f32.mrb[5].mxu1 }
 0x305   :  { %v425_v50 = vadd.f32 %v424_v49, %v328_v39 }
 0x306   :  { %449 = vrot.lane.b32.xlu0 %v7145_v48, %s6881_s30 }
 0x307   :  { %v428_v51 = vpop.f32.mrb[6].mxu1 }
 0x308   :  { %v7149_v52 = vadd.f32 %v428_v51, %v324_v34  ;;  %v430_v53 = vpop.f32.mrb[7].mxu1 }
 0x309   :  { %v431_v54 = vadd.f32 %v430_v53, %v328_v39 }
 0x30a   :  { %451 = vrot.lane.b32.xlu1 %v7149_v52, %s6881_s30  ;;  %453 = vrot.lane.b32.xlu0 %v7145_v48, %s6882_s15  ;;  %v6465_v3 = vpack.i.bf16 %v7149_v52, %v7145_v48 }
 0x30b   :  { %v7155_v55 = vpack.i.bf16 %v431_v54, %v425_v50  ;;  %v7157_v56 = vpack.c.bf16 %v431_v54, %v425_v50 }
 0x30e   :  { %455 = vrot.lane.b32.xlu1 %v7149_v52, %s6882_s15  ;;  %457 = vrot.lane.b32.xlu0 %v7145_v48, %s6883_s0 }
 0x312   :  { %459 = vrot.lane.b32.xlu1 %v7149_v52, %s6883_s0  ;;  %6446 = vrot.lane.b32.xlu0 %v6445_v57, %s6884_s16 }
 0x363   :  { %v436_v58 = vpop.permute.xlu0 %435 }
 0x367   :  { %v440_v59 = vpop.permute.xlu0 %439  ;;  %v438_v60 = vpop.permute.xlu1 %437 }
 0x368   :  { %v6450_v61 = vpack.i.bf16 %v438_v60, %v436_v58 }
 0x36a   :  { %6451 = vrot.lane.b32.xlu1 %v6450_v61, %s6884_s16 }
 0x36b   :  { %v444_v62 = vpop.permute.xlu0 %443  ;;  %v442_v63 = vpop.permute.xlu1 %441 }
 0x36c   :  { %v6455_v0 = vpack.i.bf16 %v442_v63, %v440_v59  ;;  %5650 = vmatprep.mubr.msk.f32.mxu1 %vm196_vm2, %v444_v62 }
 0x36e   :  { %6456 = vrot.lane.b32.xlu0 %v6455_v0, %s6884_s16 }
 0x36f   :  { %v446_v1 = vpop.permute.xlu1 %445 }
 0x370   :  { %v6460_v2 = vpack.i.bf16 %v446_v1, %v444_v62 }
 0x372   :  { %6466 = vrot.lane.b32.xlu0 %v6465_v3, %s6884_s16  ;;  %6461 = vrot.lane.b32.xlu1 %v6460_v2, %s6884_s16 }
 0x378   :  { %v450_v4 = vpop.permute.xlu0 %449 }
 0x37c   :  { %v7174_v5 = vpop.permute.xlu0 %453  ;;  %v7176_v6 = vpop.permute.xlu1 %451 }
 0x37d   :  { %v6470_v7 = vpack.i.bf16 %v7176_v6, %v450_v4 }
 0x37f   :  { %6471 = vrot.lane.b32.xlu1 %v6470_v7, %s6884_s16 }
 0x380   :  { %v7180_v8 = vpop.permute.xlu0 %457  ;;  %v7182_v9 = vpop.permute.xlu1 %455 }
 0x381   :  { %v6475_v10 = vpack.i.bf16 %v7182_v9, %v7174_v5 }
 0x383   :  { %6476 = vrot.lane.b32.xlu0 %v6475_v10, %s6884_s16 }
 0x384   :  { %v6447_v11 = vpop.permute.xlu0 %6446  ;;  %v7187_v12 = vpop.permute.xlu1 %459 }
 0x385   :  { %v6449_v13 = vunpack.i.h.bf16 %v6447_v11  ;;  %v6448_v14 = vunpack.i.l.bf16 %v6447_v11  ;;  %v6480_v15 = vpack.i.bf16 %v7187_v12, %v7180_v8 }
 0x387   :  { %v6078_v18 = vpack.c.bf16 %v6449_v13, %v6448_v14  ;;  %6481 = vrot.lane.b32.xlu1 %v6480_v15, %s6884_s16 }
 0x389   :  { %6080 = vmatprep.subr.msk.bf16.mxu0 %vm7193_vm8, %v6078_v18 }
 0x38a   :  { %6083 = vmatpush3.bf16.xpose.msk.msra.mxu0 %vm7193_vm8, %v6078_v18 }
 0x38b   :  { %6486 = vrot.lane.b32.xlu1 %v7136_v45, %s6881_s30 }
 0x391   :  { %5630 = vmatmul.mubr.msk.f32.vlgmr.msra.gmra.mrb[4].mxu0 %vm196_vm2, %v7131_v41 }
 0x392   :  { %5636 = vmatprep.mubr.msk.f32.mxu0 %vm196_vm2, %v436_v58 }
 0x3dc   :  { %v6452_v19 = vpop.permute.xlu1 %6451 }
 0x3dd   :  { %v6454_v20 = vunpack.i.h.bf16 %v6452_v19  ;;  %v6453_v21 = vunpack.i.l.bf16 %v6452_v19 }
 0x3df   :  { %v6084_v22 = vpack.c.bf16 %v6454_v20, %v6453_v21 }
 0x3e0   :  { %v6457_v23 = vpop.permute.xlu0 %6456 }
 0x3e1   :  { %v6459_v24 = vunpack.i.h.bf16 %v6457_v23  ;;  %v6458_v25 = vunpack.i.l.bf16 %v6457_v23  ;;  %6086 = vmatprep.subr.msk.bf16.mxu0 %vm7193_vm8, %v6084_v22 }
 0x3e2   :  { %6089 = vmatpush3.bf16.xpose.msk.msra.mxu0 %vm7193_vm8, %v6084_v22 }
 0x3e3   :  { %v6090_v26 = vpack.c.bf16 %v6459_v24, %v6458_v25 }
 0x3e4   :  { %v6467_v33 = vpop.permute.xlu0 %6466  ;;  %v6462_v34 = vpop.permute.xlu1 %6461 }
 0x3e5   :  { %v6469_v36 = vunpack.i.h.bf16 %v6467_v33  ;;  %v6468_v37 = vunpack.i.l.bf16 %v6467_v33  ;;  %v6464_v38 = vunpack.i.h.bf16 %v6462_v34  ;;  %v6463_v39 = vunpack.i.l.bf16 %v6462_v34  ;;  %6092 = vmatprep.subr.msk.bf16.mxu0 %vm7193_vm8, %v6090_v26 }
 0x3e7   :  { %v6096_v40 = vpack.c.bf16 %v6464_v38, %v6463_v39  ;;  %v6102_v41 = vpack.c.bf16 %v6469_v36, %v6468_v37 }
 0x3e9   :  { %5637 = vmatmul.mubr.msk.f32.vlgmr.msra.gmra.mrb[6].mxu0 %vm196_vm2, %v438_v60  ;;  %6098 = vmatprep.subr.msk.bf16.mxu1 %vm7193_vm8, %v6096_v40 }
 0x3ea   :  { %6095 = vmatpush3.bf16.xpose.msk.msra.mxu0 %vm7193_vm8, %v6090_v26  ;;  %5643 = vmatprep.mubr.msk.f32.mxu0 %vm196_vm2, %v440_v59 }
 0x3eb   :  { %6101 = vmatpush3.bf16.xpose.msk.msra.mxu1 %vm7193_vm8, %v6096_v40  ;;  %6104 = vmatprep.subr.msk.bf16.mxu0 %vm7193_vm8, %v6102_v41 }
 0x3f1   :  { %v6472_v42 = vpop.permute.xlu1 %6471  ;;  %5644 = vmatmul.mubr.msk.f32.vlgmr.msra.gmra.mrb[8].mxu0 %vm196_vm2, %v442_v63 }
 0x3f2   :  { %v6474_v43 = vunpack.i.h.bf16 %v6472_v42  ;;  %v6473_v44 = vunpack.i.l.bf16 %v6472_v42  ;;  %5651 = vmatmul.mubr.msk.f32.vlgmr.msra.gmra.mrb[8].mxu1 %vm196_vm2, %v446_v1  ;;  %6107 = vmatpush3.bf16.xpose.msk.msra.mxu0 %vm7193_vm8, %v6102_v41 }
 0x3f3   :  { %5657 = vmatprep.mubr.msk.f32.mxu0 %vm196_vm2, %v7145_v48  ;;  %5664 = vmatprep.mubr.msk.f32.mxu1 %vm196_vm2, %v450_v4 }
 0x3f4   :  { %v6108_v47 = vpack.c.bf16 %v6474_v43, %v6473_v44 }
 0x3f5   :  { %v6477_v49 = vpop.permute.xlu0 %6476 }
 0x3f6   :  { %v6479_v50 = vunpack.i.h.bf16 %v6477_v49  ;;  %v6478_v51 = vunpack.i.l.bf16 %v6477_v49  ;;  %6110 = vmatprep.subr.msk.bf16.mxu1 %vm7193_vm8, %v6108_v47 }
 0x3f7   :  { %6113 = vmatpush3.bf16.xpose.msk.msra.mxu1 %vm7193_vm8, %v6108_v47 }
 0x3f8   :  { %v6114_v53 = vpack.c.bf16 %v6479_v50, %v6478_v51 }
 0x3f9   :  { %v6482_v54 = vpop.permute.xlu1 %6481  ;;  %5658 = vmatmul.mubr.msk.f32.vlgmr.msra.gmra.mrb[10].mxu0 %vm196_vm2, %v7149_v52 }
 0x3fa   :  { %v6484_v57 = vunpack.i.h.bf16 %v6482_v54  ;;  %v6483_v58 = vunpack.i.l.bf16 %v6482_v54  ;;  %6116 = vmatprep.subr.msk.bf16.mxu0 %vm7193_vm8, %v6114_v53  ;;  %5671 = vmatprep.mubr.msk.f32.mxu0 %vm196_vm2, %v7174_v5 }
 0x3fb   :  { %6119 = vmatpush3.bf16.xpose.msk.msra.mxu0 %vm7193_vm8, %v6114_v53 }
 0x3fc   :  { %v6120_v48 = vpack.c.bf16 %v6484_v57, %v6483_v58  ;;  %6127 = vmatprep.subr.bf16.mxu0 %v7138_v46 }
 0x3fd   :  { %v6487_v59 = vpop.permute.xlu1 %6486 }
 0x3fe   :  { %v6489_v60 = vunpack.i.h.bf16 %v6487_v59  ;;  %v6488_v61 = vunpack.i.l.bf16 %v6487_v59  ;;  %5665 = vmatmul.mubr.msk.f32.vlgmr.msra.gmra.mrb[10].mxu1 %vm196_vm2, %v7176_v6  ;;  %6122 = vmatprep.subr.msk.bf16.mxu1 %vm7193_vm8, %v6120_v48 }
 0x3ff   :  { %6125 = vmatpush3.bf16.xpose.msk.msra.mxu1 %vm7193_vm8, %v6120_v48  ;;  %5678 = vmatprep.mubr.msk.f32.mxu1 %vm196_vm2, %v7180_v8 }
 0x400   :  { %v6130_v52 = vpack.c.bf16 %v6489_v60, %v6488_v61 }
 0x402   :  { %5672 = vmatmul.mubr.msk.f32.vlgmr.msra.gmra.mrb[12].mxu0 %vm196_vm2, %v7182_v9  ;;  %6131 = vmatprep.subr.bf16.mxu1 %v6130_v52 }
 0x403   :  { %6129 = vmatpush3.bf16.msra.mxu0 %v7138_v46 }
 0x406   :  { %5679 = vmatmul.mubr.msk.f32.vlgmr.msra.gmra.mrb[12].mxu1 %vm196_vm2, %v7187_v12 }
 0x407   :  { %6133 = vmatpush3.bf16.msra.mxu1 %v6130_v52 }
 0x464   :  { %v5631_v62 = vpop.f32.mrb[4].mxu0 }
 0x465   :  { %v579_v63 = vpop.f32.mrb[5].mxu0  ;;  %v1200_v0 = vsel %vm196_vm2, %v5631_v62, -inf }
 0x466   :  { %1201 = vmax.xlane.f32.xlu1 %v1200_v0  ;;  %v1197_v1 = vsel %vm196_vm2, %v579_v63, -inf }
 0x467   :  { %1198 = vmax.xlane.f32.xlu0 %v1197_v1 }
 0x4bc   :  { %v5638_v2 = vpop.f32.mrb[6].mxu0 }
 0x4bd   :  { %v7258_v3 = vpop.f32.mrb[7].mxu0  ;;  %v1206_v4 = vsel %vm196_vm2, %v5638_v2, -inf }
 0x4be   :  { %1207 = vmax.xlane.f32.xlu0 %v1206_v4  ;;  %v1203_v10 = vsel %vm196_vm2, %v7258_v3, -inf }
 0x4c4   :  { %v7261_v5 = vpop.f32.mrb[8].mxu0 }
 0x4c5   :  { %v5652_v46 = vpop.f32.mrb[8].mxu1  ;;  %v7263_v6 = vpop.f32.mrb[9].mxu0  ;;  %v1212_v14 = vsel %vm196_vm2, %v7261_v5, -inf }
 0x4c6   :  { %v7265_v7 = vpop.f32.mrb[9].mxu1  ;;  %v1218_v8 = vsel %vm196_vm2, %v5652_v46, -inf  ;;  %v1209_v11 = vsel %vm196_vm2, %v7263_v6, -inf }
 0x4c7   :  { %1219 = vmax.xlane.f32.xlu0 %v1218_v8  ;;  %v1215_v9 = vsel %vm196_vm2, %v7265_v7, -inf }
 0x4c8   :  { %1216 = vmax.xlane.f32.xlu1 %v1215_v9 }
 0x4cb   :  { %1204 = vmax.xlane.f32.xlu0 %v1203_v10 }
 0x4cc   :  { %1210 = vmax.xlane.f32.xlu1 %v1209_v11  ;;  %v7274_v12 = vpop.f32.mrb[10].mxu0 }
 0x4cd   :  { %v7276_v13 = vpop.f32.mrb[11].mxu0  ;;  %v1224_v23 = vsel %vm196_vm2, %v7274_v12, -inf }
 0x4ce   :  { %v1221_v24 = vsel %vm196_vm2, %v7276_v13, -inf }
 0x4cf   :  { %1213 = vmax.xlane.f32.xlu0 %v1212_v14 }
 0x4d1   :  { %v7280_v15 = vpop.f32.mrb[10].mxu1 }
 0x4d2   :  { %v7282_v18 = vpop.f32.mrb[11].mxu1  ;;  %v1230_v19 = vsel %vm196_vm2, %v7280_v15, -inf }
 0x4d3   :  { %1231 = vmax.xlane.f32.xlu0 %v1230_v19  ;;  %v1227_v20 = vsel %vm196_vm2, %v7282_v18, -inf }
 0x4d4   :  { %1228 = vmax.xlane.f32.xlu1 %v1227_v20 }
 0x4d5   :  { %v7288_v21 = vpop.f32.mrb[12].mxu0 }
 0x4d6   :  { %v7290_v22 = vpop.f32.mrb[13].mxu0  ;;  %v1236_v36 = vsel %vm196_vm2, %v7288_v21, -inf }
 0x4d7   :  { %1225 = vmax.xlane.f32.xlu0 %v1224_v23  ;;  %v1233_v41 = vsel %vm196_vm2, %v7290_v22, -inf }
 0x4d8   :  { %1222 = vmax.xlane.f32.xlu1 %v1221_v24 }
 0x4d9   :  { %v7296_v25 = vpop.f32.mrb[12].mxu1 }
 0x4da   :  { %v7298_v26 = vpop.f32.mrb[13].mxu1  ;;  %v1242_v33 = vsel %vm196_vm2, %v7296_v25, -inf }
 0x4db   :  { %1243 = vmax.xlane.f32.xlu0 %v1242_v33  ;;  %v1239_v34 = vsel %vm196_vm2, %v7298_v26, -inf }
 0x4dc   :  { %1240 = vmax.xlane.f32.xlu1 %v1239_v34 }
 0x4df   :  { %1237 = vmax.xlane.f32.xlu0 %v1236_v36 }
 0x4ed   :  { %6496 = vrot.lane.b32.xlu1 %v7136_v45, %s6883_s0 }
 0x4f3   :  { %v1202_v37 = vpop.xlane.xlu1 %1201 }
 0x4f4   :  { %v1246_v38 = vsub.f32 %v5631_v62, %v1202_v37  ;;  %v1199_v43 = vpop.xlane.xlu0 %1198 }
 0x4f5   :  { %6491 = vrot.lane.b32.xlu0 %v7136_v45, %s6882_s15  ;;  %v1245_v44 = vsub.f32 %v579_v63, %v1199_v43 }
 0x4f6   :  { %v1263_v39 = vmul.f32 1.442695, %v1246_v38 }
 0x4f7   :  { %v1261_v45 = vmul.f32 1.442695, %v1245_v44 }
 0x4f8   :  { %6595 = vpow2.f32 %v1263_v39 }
 0x4f9   :  { %6597 = vpow2.f32 %v1261_v45 }
 0x502   :  { %v7310_v40 = vpop.eup %6595 }
 0x503   :  { %v1296_v42 = vsel %vm196_vm2, %v7310_v40, 0.0  ;;  %v7318_v47 = vpop.eup %6597 }
 0x504   :  { %v1293_v49 = vsel %vm196_vm2, %v7318_v47, 0.0 }
 0x511   :  { %1234 = vmax.xlane.f32.xlu1 %v1233_v41 }
 0x514   :  { %1297 = vadd.xlane.f32.xlu0 %v1296_v42 }
 0x522   :  { %6501 = vrot.lane.b32.xlu1 %v7155_v55, %s6881_s30 }
 0x546   :  { %1294 = vadd.xlane.f32.xlu1 %v1293_v49 }
 0x54b   :  { %v1208_v50 = vpop.xlane.xlu0 %1207 }
 0x54c   :  { %v1248_v51 = vsub.f32 %v5638_v2, %v1208_v50 }
 0x54e   :  { %v1267_v53 = vmul.f32 1.442695, %v1248_v51 }
 0x550   :  { %6599 = vpow2.f32 %v1267_v53 }
 0x554   :  { %v1220_v54 = vpop.xlane.xlu0 %1219 }
 0x555   :  { %v1252_v57 = vsub.f32 %v5652_v46, %v1220_v54  ;;  %v1217_v58 = vpop.xlane.xlu1 %1216 }
 0x556   :  { %v1251_v59 = vsub.f32 %v7265_v7, %v1217_v58 }
 0x557   :  { %v1275_v48 = vmul.f32 1.442695, %v1252_v57 }
 0x558   :  { %v1205_v60 = vpop.xlane.xlu0 %1204  ;;  %v1273_v63 = vmul.f32 1.442695, %v1251_v59 }
 0x559   :  { %6601 = vpow2.f32 %v1275_v48  ;;  %v1247_v61 = vsub.f32 %v7258_v3, %v1205_v60  ;;  %v1211_v52 = vpop.xlane.xlu1 %1210 }
 0x55a   :  { %v7324_v62 = vpop.eup %6599  ;;  %v1249_v1 = vsub.f32 %v7263_v6, %v1211_v52 }
 0x55b   :  { %v1265_v0 = vmul.f32 1.442695, %v1247_v61  ;;  %v1302_v2 = vsel %vm196_vm2, %v7324_v62, 0.0 }
 0x55c   :  { %v1214_v4 = vpop.xlane.xlu0 %1213  ;;  %1303 = vadd.xlane.f32.xlu0 %v1302_v2  ;;  %v1269_v7 = vmul.f32 1.442695, %v1249_v1 }
 0x55d   :  { %6603 = vpow2.f32 %v1265_v0  ;;  %v1250_v46 = vsub.f32 %v7261_v5, %v1214_v4 }
 0x55e   :  { %6605 = vpow2.f32 %v1273_v63 }
 0x55f   :  { %v1271_v8 = vmul.f32 1.442695, %v1250_v46 }
 0x560   :  { %v1232_v9 = vpop.xlane.xlu0 %1231 }
 0x561   :  { %6607 = vpow2.f32 %v1271_v8  ;;  %v1256_v3 = vsub.f32 %v7280_v15, %v1232_v9  ;;  %v1229_v10 = vpop.xlane.xlu1 %1228 }
 0x562   :  { %v1255_v11 = vsub.f32 %v7282_v18, %v1229_v10  ;;  %6609 = vpow2.f32 %v1269_v7 }
 0x563   :  { %v7332_v14 = vpop.eup %6601  ;;  %v1283_v6 = vmul.f32 1.442695, %v1256_v3 }
 0x564   :  { %v1281_v19 = vmul.f32 1.442695, %v1255_v11  ;;  %v1226_v20 = vpop.xlane.xlu0 %1225  ;;  %v1314_v23 = vsel %vm196_vm2, %v7332_v14, 0.0 }
 0x565   :  { %6611 = vpow2.f32 %v1283_v6  ;;  %v1254_v5 = vsub.f32 %v7274_v12, %v1226_v20  ;;  %1315 = vadd.xlane.f32.xlu0 %v1314_v23  ;;  %v1223_v24 = vpop.xlane.xlu1 %1222 }
 0x566   :  { %v1253_v33 = vsub.f32 %v7276_v13, %v1223_v24  ;;  %6613 = vpow2.f32 %v1281_v19 }
 0x567   :  { %v7338_v15 = vpop.eup %6603  ;;  %v1279_v18 = vmul.f32 1.442695, %v1254_v5 }
 0x568   :  { %v1277_v34 = vmul.f32 1.442695, %v1253_v33  ;;  %v1244_v36 = vpop.xlane.xlu0 %1243  ;;  %v1299_v37 = vsel %vm196_vm2, %v7338_v15, 0.0  ;;  %v7342_v38 = vpop.eup %6605 }
 0x569   :  { %6615 = vpow2.f32 %v1279_v18  ;;  %v1260_v39 = vsub.f32 %v7296_v25, %v1244_v36  ;;  %1300 = vadd.xlane.f32.xlu1 %v1299_v37  ;;  %v1241_v12 = vpop.xlane.xlu1 %1240  ;;  %v1311_v49 = vsel %vm196_vm2, %v7342_v38, 0.0 }
 0x56a   :  { %v1259_v41 = vsub.f32 %v7298_v26, %v1241_v12  ;;  %6617 = vpow2.f32 %v1277_v34 }
 0x56b   :  { %v7346_v42 = vpop.eup %6607  ;;  %v1291_v13 = vmul.f32 1.442695, %v1260_v39 }
 0x56c   :  { %v1289_v43 = vmul.f32 1.442695, %v1259_v41  ;;  %v1308_v44 = vsel %vm196_vm2, %v7346_v42, 0.0  ;;  %v1238_v45 = vpop.xlane.xlu0 %1237  ;;  %v7352_v50 = vpop.eup %6609 }
 0x56d   :  { %6619 = vpow2.f32 %v1291_v13  ;;  %1309 = vadd.xlane.f32.xlu0 %v1308_v44  ;;  %v1258_v25 = vsub.f32 %v7288_v21, %v1238_v45  ;;  %1312 = vadd.xlane.f32.xlu1 %v1311_v49  ;;  %v6497_v26 = vpop.permute.xlu1 %6496  ;;  %v1305_v48 = vsel %vm196_vm2, %v7352_v50, 0.0 }
 0x56e   :  { %v6499_v51 = vunpack.i.h.bf16 %v6497_v26  ;;  %v6498_v53 = vunpack.i.l.bf16 %v6497_v26  ;;  %6621 = vpow2.f32 %v1289_v43 }
 0x56f   :  { %v7355_v54 = vpop.eup %6611  ;;  %v1287_v57 = vmul.f32 1.442695, %v1258_v25 }
 0x570   :  { %v6492_v58 = vpop.permute.xlu0 %6491  ;;  %v1326_v59 = vsel %vm196_vm2, %v7355_v54, 0.0  ;;  %v7361_v60 = vpack.c.bf16 %v6499_v51, %v6498_v53  ;;  %v7363_v61 = vpop.eup %6613 }
 0x571   :  { %6623 = vpow2.f32 %v1287_v57  ;;  %v6494_v21 = vunpack.i.h.bf16 %v6492_v58  ;;  %v6493_v52 = vunpack.i.l.bf16 %v6492_v58  ;;  %1306 = vadd.xlane.f32.xlu1 %v1305_v48  ;;  %1327 = vadd.xlane.f32.xlu0 %v1326_v59  ;;  %v1323_v1 = vsel %vm196_vm2, %v7363_v61, 0.0 }
 0x572   :  { %6139 = vmatprep.subr.bf16.mxu1 %v7361_v60 }
 0x573   :  { %v7366_v63 = vpop.eup %6615  ;;  %v6134_v0 = vpack.c.bf16 %v6494_v21, %v6493_v52 }
 0x574   :  { %v1320_v2 = vsel %vm196_vm2, %v7366_v63, 0.0  ;;  %v7372_v4 = vpop.eup %6617 }
 0x575   :  { %1324 = vadd.xlane.f32.xlu1 %v1323_v1  ;;  %1321 = vadd.xlane.f32.xlu0 %v1320_v2  ;;  %v1317_v7 = vsel %vm196_vm2, %v7372_v4, 0.0 }
 0x576   :  { %6135 = vmatprep.subr.bf16.mxu0 %v6134_v0 }
 0x577   :  { %v7374_v46 = vpop.eup %6619 }
 0x578   :  { %v1338_v8 = vsel %vm196_vm2, %v7374_v46, 0.0  ;;  %v7380_v9 = vpop.eup %6621 }
 0x579   :  { %1318 = vadd.xlane.f32.xlu1 %v1317_v7  ;;  %1339 = vadd.xlane.f32.xlu0 %v1338_v8  ;;  %v1335_v10 = vsel %vm196_vm2, %v7380_v9, 0.0 }
 0x57b   :  { %v7382_v3 = vpop.eup %6623 }
 0x57c   :  { %v1332_v11 = vsel %vm196_vm2, %v7382_v3, 0.0 }
 0x57d   :  { %1336 = vadd.xlane.f32.xlu1 %v1335_v10  ;;  %1333 = vadd.xlane.f32.xlu0 %v1332_v11 }
 0x593   :  { %6506 = vrot.lane.b32.xlu0 %v7155_v55, %s6882_s15 }
 0x59e   :  { %v1235_v6 = vpop.xlane.xlu1 %1234 }
 0x59f   :  { %v1257_v19 = vsub.f32 %v7290_v22, %v1235_v6 }
 0x5a1   :  { %v1285_v20 = vmul.f32 1.442695, %v1257_v19  ;;  %v1298_v33 = vpop.xlane.xlu0 %1297 }
 0x5a2   :  { %v6502_v24 = vpop.permute.xlu1 %6501 }
 0x5a3   :  { %6625 = vpow2.f32 %v1285_v20  ;;  %v6504_v45 = vunpack.i.h.bf16 %v6502_v24  ;;  %v6503_v49 = vunpack.i.l.bf16 %v6502_v24 }
 0x5a4   :  { %6627 = vrcp.f32 %v1298_v33 }
 0x5a5   :  { %v6146_v58 = vpack.c.bf16 %v6504_v45, %v6503_v49  ;;  %v2088_v45 = vld [vmem:[%s8215_s5 + $0x30] sm:$0xff]  ;;  %v2089_v49 = vld [vmem:[%s8215_s5 + $0x38] sm:$0xff] }
 0x5ad   :  { %v7391_v23 = vpop.eup %6625 }
 0x5ae   :  { %v1329_v5 = vsel %vm196_vm2, %v7391_v23, 0.0  ;;  %v6628_v34 = vpop.eup %6627 }
 0x5af   :  { %1330 = vadd.xlane.f32.xlu1 %v1329_v5  ;;  %v1358_v37 = vmul.f32 %v6628_v34, %v7310_v40 }
 0x5c0   :  { %6511 = vrot.lane.b32.xlu1 %v7155_v55, %s6883_s0 }
 0x5d3   :  { %v1295_v18 = vpop.xlane.xlu1 %1294 }
 0x5d4   :  { %6629 = vrcp.f32 %v1295_v18 }
 0x5de   :  { %v6630_v36 = vpop.eup %6629 }
 0x5df   :  { %v1357_v22 = vmul.f32 %v6630_v36, %v7318_v47 }
 0x5e1   :  { %5685 = vmatprep.mubr.msk.f32.mxu0 %vm196_vm2, %v1357_v22 }
 0x5e2   :  { %5686 = vmatmul.mubr.msk.f32.vlgmr.msra.gmra.mrb[14].mxu0 %vm196_vm2, %v1358_v37 }
 0x5e3   :  { %6137 = vmatpush3.bf16.msra.mxu0 %v6134_v0 }
 0x5e4   :  { %6143 = vmatprep.subr.bf16.mxu0 %v7157_v56 }
 0x5e9   :  { %v1304_v39 = vpop.xlane.xlu0 %1303 }
 0x5ea   :  { %6631 = vrcp.f32 %v1304_v39 }
 0x5f2   :  { %v1316_v55 = vpop.xlane.xlu0 %1315 }
 0x5f4   :  { %v6632_v40 = vpop.eup %6631 }
 0x5f5   :  { %v1360_v53 = vmul.f32 %v6632_v40, %v7324_v62  ;;  %v2087_v40 = vld [vmem:[%s8215_s5 + $0x28] sm:$0xff] }
 0x5f6   :  { %v1301_v12 = vpop.xlane.xlu1 %1300 }
 0x5f7   :  { %6633 = vrcp.f32 %v1301_v12  ;;  %v2083_v12 = vld [vmem:[%s8215_s5 + $0x8] sm:$0xff] }
 0x5f8   :  { %6635 = vrcp.f32 %v1316_v55  ;;  %v2082_v55 = vld [vmem:[%s8215_s5] sm:$0xff] }
 0x5fa   :  { %v1310_v41 = vpop.xlane.xlu0 %1309  ;;  %v1313_v13 = vpop.xlane.xlu1 %1312 }
 0x5fb   :  { %6637 = vrcp.f32 %v1313_v13  ;;  %v2085_v13 = vld [vmem:[%s8215_s5 + $0x18] sm:$0xff] }
 0x5fc   :  { %6639 = vrcp.f32 %v1310_v41  ;;  %v6158_v41 = vpack.c.bf16 %v2083_v12, %v2082_v55 }
 0x5fe   :  { %v1307_v47 = vpop.xlane.xlu1 %1306  ;;  %v1328_v43 = vpop.xlane.xlu0 %1327 }
 0x5ff   :  { %6641 = vrcp.f32 %v1307_v47  ;;  %v2086_v47 = vld [vmem:[%s8215_s5 + $0x20] sm:$0xff] }
 0x600   :  { %6643 = vrcp.f32 %v1328_v43 }
 0x601   :  { %v6634_v44 = vpop.eup %6633 }
 0x602   :  { %v1325_v25 = vpop.xlane.xlu1 %1324  ;;  %v1322_v26 = vpop.xlane.xlu0 %1321  ;;  %v1359_v51 = vmul.f32 %v6634_v44, %v7338_v15  ;;  %v6166_v44 = vpack.c.bf16 %v2087_v40, %v2086_v47 }
 0x603   :  { %6645 = vrcp.f32 %v1325_v25  ;;  %v6636_v57 = vpop.eup %6635  ;;  %v6170_v25 = vpack.c.bf16 %v2089_v49, %v2088_v45 }
 0x604   :  { %5692 = vmatprep.mubr.msk.f32.mxu1 %vm196_vm2, %v1359_v51  ;;  %6647 = vrcp.f32 %v1322_v26  ;;  %v1364_v0 = vmul.f32 %v6636_v57, %v7332_v14 }
 0x605   :  { %5693 = vmatmul.mubr.msk.f32.vlgmr.msra.gmra.mrb[14].mxu1 %vm196_vm2, %v1360_v53  ;;  %v6638_v48 = vpop.eup %6637 }
 0x606   :  { %6141 = vmatpush3.bf16.msra.mxu1 %v7361_v60  ;;  %v1319_v59 = vpop.xlane.xlu1 %1318  ;;  %v1340_v21 = vpop.xlane.xlu0 %1339  ;;  %v1363_v52 = vmul.f32 %v6638_v48, %v7342_v38 }
 0x607   :  { %6649 = vrcp.f32 %v1319_v59  ;;  %6147 = vmatprep.subr.bf16.mxu1 %v6146_v58  ;;  %v6640_v15 = vpop.eup %6639 }
 0x608   :  { %5706 = vmatprep.mubr.msk.f32.mxu1 %vm196_vm2, %v1363_v52  ;;  %v1362_v60 = vmul.f32 %v6640_v15, %v7346_v42 }
 0x609   :  { %v6642_v62 = vpop.eup %6641  ;;  %5707 = vmatmul.mubr.msk.f32.vlgmr.msra.gmra.mrb[16].mxu1 %vm196_vm2, %v1364_v0 }
 0x60a   :  { %v1337_v1 = vpop.xlane.xlu1 %1336  ;;  %v1334_v2 = vpop.xlane.xlu0 %1333  ;;  %v1361_v7 = vmul.f32 %v6642_v62, %v7352_v50  ;;  %6149 = vmatpush3.bf16.msra.mxu1 %v6146_v58 }
 0x60b   :  { %6651 = vrcp.f32 %v1337_v1  ;;  %v6644_v8 = vpop.eup %6643 }
 0x60c   :  { %5699 = vmatprep.mubr.msk.f32.mxu0 %vm196_vm2, %v1361_v7  ;;  %v1368_v19 = vmul.f32 %v6644_v8, %v7355_v54  ;;  %6653 = vrcp.f32 %v1340_v21 }
 0x60d   :  { %v6646_v38 = vpop.eup %6645  ;;  %5700 = vmatmul.mubr.msk.f32.vlgmr.msra.gmra.mrb[16].mxu0 %vm196_vm2, %v1362_v60  ;;  %6655 = vrcp.f32 %v1334_v2 }
 0x60e   :  { %6145 = vmatpush3.bf16.msra.mxu0 %v7157_v56  ;;  %v6507_v14 = vpop.permute.xlu0 %6506  ;;  %v1367_v10 = vmul.f32 %v6646_v38, %v7363_v61  ;;  %v6648_v50 = vpop.eup %6647 }
 0x60f   :  { %v6509_v11 = vunpack.i.h.bf16 %v6507_v14  ;;  %v6508_v6 = vunpack.i.l.bf16 %v6507_v14  ;;  %v1366_v24 = vmul.f32 %v6648_v50, %v7366_v63 }
 0x610   :  { %5720 = vmatprep.mubr.msk.f32.mxu1 %vm196_vm2, %v1367_v10 }
 0x611   :  { %v6650_v20 = vpop.eup %6649  ;;  %5721 = vmatmul.mubr.msk.f32.vlgmr.msra.gmra.mrb[18].mxu1 %vm196_vm2, %v1368_v19  ;;  %v6150_v42 = vpack.c.bf16 %v6509_v11, %v6508_v6 }
 0x612   :  { %v1365_v5 = vmul.f32 %v6650_v20, %v7372_v4 }
 0x613   :  { %6151 = vmatprep.subr.bf16.mxu0 %v6150_v42 }
 0x614   :  { %5713 = vmatprep.mubr.msk.f32.mxu0 %vm196_vm2, %v1365_v5 }
 0x615   :  { %v6652_v56 = vpop.eup %6651  ;;  %5714 = vmatmul.mubr.msk.f32.vlgmr.msra.gmra.mrb[18].mxu0 %vm196_vm2, %v1366_v24 }
 0x616   :  { %6153 = vmatpush3.bf16.msra.mxu0 %v6150_v42  ;;  %v1371_v54 = vmul.f32 %v6652_v56, %v7380_v9  ;;  %v6654_v36 = vpop.eup %6653 }
 0x617   :  { %v6656_v63 = vpop.eup %6655  ;;  %v1372_v37 = vmul.f32 %v6654_v36, %v7374_v46  ;;  %6159 = vmatprep.subr.bf16.mxu0 %v6158_v41 }
 0x618   :  { %5734 = vmatprep.mubr.msk.f32.mxu1 %vm196_vm2, %v1371_v54  ;;  %v1370_v9 = vmul.f32 %v6656_v63, %v7382_v3  ;;  %v2084_v3 = vld [vmem:[%s8215_s5 + $0x10] sm:$0xff] }
 0x619   :  { %v6162_v43 = vpack.c.bf16 %v2085_v13, %v2084_v3 }
 0x63c   :  { %v1331_v61 = vpop.xlane.xlu1 %1330 }
 0x63d   :  { %6657 = vrcp.f32 %v1331_v61 }
 0x640   :  { %v6512_v33 = vpop.permute.xlu1 %6511 }
 0x641   :  { %v6514_v18 = vunpack.i.h.bf16 %v6512_v33  ;;  %v6513_v4 = vunpack.i.l.bf16 %v6512_v33 }
 0x643   :  { %v6154_v34 = vpack.c.bf16 %v6514_v18, %v6513_v4 }
 0x645   :  { %6155 = vmatprep.subr.bf16.mxu1 %v6154_v34 }
 0x646   :  { %6157 = vmatpush3.bf16.msra.mxu1 %v6154_v34 }
 0x647   :  { %v6658_v22 = vpop.eup %6657 }
 0x648   :  { %v1369_v39 = vmul.f32 %v6658_v22, %v7391_v23 }
 0x649   :  { %5735 = vmatmul.mubr.msk.f32.vlgmr.msra.gmra.mrb[20].mxu1 %vm196_vm2, %v1372_v37  ;;  %v5228_v37 = vld [vmem:[%s8216_s6] ss:$0 sm:$0xff] }
 0x64a   :  { %5727 = vmatprep.mubr.msk.f32.mxu0 %vm196_vm2, %v1369_v39 }
 0x64b   :  { %5728 = vmatmul.mubr.msk.f32.vlgmr.msra.gmra.mrb[20].mxu0 %vm196_vm2, %v1370_v9 }
 0x64c   :  { %6161 = vmatpush3.bf16.msra.mxu0 %v6158_v41 }
 0x64d   :  { %6163 = vmatprep.subr.bf16.mxu0 %v6162_v43 }
 0x650   :  { %6165 = vmatpush3.bf16.msra.mxu0 %v6162_v43 }
 0x651   :  { %6167 = vmatprep.subr.bf16.mxu0 %v6166_v44 }
 0x654   :  { %6169 = vmatpush3.bf16.msra.mxu0 %v6166_v44 }
 0x655   :  { %6171 = vmatprep.subr.bf16.mxu0 %v6170_v25 }
 0x658   :  { %6173 = vmatpush3.bf16.msra.mxu0 %v6170_v25 }
 0x6b5   :  { %v5687_v46 = vpop.f32.mrb[14].mxu0 }
 0x6b6   :  { %v1445_v23 = vpop.f32.mrb[15].mxu0 }
 0x6d8   :  { %v5694_v26 = vpop.f32.mrb[14].mxu1 }
 0x6d9   :  { %2025 = vrot.lane.b32.xlu1 %v5694_v26, %s6880_s1  ;;  %v1526_v51 = vpop.f32.mrb[15].mxu1 }
 0x6da   :  { %2023 = vrot.lane.b32.xlu0 %v1526_v51, %s6880_s1 }
 0x6dc   :  { %v5708_v53 = vpop.f32.mrb[16].mxu1 }
 0x6dd   :  { %v1688_v57 = vpop.f32.mrb[17].mxu1 }
 0x6e0   :  { %v5701_v58 = vpop.f32.mrb[16].mxu0 }
 0x6e1   :  { %2033 = vrot.lane.b32.xlu1 %v5701_v58, %s6873_s7  ;;  %v1607_v48 = vpop.f32.mrb[17].mxu0 }
 0x6e2   :  { %2031 = vrot.lane.b32.xlu0 %v1607_v48, %s6873_s7 }
 0x6e4   :  { %v5722_v59 = vpop.f32.mrb[18].mxu1 }
 0x6e5   :  { %2041 = vrot.lane.b32.xlu1 %v5708_v53, %s6885_s14  ;;  %v1850_v21 = vpop.f32.mrb[19].mxu1 }
 0x6e6   :  { %2039 = vrot.lane.b32.xlu0 %v1688_v57, %s6885_s14 }
 0x6e8   :  { %v5715_v52 = vpop.f32.mrb[18].mxu0 }
 0x6e9   :  { %v1769_v15 = vpop.f32.mrb[19].mxu0  ;;  %2056 = vrot.lane.b32.xlu1 %v5722_v59, %s6880_s1  ;;  %v2267_v59 = vld [vmem:[#allocation5] sm:$0xff] }
 0x6ea   :  { %2054 = vrot.lane.b32.xlu0 %v1850_v21, %s6880_s1  ;;  %v2268_v21 = vld [vmem:[#allocation5 + $0x8] sm:$0xff] }
 0x71c   :  { %v5736_v0 = vpop.f32.mrb[20].mxu1 }
 0x71d   :  { %v2012_v62 = vpop.f32.mrb[21].mxu1 }
 0x71e   :  { %v5729_v1 = vpop.f32.mrb[20].mxu0 }
 0x71f   :  { %v1931_v2 = vpop.f32.mrb[21].mxu0  ;;  %2064 = vrot.lane.b32.xlu1 %v5729_v1, %s6873_s7  ;;  %v2271_v1 = vld [vmem:[#allocation5 + $0x20] sm:$0xff] }
 0x720   :  { %2062 = vrot.lane.b32.xlu0 %v1931_v2, %s6873_s7  ;;  %v2272_v2 = vld [vmem:[#allocation5 + $0x28] sm:$0xff] }
 0x723   :  { %2072 = vrot.lane.b32.xlu1 %v5736_v0, %s6885_s14  ;;  %v2270_v0 = vld [vmem:[#allocation5 + $0x18] sm:$0xff] }
 0x724   :  { %2070 = vrot.lane.b32.xlu0 %v2012_v62, %s6885_s14 }
 0x74b   :  { %v2026_v7 = vpop.permute.xlu1 %2025 }
 0x74c   :  { %v2024_v60 = vpop.permute.xlu0 %2023  ;;  %v2046_v11 = vsel %vm196_vm2, %v5687_v46, %v2026_v7  ;;  %v6182_v7 = vpack.c.bf16 %v2272_v2, %v2271_v1 }
 0x74d   :  { %v2045_v14 = vsel %vm196_vm2, %v1445_v23, %v2024_v60  ;;  %v2273_v60 = vld [vmem:[#allocation5 + $0x30] sm:$0xff] }
 0x753   :  { %v2034_v8 = vpop.permute.xlu1 %2033 }
 0x754   :  { %v2032_v38 = vpop.permute.xlu0 %2031  ;;  %v2048_v50 = vsel %vm205_vm5, %v2046_v11, %v2034_v8  ;;  %v2274_v8 = vld [vmem:[#allocation5 + $0x38] sm:$0xff] }
 0x755   :  { %v2047_v6 = vsel %vm205_vm5, %v2045_v14, %v2032_v38  ;;  %v6186_v38 = vpack.c.bf16 %v2274_v8, %v2273_v60 }
 0x757   :  { %v2042_v10 = vpop.permute.xlu1 %2041 }
 0x758   :  { %v2040_v19 = vpop.permute.xlu0 %2039  ;;  %v2051_v42 = vsel %vm2049_vm9, %v2048_v50, %v2042_v10 }
 0x759   :  { %v2050_v20 = vsel %vm2049_vm9, %v2047_v6, %v2040_v19 }
 0x75a   :  { %5753 = vmatprep.mubr.msk.f32.mxu0 %vm331_vm7, %v2050_v20 }
 0x75b   :  { %5754 = vmatmul.mubr.msk.f32.vlgmr.msra.gmra.mrb[22].mxu0 %vm331_vm7, %v2051_v42  ;;  %v2057_v5 = vpop.permute.xlu1 %2056 }
 0x75c   :  { %v2055_v24 = vpop.permute.xlu0 %2054  ;;  %v2077_v18 = vsel %vm196_vm2, %v5715_v52, %v2057_v5  ;;  %v6174_v52 = vpack.c.bf16 %v2268_v21, %v2267_v59 }
 0x75d   :  { %v2076_v61 = vsel %vm196_vm2, %v1769_v15, %v2055_v24  ;;  %v2269_v15 = vld [vmem:[#allocation5 + $0x10] sm:$0xff] }
 0x75e   :  { %6175 = vmatprep.subr.bf16.mxu1 %v6174_v52  ;;  %v6178_v62 = vpack.c.bf16 %v2270_v0, %v2269_v15 }
 0x75f   :  { %6177 = vmatpush3.bf16.msra.mxu1 %v6174_v52 }
 0x760   :  { %6179 = vmatprep.subr.bf16.mxu1 %v6178_v62 }
 0x763   :  { %6181 = vmatpush3.bf16.msra.mxu1 %v6178_v62 }
 0x764   :  { %6183 = vmatprep.subr.bf16.mxu1 %v6182_v7 }
 0x767   :  { %6185 = vmatpush3.bf16.msra.mxu1 %v6182_v7 }
 0x768   :  { %6187 = vmatprep.subr.bf16.mxu1 %v6186_v38 }
 0x76b   :  { %6189 = vmatpush3.bf16.msra.mxu1 %v6186_v38 }
 0x791   :  { %v2065_v56 = vpop.permute.xlu1 %2064 }
 0x792   :  { %v2063_v54 = vpop.permute.xlu0 %2062  ;;  %v2079_v36 = vsel %vm205_vm5, %v2077_v18, %v2065_v56  ;;  %v2381_v56 = vld [vmem:[%s8218_s8] sm:$0xff]  ;;  %v2384_v18 = vld [vmem:[%s8218_s8 + $0x18] sm:$0xff] }
 0x793   :  { %v2078_v4 = vsel %vm205_vm5, %v2076_v61, %v2063_v54  ;;  %v2382_v54 = vld [vmem:[%s8218_s8 + $0x8] sm:$0xff]  ;;  %v2383_v61 = vld [vmem:[%s8218_s8 + $0x10] sm:$0xff] }
 0x795   :  { %v2073_v33 = vpop.permute.xlu1 %2072 }
 0x796   :  { %v2071_v34 = vpop.permute.xlu0 %2070  ;;  %v2081_v22 = vsel %vm2049_vm9, %v2079_v36, %v2073_v33  ;;  %v6190_v33 = vpack.c.bf16 %v2382_v54, %v2381_v56  ;;  %v2386_v36 = vld [vmem:[%s8218_s8 + $0x28] sm:$0xff] }
 0x797   :  { %v2080_v63 = vsel %vm2049_vm9, %v2078_v4, %v2071_v34  ;;  %v6194_v4 = vpack.c.bf16 %v2384_v18, %v2383_v61  ;;  %v2385_v34 = vld [vmem:[%s8218_s8 + $0x20] sm:$0xff] }
 0x798   :  { %5756 = vmatprep.mubr.msk.f32.mxu0 %vm331_vm7, %v2080_v63  ;;  %6191 = vmatprep.subr.bf16.mxu0 %v6190_v33  ;;  %v6198_v63 = vpack.c.bf16 %v2386_v36, %v2385_v34 }
 0x799   :  { %5757 = vmatmul.mubr.msk.f32.gmra.mrb[24].mxu0 %vm331_vm7, %v2081_v22  ;;  %v2387_v22 = vld [vmem:[%s8218_s8 + $0x30] sm:$0xff] }
 0x79a   :  { %6193 = vmatpush3.bf16.msra.mxu0 %v6190_v33 }
 0x79b   :  { %6195 = vmatprep.subr.bf16.mxu0 %v6194_v4 }
 0x79e   :  { %6197 = vmatpush3.bf16.msra.mxu0 %v6194_v4 }
 0x79f   :  { %6199 = vmatprep.subr.bf16.mxu0 %v6198_v63 }
 0x7a2   :  { %6201 = vmatpush3.bf16.msra.mxu0 %v6198_v63  ;;  %v5240_v63 = vld [vmem:[%s8216_s6 + $0x4] ss:$0 sm:$0xff] }
 0x82e   :  { %v5755_v39 = vpop.f32.mrb[22].mxu0 }
 0x82f   :  { %v2179_v9 = vadd.f32 %v5755_v39, %v5228_v37  ;;  %v2173_v55 = vpop.f32.mrb[23].mxu0 }
 0x830   :  { %v2174_v12 = vadd.f32 %v5228_v37, %v2173_v55  ;;  %v2390_v55 = vld [vmem:[%s8218_s8 + $0x48] sm:$0xff] }
 0x831   :  { %v2193_v41 = vadd.f32 %v7102_v27, %v2179_v9  ;;  %v2389_v9 = vld [vmem:[%s8218_s8 + $0x40] sm:$0xff] }
 0x832   :  { %v2192_v46 = vadd.f32 %v2174_v12, %v7104_v28  ;;  %v6206_v12 = vpack.c.bf16 %v2390_v55, %v2389_v9 }
 0x833   :  { %v2201_v23 = vsel %vm331_vm7, %v2193_v41, 0.0 }
 0x834   :  { %2202 = vadd.xlane.f32.xlu1 %v2201_v23  ;;  %v2198_v3 = vsel %vm331_vm7, %v2192_v46, 0.0 }
 0x835   :  { %2199 = vadd.xlane.f32.xlu0 %v2198_v3  ;;  %v2393_v3 = vld [vmem:[%s8218_s8 + $0x60] sm:$0xff] }
 0x86c   :  { %v5758_v13 = vpop.f32.mrb[24].mxu0 }
 0x86d   :  { %v2189_v47 = vadd.f32 %v5758_v13, %v5228_v37  ;;  %v2183_v43 = vpop.f32.mrb[25].mxu0  ;;  %v2394_v13 = vld [vmem:[%s8218_s8 + $0x68] sm:$0xff] }
 0x86e   :  { %v2184_v40 = vadd.f32 %v5228_v37, %v2183_v43  ;;  %v2388_v37 = vld [vmem:[%s8218_s8 + $0x38] sm:$0xff] }
 0x86f   :  { %v2195_v44 = vadd.f32 %v7112_v29, %v2189_v47  ;;  %v6202_v39 = vpack.c.bf16 %v2388_v37, %v2387_v22  ;;  %v6214_v47 = vpack.c.bf16 %v2394_v13, %v2393_v3 }
 0x870   :  { %v2194_v45 = vadd.f32 %v2184_v40, %v7114_v30 }
 0x871   :  { %v2207_v27 = vsel %vm331_vm7, %v2195_v44, 0.0  ;;  %6203 = vmatprep.subr.bf16.mxu0 %v6202_v39 }
 0x872   :  { %v2204_v49 = vsel %vm331_vm7, %v2194_v45, 0.0  ;;  %6205 = vmatpush3.bf16.msra.mxu0 %v6202_v39 }
 0x873   :  { %2205 = vadd.xlane.f32.xlu0 %v2204_v49  ;;  %6207 = vmatprep.subr.bf16.mxu0 %v6206_v12 }
 0x876   :  { %6209 = vmatpush3.bf16.msra.mxu0 %v6206_v12 }
 0x877   :  { %2208 = vadd.xlane.f32.xlu0 %v2207_v27 }
 0x8c1   :  { %v2203_v28 = vpop.xlane.xlu1 %2202 }
 0x8c2   :  { %v2212_v25 = vmul.f32 0.015625, %v2203_v28  ;;  %v2200_v26 = vpop.xlane.xlu0 %2199 }
 0x8c3   :  { %v2211_v51 = vmul.f32 0.015625, %v2200_v26 }
 0x8c4   :  { %v7495_v53 = vsub.f32 %v2193_v41, %v2212_v25  ;;  %v2391_v41 = vld [vmem:[%s8218_s8 + $0x50] sm:$0xff]  ;;  %v5233_v25 = vld [vmem:[%s8216_s6 + $0x1] ss:$0 sm:$0xff] }
 0x8c5   :  { %v7497_v57 = vsub.f32 %v2192_v46, %v2211_v51  ;;  %v2392_v46 = vld [vmem:[%s8218_s8 + $0x58] sm:$0xff] }
 0x8c6   :  { %v2220_v58 = vmul.f32 %v7495_v53, %v7495_v53  ;;  %v6210_v23 = vpack.c.bf16 %v2392_v46, %v2391_v41 }
 0x8c7   :  { %v2219_v29 = vmul.f32 %v7497_v57, %v7497_v57 }
 0x8c8   :  { %v2226_v30 = vsel %vm331_vm7, %v2220_v58, 0.0  ;;  %6211 = vmatprep.subr.bf16.mxu0 %v6210_v23 }
 0x8c9   :  { %2227 = vadd.xlane.f32.xlu0 %v2226_v30  ;;  %v2223_v48 = vsel %vm331_vm7, %v2219_v29, 0.0  ;;  %6213 = vmatpush3.bf16.msra.mxu0 %v6210_v23  ;;  %v5234_v29 = vld [vmem:[%s8216_s6 + $0x2] ss:$0 sm:$0xff] }
 0x8ca   :  { %2224 = vadd.xlane.f32.xlu1 %v2223_v48  ;;  %6215 = vmatprep.subr.bf16.mxu0 %v6214_v47 }
 0x8cd   :  { %6217 = vmatpush3.bf16.msra.mxu0 %v6214_v47 }
 0x900   :  { %v2206_v14 = vpop.xlane.xlu0 %2205 }
 0x901   :  { %v2213_v10 = vmul.f32 0.015625, %v2206_v14 }
 0x903   :  { %v7505_v11 = vsub.f32 %v2194_v45, %v2213_v10 }
 0x904   :  { %v2209_v6 = vpop.xlane.xlu0 %2208 }
 0x905   :  { %v2214_v19 = vmul.f32 0.015625, %v2209_v6  ;;  %v2221_v50 = vmul.f32 %v7505_v11, %v7505_v11  ;;  %v2395_v6 = vld [vmem:[%s8218_s8 + $0x70] sm:$0xff] }
 0x907   :  { %v7509_v20 = vsub.f32 %v2195_v44, %v2214_v19  ;;  %v2229_v42 = vsel %vm331_vm7, %v2221_v50, 0.0  ;;  %v5235_v50 = vld [vmem:[%s8216_s6 + $0x3] ss:$0 sm:$0xff] }
 0x908   :  { %2230 = vadd.xlane.f32.xlu1 %v2229_v42 }
 0x909   :  { %v2222_v5 = vmul.f32 %v7509_v20, %v7509_v20 }
 0x90b   :  { %v2232_v24 = vsel %vm331_vm7, %v2222_v5, 0.0 }
 0x90c   :  { %2233 = vadd.xlane.f32.xlu0 %v2232_v24 }
 0x956   :  { %v2228_v43 = vpop.xlane.xlu0 %2227 }
 0x957   :  { %v2236_v40 = vmul.f32 0.015625, %v2228_v43  ;;  %v2225_v44 = vpop.xlane.xlu1 %2224 }
 0x958   :  { %v2235_v45 = vmul.f32 0.015625, %v2225_v44 }
 0x959   :  { %v2240_v49 = vadd.f32 1e-05, %v2236_v40 }
 0x95a   :  { %v2239_v27 = vadd.f32 1e-05, %v2235_v45 }
 0x95b   :  { %6659 = vrsqrt.f32 %v2240_v49 }
 0x95c   :  { %6661 = vrsqrt.f32 %v2239_v27 }
 0x965   :  { %v6660_v28 = vpop.eup %6659 }
 0x966   :  { %v6662_v26 = vpop.eup %6661  ;;  %v2248_v51 = vmul.f32 %v6660_v28, %v7495_v53 }
 0x967   :  { %v2247_v58 = vmul.f32 %v6662_v26, %v7497_v57 }
 0x968   :  { %v2256_v30 = vmul.f32 %v5233_v25, %v2248_v51 }
 0x969   :  { %v2255_v48 = vmul.f32 %v5233_v25, %v2247_v58 }
 0x96a   :  { %v2264_v21 = vadd.f32 %v5234_v29, %v2256_v30 }
 0x96b   :  { %v2263_v59 = vadd.f32 %v5234_v29, %v2255_v48 }
 0x96d   :  { %5775 = vmatprep.mubr.msk.f32.mxu1 %vm331_vm7, %v2263_v59 }
 0x96e   :  { %5776 = vmatmul.mubr.msk.f32.vlgmr.msra.gmra.mrb[22].mxu1 %vm331_vm7, %v2264_v21 }
 0x995   :  { %v2231_v52 = vpop.xlane.xlu1 %2230 }
 0x996   :  { %v2237_v15 = vmul.f32 0.015625, %v2231_v52 }
 0x998   :  { %v2241_v0 = vadd.f32 1e-05, %v2237_v15  ;;  %v5243_v15 = vld [vmem:[%s8213_s3 + $0x80] sm:$0xff] }
 0x999   :  { %v2234_v62 = vpop.xlane.xlu0 %2233 }
 0x99a   :  { %6663 = vrsqrt.f32 %v2241_v0  ;;  %v2238_v53 = vmul.f32 0.015625, %v2234_v62  ;;  %v5245_v0 = vld [vmem:[%s8213_s3 + $0x90] sm:$0xff] }
 0x99b   :  { %v6224_v62 = vpack.c.bf16 %v5245_v0, %v5243_v15 }
 0x99c   :  { %v2242_v1 = vadd.f32 1e-05, %v2238_v53  ;;  %v5248_v53 = vld [vmem:[%s8213_s3 + $0xa8] sm:$0xff] }
 0x99e   :  { %6665 = vrsqrt.f32 %v2242_v1  ;;  %v5250_v1 = vld [vmem:[%s8213_s3 + $0xb8] sm:$0xff] }
 0x9a4   :  { %v6664_v57 = vpop.eup %6663 }
 0x9a5   :  { %v2249_v2 = vmul.f32 %v6664_v57, %v7505_v11  ;;  %v2396_v11 = vld [vmem:[%s8218_s8 + $0x78] sm:$0xff]  ;;  %v6226_v57 = vpack.c.bf16 %v5250_v1, %v5248_v53 }
 0x9a6   :  { %v6218_v19 = vpack.c.bf16 %v2396_v11, %v2395_v6  ;;  %v5253_v6 = vld [vmem:[%s8213_s3 + $0xd0] sm:$0xff] }
 0x9a7   :  { %v2257_v7 = vmul.f32 %v5233_v25, %v2249_v2  ;;  %v5247_v2 = vld [vmem:[%s8213_s3 + $0xa0] sm:$0xff] }
 0x9a8   :  { %v6666_v60 = vpop.eup %6665  ;;  %6219 = vmatprep.subr.bf16.mxu0 %v6218_v19 }
 0x9a9   :  { %v2265_v8 = vadd.f32 %v5234_v29, %v2257_v7  ;;  %v2250_v38 = vmul.f32 %v6666_v60, %v7509_v20  ;;  %6221 = vmatpush3.bf16.msra.mxu0 %v6218_v19  ;;  %v5249_v7 = vld [vmem:[%s8213_s3 + $0xb0] sm:$0xff]  ;;  %v5256_v19 = vld [vmem:[%s8213_s3 + $0xe8] sm:$0xff] }
 0x9aa   :  { %v6228_v60 = vpack.c.bf16 %v5249_v7, %v5247_v2 }
 0x9ab   :  { %5778 = vmatprep.mubr.msk.f32.mxu1 %vm331_vm7, %v2265_v8  ;;  %v2258_v14 = vmul.f32 %v5233_v25, %v2250_v38  ;;  %v5254_v38 = vld [vmem:[%s8213_s3 + $0xd8] sm:$0xff] }
 0x9ad   :  { %v2266_v10 = vadd.f32 %v5234_v29, %v2258_v14 }
 0x9af   :  { %5779 = vmatmul.mubr.msk.f32.gmra.mrb[24].mxu1 %vm331_vm7, %v2266_v10 }
 0x9b0   :  { %2667 = vmatprep.mubr.f32.mxu1 %v6879_v16 }
 0xa41   :  { %v5777_v20 = vpop.f32.mrb[22].mxu1 }
 0xa42   :  { %v2364_v42 = vadd.f32 %v5777_v20, %v5235_v50  ;;  %v2358_v5 = vpop.f32.mrb[23].mxu1 }
 0xa43   :  { %v2359_v24 = vadd.f32 %v5235_v50, %v2358_v5  ;;  %v5257_v5 = vld [vmem:[%s8213_s3 + $0xf0] sm:$0xff] }
 0xa44   :  { %v2378_v54 = vmax.f32 %v2364_v42, 0.0  ;;  %v5255_v42 = vld [vmem:[%s8213_s3 + $0xe0] sm:$0xff] }
 0xa45   :  { %v2377_v56 = vmax.f32 %v2359_v24, 0.0  ;;  %v6236_v24 = vpack.c.bf16 %v5257_v5, %v5255_v42 }
 0xa47   :  { %5813 = vmatprep.mubr.f32.mxu0 %v2377_v56 }
 0xa48   :  { %5814 = vmatmul.mubr.f32.vlgmr.msra.gmra.mrb[26].mxu0 %v2378_v54 }
 0xa82   :  { %v5780_v61 = vpop.f32.mrb[24].mxu1 }
 0xa83   :  { %v2374_v33 = vadd.f32 %v5780_v61, %v5235_v50  ;;  %v2368_v18 = vpop.f32.mrb[25].mxu1 }
 0xa84   :  { %v2369_v4 = vadd.f32 %v5235_v50, %v2368_v18  ;;  %v5258_v50 = vld [vmem:[%s8213_s3 + $0xf8] sm:$0xff] }
 0xa85   :  { %v2380_v36 = vmax.f32 %v2374_v33, 0.0  ;;  %v6234_v20 = vpack.c.bf16 %v5258_v50, %v5256_v19 }
 0xa86   :  { %v2379_v34 = vmax.f32 %v2369_v4, 0.0 }
 0xa88   :  { %5816 = vmatprep.mubr.f32.mxu0 %v2379_v34 }
 0xa89   :  { %5817 = vmatmul.mubr.f32.gmra.mrb[28].mxu0 %v2380_v36 }
 0xb1b   :  { %v5815_v22 = vpop.f32.mrb[26].mxu0 }
 0xb1c   :  { %v2474_v37 = vadd.f32 %v5815_v22, %v5240_v63  ;;  %v2468_v39 = vpop.f32.mrb[27].mxu0 }
 0xb1d   :  { %v2469_v9 = vadd.f32 %v5240_v63, %v2468_v39 }
 0xb1e   :  { %v2488_v55 = vadd.f32 %v2474_v37, %v2264_v21  ;;  %v5246_v21 = vld [vmem:[%s8213_s3 + $0x98] sm:$0xff] }
 0xb1f   :  { %v2487_v12 = vadd.f32 %v2469_v9, %v2263_v59  ;;  %v5244_v59 = vld [vmem:[%s8213_s3 + $0x88] sm:$0xff] }
 0xb20   :  { %v2496_v41 = vsel %vm331_vm7, %v2488_v55, 0.0  ;;  %v6222_v52 = vpack.c.bf16 %v5246_v21, %v5244_v59 }
 0xb21   :  { %2497 = vadd.xlane.f32.xlu0 %v2496_v41  ;;  %v2493_v46 = vsel %vm331_vm7, %v2487_v12, 0.0 }
 0xb22   :  { %2494 = vadd.xlane.f32.xlu1 %v2493_v46  ;;  %6223 = vmatprep.subr.bf16.mxu1 %v6222_v52 }
 0xb23   :  { %6225 = vmatpush1.bf16.msra.mxu1 %v6224_v62  ;;  %v2579_v62 = vld [vmem:[#allocation2 + $0x2] sm:$0x3] }
 0xb24   :  { %6227 = vmatprep.subr.bf16.mxu1 %v6226_v57  ;;  %v2584_v53 = vrot.slane %v2579_v62, %v323_v32  ;;  %v2588_v7 = vrot.slane %v2579_v62, %v327_v35 }
 0xb27   :  { %6229 = vmatpush1.bf16.msra.mxu1 %v6228_v60 }
 0xb5c   :  { %v5818_v23 = vpop.f32.mrb[28].mxu0 }
 0xb5d   :  { %v2484_v3 = vadd.f32 %v5818_v23, %v5240_v63  ;;  %v2478_v13 = vpop.f32.mrb[29].mxu0 }
 0xb5e   :  { %v2479_v47 = vadd.f32 %v5240_v63, %v2478_v13 }
 0xb5f   :  { %v2490_v43 = vadd.f32 %v2484_v3, %v2266_v10  ;;  %v5251_v10 = vld [vmem:[%s8213_s3 + $0xc0] sm:$0xff] }
 0xb60   :  { %v2489_v40 = vadd.f32 %v2479_v47, %v2265_v8  ;;  %v5252_v8 = vld [vmem:[%s8213_s3 + $0xc8] sm:$0xff]  ;;  %v6232_v11 = vpack.c.bf16 %v5253_v6, %v5251_v10  ;;  %v5241_v3 = vld [vmem:[%s8216_s6 + $0x5] ss:$0 sm:$0xff] }
 0xb61   :  { %v2502_v44 = vsel %vm331_vm7, %v2490_v43, 0.0  ;;  %v6230_v14 = vpack.c.bf16 %v5254_v38, %v5252_v8 }
 0xb62   :  { %2503 = vadd.xlane.f32.xlu0 %v2502_v44  ;;  %v2499_v45 = vsel %vm331_vm7, %v2489_v40, 0.0 }
 0xb63   :  { %2500 = vadd.xlane.f32.xlu1 %v2499_v45  ;;  %6231 = vmatprep.subr.bf16.mxu1 %v6230_v14 }
 0xb64   :  { %6233 = vmatpush1.bf16.msra.mxu1 %v6232_v11 }
 0xb65   :  { %6235 = vmatprep.subr.bf16.mxu1 %v6234_v20 }
 0xb68   :  { %6237 = vmatpush1.bf16.msra.mxu1 %v6236_v24 }
 0xbae   :  { %v2498_v49 = vpop.xlane.xlu0 %2497 }
 0xbaf   :  { %v2506_v27 = vmul.f32 0.015625, %v2498_v49  ;;  %v2495_v28 = vpop.xlane.xlu1 %2494 }
 0xbb0   :  { %v2505_v25 = vmul.f32 0.015625, %v2495_v28 }
 0xbb1   :  { %v7588_v26 = vsub.f32 %v2488_v55, %v2506_v27 }
 0xbb2   :  { %v2509_v51 = vsub.f32 %v2487_v12, %v2505_v25 }
 0xbb3   :  { %v2514_v58 = vmul.f32 %v7588_v26, %v7588_v26 }
 0xbb4   :  { %v2513_v29 = vmul.f32 %v2509_v51, %v2509_v51 }
 0xbb5   :  { %v2520_v30 = vsel %vm331_vm7, %v2514_v58, 0.0 }
 0xbb6   :  { %2521 = vadd.xlane.f32.xlu0 %v2520_v30  ;;  %v2517_v48 = vsel %vm331_vm7, %v2513_v29, 0.0 }
 0xbb7   :  { %2518 = vadd.xlane.f32.xlu1 %v2517_v48 }
 0xbef   :  { %v2504_v56 = vpop.xlane.xlu0 %2503 }
 0xbf0   :  { %v2508_v54 = vmul.f32 0.015625, %v2504_v56  ;;  %v2501_v61 = vpop.xlane.xlu1 %2500 }
 0xbf1   :  { %v2507_v33 = vmul.f32 0.015625, %v2501_v61 }
 0xbf2   :  { %v2512_v18 = vsub.f32 %v2490_v43, %v2508_v54  ;;  %v5242_v43 = vld [vmem:[%s8216_s6 + $0x6] ss:$0 sm:$0xff] }
 0xbf3   :  { %v2511_v4 = vsub.f32 %v2489_v40, %v2507_v33 }
 0xbf4   :  { %v2516_v34 = vmul.f32 %v2512_v18, %v2512_v18 }
 0xbf5   :  { %v2515_v36 = vmul.f32 %v2511_v4, %v2511_v4 }
 0xbf6   :  { %v2526_v63 = vsel %vm331_vm7, %v2516_v34, 0.0 }
 0xbf7   :  { %2527 = vadd.xlane.f32.xlu0 %v2526_v63  ;;  %v2523_v22 = vsel %vm331_vm7, %v2515_v36, 0.0 }
 0xbf8   :  { %2524 = vadd.xlane.f32.xlu1 %v2523_v22 }
 0xc43   :  { %v2522_v37 = vpop.xlane.xlu0 %2521 }
 0xc44   :  { %v2530_v39 = vmul.f32 0.015625, %v2522_v37  ;;  %v2519_v9 = vpop.xlane.xlu1 %2518 }
 0xc45   :  { %v2529_v55 = vmul.f32 0.015625, %v2519_v9 }
 0xc46   :  { %v2534_v12 = vadd.f32 1e-05, %v2530_v39 }
 0xc47   :  { %v2533_v41 = vadd.f32 1e-05, %v2529_v55 }
 0xc48   :  { %6667 = vrsqrt.f32 %v2534_v12 }
 0xc49   :  { %6669 = vrsqrt.f32 %v2533_v41 }
 0xc52   :  { %v6668_v46 = vpop.eup %6667 }
 0xc53   :  { %v6670_v23 = vpop.eup %6669  ;;  %v2542_v47 = vmul.f32 %v6668_v46, %v7588_v26 }
 0xc54   :  { %v2541_v13 = vmul.f32 %v6670_v23, %v2509_v51 }
 0xc55   :  { %v2550_v45 = vmul.f32 %v5241_v3, %v2542_v47 }
 0xc56   :  { %v2549_v40 = vmul.f32 %v5241_v3, %v2541_v13 }
 0xc57   :  { %v7656_v49 = vadd.f32 %v5242_v43, %v2550_v45 }
 0xc58   :  { %v7651_v44 = vadd.f32 %v5242_v43, %v2549_v40 }
 0xc5a   :  { %5259 = vmatmul.mubr.msk.f32.vlgmr.msra.gmra.mrb[26].mxu1 %vm331_vm7, %v7651_v44 }
 0xc5b   :  { %2673 = vmatprep.mubr.f32.mxu1 %v6879_v16 }
 0xc5e   :  { %5260 = vmatmul.mubr.msk.f32.gmra.mrb[28].mxu1 %vm331_vm7, %v7656_v49 }
 0xc5f   :  { %2679 = vmatprep.mubr.f32.mxu1 %v6879_v16 }
 0xc84   :  { %v2528_v27 = vpop.xlane.xlu0 %2527 }
 0xc85   :  { %v2532_v28 = vmul.f32 0.015625, %v2528_v27  ;;  %v2525_v25 = vpop.xlane.xlu1 %2524 }
 0xc86   :  { %v2531_v26 = vmul.f32 0.015625, %v2525_v25 }
 0xc87   :  { %v2536_v51 = vadd.f32 1e-05, %v2532_v28 }
 0xc88   :  { %v2535_v58 = vadd.f32 1e-05, %v2531_v26 }
 0xc89   :  { %6671 = vrsqrt.f32 %v2536_v51 }
 0xc8a   :  { %6673 = vrsqrt.f32 %v2535_v58 }
 0xc93   :  { %v6672_v29 = vpop.eup %6671 }
 0xc94   :  { %v6674_v30 = vpop.eup %6673  ;;  %v2544_v59 = vmul.f32 %v6672_v29, %v2512_v18 }
 0xc95   :  { %v2543_v48 = vmul.f32 %v6674_v30, %v2511_v4 }
 0xc96   :  { %v2552_v15 = vmul.f32 %v5241_v3, %v2544_v59 }
 0xc97   :  { %v2551_v21 = vmul.f32 %v5241_v3, %v2543_v48 }
 0xc98   :  { %v7666_v0 = vadd.f32 %v5242_v43, %v2552_v15 }
 0xc99   :  { %v7661_v52 = vadd.f32 %v5242_v43, %v2551_v21 }
 0xc9b   :  { %5261 = vmatmul.mubr.msk.f32.gmra.mrb[30].mxu1 %vm331_vm7, %v7661_v52 }
 0xc9c   :  { %2685 = vmatprep.mubr.f32.mxu1 %v6879_v16 }
 0xc9f   :  { %5262 = vmatmul.mubr.msk.f32.gmra.mrb[32].mxu1 %vm331_vm7, %v7666_v0 }
 0xd2d   :  { %v2669_v1 = vpop.f32.mrb[26].mxu1 }
 0xd2e   :  { %v2670_v57 = vadd.f32 %v2669_v1, %v2584_v53  ;;  %v2671_v2 = vpop.f32.mrb[27].mxu1 }
 0xd2f   :  { %v2672_v14 = vadd.f32 %v2671_v2, %v2588_v7 }
 0xd30   :  { %2694 = vrot.lane.b32.xlu1 %v2670_v57, %s6881_s30  ;;  %5823 = vmatprep.mubr.msk.f32.mxu1 %vm196_vm2, %v2670_v57 }
 0xd31   :  { %v2675_v60 = vpop.f32.mrb[28].mxu1 }
 0xd32   :  { %v7676_v8 = vadd.f32 %v2675_v60, %v2584_v53  ;;  %v2677_v38 = vpop.f32.mrb[29].mxu1 }
 0xd33   :  { %v2678_v10 = vadd.f32 %v2677_v38, %v2588_v7 }
 0xd34   :  { %2698 = vrot.lane.b32.xlu1 %v2670_v57, %s6882_s15  ;;  %2696 = vrot.lane.b32.xlu0 %v7676_v8, %s6881_s30  ;;  %v6515_v54 = vpack.i.bf16 %v7676_v8, %v2670_v57 }
 0xd35   :  { %v7681_v32 = vpack.i.bf16 %v2678_v10, %v2672_v14  ;;  %v7683_v6 = vpack.c.bf16 %v2678_v10, %v2672_v14 }
 0xd38   :  { %2700 = vrot.lane.b32.xlu1 %v7676_v8, %s6882_s15  ;;  %2702 = vrot.lane.b32.xlu0 %v2670_v57, %s6883_s0 }
 0xd3c   :  { %2704 = vrot.lane.b32.xlu1 %v7676_v8, %s6883_s0 }
 0xd6e   :  { %v2681_v31 = vpop.f32.mrb[30].mxu1 }
 0xd6f   :  { %v7690_v35 = vadd.f32 %v2681_v31, %v2584_v53  ;;  %v2683_v11 = vpop.f32.mrb[31].mxu1 }
 0xd70   :  { %v2684_v42 = vadd.f32 %v2683_v11, %v2588_v7 }
 0xd71   :  { %2708 = vrot.lane.b32.xlu0 %v7690_v35, %s6881_s30 }
 0xd72   :  { %v2687_v19 = vpop.f32.mrb[32].mxu1 }
 0xd73   :  { %v7694_v50 = vadd.f32 %v2687_v19, %v2584_v53  ;;  %v2689_v20 = vpop.f32.mrb[33].mxu1 }
 0xd74   :  { %v2690_v5 = vadd.f32 %v2689_v20, %v2588_v7 }
 0xd75   :  { %2712 = vrot.lane.b32.xlu0 %v7690_v35, %s6882_s15  ;;  %2710 = vrot.lane.b32.xlu1 %v7694_v50, %s6881_s30  ;;  %v6535_v39 = vpack.i.bf16 %v7694_v50, %v7690_v35 }
 0xd76   :  { %v7700_v24 = vpack.i.bf16 %v2690_v5, %v2684_v42  ;;  %v7702_v56 = vpack.c.bf16 %v2690_v5, %v2684_v42 }
 0xd79   :  { %2716 = vrot.lane.b32.xlu0 %v7690_v35, %s6883_s0  ;;  %2714 = vrot.lane.b32.xlu1 %v7694_v50, %s6882_s15 }
 0xd7d   :  { %6516 = vrot.lane.b32.xlu0 %v6515_v54, %s6884_s16  ;;  %2718 = vrot.lane.b32.xlu1 %v7694_v50, %s6883_s0 }
 0xda2   :  { %v2695_v61 = vpop.permute.xlu1 %2694 }
 0xda3   :  { %5830 = vmatprep.mubr.msk.f32.mxu0 %vm196_vm2, %v2695_v61 }
 0xda6   :  { %v2699_v33 = vpop.permute.xlu1 %2698  ;;  %v2697_v18 = vpop.permute.xlu0 %2696 }
 0xda7   :  { %v6520_v4 = vpack.i.bf16 %v2697_v18, %v2695_v61 }
 0xda9   :  { %6521 = vrot.lane.b32.xlu1 %v6520_v4, %s6884_s16 }
 0xdaa   :  { %v2701_v34 = vpop.permute.xlu1 %2700  ;;  %v2703_v63 = vpop.permute.xlu0 %2702 }
 0xdab   :  { %v6525_v36 = vpack.i.bf16 %v2701_v34, %v2699_v33 }
 0xdad   :  { %6526 = vrot.lane.b32.xlu0 %v6525_v36, %s6884_s16 }
 0xdae   :  { %v2705_v22 = vpop.permute.xlu1 %2704 }
 0xdaf   :  { %v6530_v37 = vpack.i.bf16 %v2705_v22, %v2703_v63 }
 0xdb1   :  { %6536 = vrot.lane.b32.xlu0 %v6535_v39, %s6884_s16  ;;  %6531 = vrot.lane.b32.xlu1 %v6530_v37, %s6884_s16 }
 0xde3   :  { %v2709_v9 = vpop.permute.xlu0 %2708 }
 0xde7   :  { %v7719_v55 = vpop.permute.xlu1 %2710  ;;  %v2713_v12 = vpop.permute.xlu0 %2712 }
 0xde8   :  { %v6540_v41 = vpack.i.bf16 %v7719_v55, %v2709_v9 }
 0xdea   :  { %6541 = vrot.lane.b32.xlu1 %v6540_v41, %s6884_s16 }
 0xdeb   :  { %v7723_v46 = vpop.permute.xlu1 %2714  ;;  %v7725_v23 = vpop.permute.xlu0 %2716 }
 0xdec   :  { %v6545_v3 = vpack.i.bf16 %v7723_v46, %v2713_v12 }
 0xdee   :  { %6546 = vrot.lane.b32.xlu0 %v6545_v3, %s6884_s16 }
 0xdef   :  { %v7729_v13 = vpop.permute.xlu1 %2718  ;;  %v6517_v47 = vpop.permute.xlu0 %6516 }
 0xdf0   :  { %v6550_v43 = vpack.i.bf16 %v7729_v13, %v7725_v23  ;;  %v6519_v40 = vunpack.i.h.bf16 %v6517_v47  ;;  %v6518_v45 = vunpack.i.l.bf16 %v6517_v47 }
 0xdf2   :  { %v6238_v27 = vpack.c.bf16 %v6519_v40, %v6518_v45  ;;  %6551 = vrot.lane.b32.xlu1 %v6550_v43, %s6884_s16 }
 0xdf4   :  { %6240 = vmatprep.subr.msk.bf16.mxu1 %vm7193_vm8, %v6238_v27 }
 0xdf5   :  { %6243 = vmatpush3.bf16.xpose.msk.msra.mxu1 %vm7193_vm8, %v6238_v27 }
 0xdf6   :  { %6556 = vrot.lane.b32.xlu1 %v7681_v32, %s6881_s30 }
 0xdfc   :  { %5824 = vmatmul.mubr.msk.f32.vlgmr.msra.gmra.mrb[34].mxu1 %vm196_vm2, %v7676_v8 }
 0xdfd   :  { %5837 = vmatprep.mubr.msk.f32.mxu1 %vm196_vm2, %v2699_v33 }
 0xe1b   :  { %v6522_v28 = vpop.permute.xlu1 %6521 }
 0xe1c   :  { %v6524_v25 = vunpack.i.h.bf16 %v6522_v28  ;;  %v6523_v26 = vunpack.i.l.bf16 %v6522_v28 }
 0xe1e   :  { %v6244_v51 = vpack.c.bf16 %v6524_v25, %v6523_v26 }
 0xe1f   :  { %v6527_v58 = vpop.permute.xlu0 %6526 }
 0xe20   :  { %v6529_v29 = vunpack.i.h.bf16 %v6527_v58  ;;  %v6528_v30 = vunpack.i.l.bf16 %v6527_v58  ;;  %6246 = vmatprep.subr.msk.bf16.mxu0 %vm7193_vm8, %v6244_v51 }
 0xe21   :  { %6249 = vmatpush3.bf16.xpose.msk.msra.mxu0 %vm7193_vm8, %v6244_v51 }
 0xe22   :  { %v6250_v48 = vpack.c.bf16 %v6529_v29, %v6528_v30 }
 0xe23   :  { %v6532_v59 = vpop.permute.xlu1 %6531  ;;  %v6537_v21 = vpop.permute.xlu0 %6536 }
 0xe24   :  { %v6534_v15 = vunpack.i.h.bf16 %v6532_v59  ;;  %v6533_v62 = vunpack.i.l.bf16 %v6532_v59  ;;  %v6539_v53 = vunpack.i.h.bf16 %v6537_v21  ;;  %v6538_v1 = vunpack.i.l.bf16 %v6537_v21  ;;  %6252 = vmatprep.subr.msk.bf16.mxu1 %vm7193_vm8, %v6250_v48 }
 0xe25   :  { %6255 = vmatpush3.bf16.xpose.msk.msra.mxu1 %vm7193_vm8, %v6250_v48 }
 0xe26   :  { %v6256_v57 = vpack.c.bf16 %v6534_v15, %v6533_v62  ;;  %v6262_v2 = vpack.c.bf16 %v6539_v53, %v6538_v1 }
 0xe28   :  { %5831 = vmatmul.mubr.msk.f32.vlgmr.msra.gmra.mrb[30].mxu0 %vm196_vm2, %v2697_v18  ;;  %6258 = vmatprep.subr.msk.bf16.mxu0 %vm7193_vm8, %v6256_v57 }
 0xe29   :  { %6264 = vmatprep.subr.msk.bf16.mxu1 %vm7193_vm8, %v6262_v2  ;;  %6261 = vmatpush3.bf16.xpose.msk.msra.mxu0 %vm7193_vm8, %v6256_v57 }
 0xe2a   :  { %5844 = vmatprep.mubr.msk.f32.mxu0 %vm196_vm2, %v2703_v63 }
 0xe2c   :  { %5838 = vmatmul.mubr.msk.f32.vlgmr.msra.gmra.mrb[36].mxu1 %vm196_vm2, %v2701_v34 }
 0xe2d   :  { %6267 = vmatpush3.bf16.xpose.msk.msra.mxu1 %vm7193_vm8, %v6262_v2  ;;  %5851 = vmatprep.mubr.msk.f32.mxu1 %vm196_vm2, %v7690_v35 }
 0xe30   :  { %5845 = vmatmul.mubr.msk.f32.vlgmr.msra.gmra.mrb[32].mxu0 %vm196_vm2, %v2705_v22 }
 0xe31   :  { %5858 = vmatprep.mubr.msk.f32.mxu0 %vm196_vm2, %v2709_v9 }
 0xe34   :  { %5852 = vmatmul.mubr.msk.f32.vlgmr.msra.gmra.mrb[38].mxu1 %vm196_vm2, %v7694_v50 }
 0xe35   :  { %5865 = vmatprep.mubr.msk.f32.mxu1 %vm196_vm2, %v2713_v12 }
 0xe5c   :  { %v6542_v7 = vpop.permute.xlu1 %6541 }
 0xe5d   :  { %v6544_v60 = vunpack.i.h.bf16 %v6542_v7  ;;  %v6543_v8 = vunpack.i.l.bf16 %v6542_v7 }
 0xe5f   :  { %v6268_v38 = vpack.c.bf16 %v6544_v60, %v6543_v8 }
 0xe60   :  { %v6547_v14 = vpop.permute.xlu0 %6546 }
 0xe61   :  { %v6549_v10 = vunpack.i.h.bf16 %v6547_v14  ;;  %v6548_v31 = vunpack.i.l.bf16 %v6547_v14  ;;  %6270 = vmatprep.subr.msk.bf16.mxu0 %vm7193_vm8, %v6268_v38 }
 0xe62   :  { %6273 = vmatpush3.bf16.xpose.msk.msra.mxu0 %vm7193_vm8, %v6268_v38 }
 0xe63   :  { %v6274_v35 = vpack.c.bf16 %v6549_v10, %v6548_v31 }
 0xe64   :  { %v6552_v11 = vpop.permute.xlu1 %6551 }
 0xe65   :  { %v6554_v19 = vunpack.i.h.bf16 %v6552_v11  ;;  %v6553_v20 = vunpack.i.l.bf16 %v6552_v11  ;;  %6276 = vmatprep.subr.msk.bf16.mxu1 %vm7193_vm8, %v6274_v35 }
 0xe66   :  { %6279 = vmatpush3.bf16.xpose.msk.msra.mxu1 %vm7193_vm8, %v6274_v35 }
 0xe67   :  { %v6280_v50 = vpack.c.bf16 %v6554_v19, %v6553_v20  ;;  %6287 = vmatprep.subr.bf16.mxu1 %v7683_v6 }
 0xe68   :  { %v6557_v42 = vpop.permute.xlu1 %6556 }
 0xe69   :  { %v6559_v5 = vunpack.i.h.bf16 %v6557_v42  ;;  %v6558_v54 = vunpack.i.l.bf16 %v6557_v42  ;;  %5859 = vmatmul.mubr.msk.f32.vlgmr.msra.gmra.mrb[34].mxu0 %vm196_vm2, %v7719_v55  ;;  %6282 = vmatprep.subr.msk.bf16.mxu0 %vm7193_vm8, %v6280_v50 }
 0xe6a   :  { %6285 = vmatpush3.bf16.xpose.msk.msra.mxu0 %vm7193_vm8, %v6280_v50  ;;  %5872 = vmatprep.mubr.msk.f32.mxu0 %vm196_vm2, %v7725_v23 }
 0xe6b   :  { %v7786_v61 = vpack.c.bf16 %v6559_v5, %v6558_v54 }
 0xe6d   :  { %5866 = vmatmul.mubr.msk.f32.vlgmr.msra.gmra.mrb[40].mxu1 %vm196_vm2, %v7723_v46 }
 0xe6e   :  { %6289 = vmatpush3.bf16.msra.mxu1 %v7683_v6 }
 0xe6f   :  { %6291 = vmatprep.subr.bf16.mxu1 %v7786_v61 }
 0xe71   :  { %5873 = vmatmul.mubr.msk.f32.vlgmr.msra.gmra.mrb[36].mxu0 %vm196_vm2, %v7729_v13 }
 0xecf   :  { %v5825_v33 = vpop.f32.mrb[34].mxu1 }
 0xed0   :  { %v7794_v18 = vpop.f32.mrb[35].mxu1  ;;  %v3459_v17 = vsel %vm196_vm2, %v5825_v33, -inf }
 0xed1   :  { %3460 = vmax.xlane.f32.xlu1 %v3459_v17  ;;  %v3456_v4 = vsel %vm196_vm2, %v7794_v18, -inf }
 0xed2   :  { %3457 = vmax.xlane.f32.xlu0 %v3456_v4 }
 0xefb   :  { %v5832_v34 = vpop.f32.mrb[30].mxu0 }
 0xefc   :  { %v7799_v36 = vpop.f32.mrb[31].mxu0  ;;  %v3465_v6 = vsel %vm196_vm2, %v5832_v34, -inf }
 0xefd   :  { %3466 = vmax.xlane.f32.xlu0 %v3465_v6  ;;  %v3462_v12 = vsel %vm196_vm2, %v7799_v36, -inf }
 0xeff   :  { %v5839_v63 = vpop.f32.mrb[36].mxu1 }
 0xf00   :  { %v7802_v22 = vpop.f32.mrb[37].mxu1  ;;  %v3471_v37 = vsel %vm196_vm2, %v5839_v63, -inf }
 0xf01   :  { %3472 = vmax.xlane.f32.xlu0 %v3471_v37  ;;  %v3468_v39 = vsel %vm196_vm2, %v7802_v22, -inf }
 0xf02   :  { %3469 = vmax.xlane.f32.xlu1 %v3468_v39 }
 0xf03   :  { %v5846_v9 = vpop.f32.mrb[32].mxu0 }
 0xf04   :  { %v7807_v55 = vpop.f32.mrb[33].mxu0  ;;  %v3477_v3 = vsel %vm196_vm2, %v5846_v9, -inf }
 0xf05   :  { %3463 = vmax.xlane.f32.xlu0 %v3462_v12  ;;  %v3474_v41 = vsel %vm196_vm2, %v7807_v55, -inf }
 0xf06   :  { %3475 = vmax.xlane.f32.xlu1 %v3474_v41 }
 0xf07   :  { %v5853_v46 = vpop.f32.mrb[38].mxu1 }
 0xf08   :  { %v7813_v23 = vpop.f32.mrb[39].mxu1  ;;  %v3483_v47 = vsel %vm196_vm2, %v5853_v46, -inf }
 0xf09   :  { %3478 = vmax.xlane.f32.xlu0 %v3477_v3  ;;  %v3480_v13 = vsel %vm196_vm2, %v7813_v23, -inf }
 0xf0a   :  { %3481 = vmax.xlane.f32.xlu1 %v3480_v13 }
 0xf0d   :  { %3484 = vmax.xlane.f32.xlu0 %v3483_v47 }
 0xf3c   :  { %v7819_v43 = vpop.f32.mrb[34].mxu0 }
 0xf3d   :  { %v7821_v40 = vpop.f32.mrb[35].mxu0  ;;  %v3489_v45 = vsel %vm196_vm2, %v7819_v43, -inf }
 0xf3e   :  { %3490 = vmax.xlane.f32.xlu0 %v3489_v45  ;;  %v3486_v27 = vsel %vm196_vm2, %v7821_v40, -inf }
 0xf3f   :  { %3487 = vmax.xlane.f32.xlu1 %v3486_v27 }
 0xf40   :  { %v7827_v28 = vpop.f32.mrb[40].mxu1 }
 0xf41   :  { %v7829_v25 = vpop.f32.mrb[41].mxu1  ;;  %v3495_v26 = vsel %vm196_vm2, %v7827_v28, -inf }
 0xf42   :  { %3496 = vmax.xlane.f32.xlu0 %v3495_v26  ;;  %v3492_v51 = vsel %vm196_vm2, %v7829_v25, -inf }
 0xf43   :  { %3493 = vmax.xlane.f32.xlu1 %v3492_v51 }
 0xf44   :  { %v7835_v58 = vpop.f32.mrb[36].mxu0 }
 0xf45   :  { %v7837_v29 = vpop.f32.mrb[37].mxu0  ;;  %v3501_v30 = vsel %vm196_vm2, %v7835_v58, -inf }
 0xf46   :  { %3502 = vmax.xlane.f32.xlu0 %v3501_v30  ;;  %v3498_v62 = vsel %vm196_vm2, %v7837_v29, -inf }
 0xf54   :  { %6566 = vrot.lane.b32.xlu1 %v7681_v32, %s6883_s0 }
 0xf5c   :  { %6561 = vrot.lane.b32.xlu0 %v7681_v32, %s6882_s15 }
 0xf5e   :  { %v3461_v48 = vpop.xlane.xlu1 %3460 }
 0xf5f   :  { %v3505_v59 = vsub.f32 %v5825_v33, %v3461_v48  ;;  %v3458_v1 = vpop.xlane.xlu0 %3457 }
 0xf60   :  { %v3504_v14 = vsub.f32 %v7794_v18, %v3458_v1 }
 0xf61   :  { %v3522_v21 = vmul.f32 1.442695, %v3505_v59 }
 0xf62   :  { %v3520_v20 = vmul.f32 1.442695, %v3504_v14 }
 0xf63   :  { %6675 = vpow2.f32 %v3522_v21 }
 0xf6d   :  { %v7845_v15 = vpop.eup %6675 }
 0xf6e   :  { %v3555_v53 = vsel %vm196_vm2, %v7845_v15, 0.0 }
 0xf78   :  { %3499 = vmax.xlane.f32.xlu1 %v3498_v62 }
 0xf7b   :  { %3556 = vadd.xlane.f32.xlu0 %v3555_v53 }
 0xf89   :  { %6571 = vrot.lane.b32.xlu1 %v7700_v24, %s6881_s30 }
 0xf8a   :  { %v3467_v57 = vpop.xlane.xlu0 %3466 }
 0xf8b   :  { %v3507_v32 = vsub.f32 %v5832_v34, %v3467_v57 }
 0xf8d   :  { %v3526_v2 = vmul.f32 1.442695, %v3507_v32 }
 0xf8e   :  { %v3473_v7 = vpop.xlane.xlu0 %3472 }
 0xf8f   :  { %6677 = vpow2.f32 %v3526_v2  ;;  %v3509_v60 = vsub.f32 %v5839_v63, %v3473_v7  ;;  %v3470_v35 = vpop.xlane.xlu1 %3469 }
 0xf90   :  { %v3508_v34 = vsub.f32 %v7802_v22, %v3470_v35 }
 0xf91   :  { %v3530_v8 = vmul.f32 1.442695, %v3509_v60 }
 0xf92   :  { %v3464_v38 = vpop.xlane.xlu0 %3463  ;;  %v3528_v63 = vmul.f32 1.442695, %v3508_v34 }
 0xf93   :  { %6679 = vpow2.f32 %v3530_v8  ;;  %v3506_v5 = vsub.f32 %v7799_v36, %v3464_v38  ;;  %v3476_v18 = vpop.xlane.xlu1 %3475 }
 0xf94   :  { %v3510_v36 = vsub.f32 %v7807_v55, %v3476_v18 }
 0xf95   :  { %v3524_v6 = vmul.f32 1.442695, %v3506_v5 }
 0xf96   :  { %v3479_v10 = vpop.xlane.xlu0 %3478  ;;  %v3532_v12 = vmul.f32 1.442695, %v3510_v36 }
 0xf97   :  { %v3511_v31 = vsub.f32 %v5846_v9, %v3479_v10  ;;  %v3482_v37 = vpop.xlane.xlu1 %3481 }
 0xf98   :  { %v3512_v41 = vsub.f32 %v7813_v23, %v3482_v37 }
 0xf99   :  { %v7854_v11 = vpop.eup %6677  ;;  %v3534_v19 = vmul.f32 1.442695, %v3511_v31 }
 0xf9a   :  { %v3485_v50 = vpop.xlane.xlu0 %3484  ;;  %v3561_v42 = vsel %vm196_vm2, %v7854_v11, 0.0  ;;  %v3536_v55 = vmul.f32 1.442695, %v3512_v41 }
 0xf9b   :  { %6681 = vpow2.f32 %v3534_v19  ;;  %v3513_v54 = vsub.f32 %v5853_v46, %v3485_v50  ;;  %3562 = vadd.xlane.f32.xlu0 %v3561_v42 }
 0xf9c   :  { %6683 = vpow2.f32 %v3520_v20 }
 0xf9d   :  { %v7859_v33 = vpop.eup %6679  ;;  %v3538_v17 = vmul.f32 1.442695, %v3513_v54 }
 0xf9e   :  { %v3567_v4 = vsel %vm196_vm2, %v7859_v33, 0.0 }
 0xf9f   :  { %6685 = vpow2.f32 %v3538_v17  ;;  %3568 = vadd.xlane.f32.xlu0 %v3567_v4 }
 0xfa0   :  { %6687 = vpow2.f32 %v3524_v6 }
 0xfa1   :  { %6689 = vpow2.f32 %v3528_v63 }
 0xfa2   :  { %6691 = vpow2.f32 %v3532_v12 }
 0xfa3   :  { %6693 = vpow2.f32 %v3536_v55 }
 0xfa5   :  { %v7865_v39 = vpop.eup %6681 }
 0xfa6   :  { %v3573_v9 = vsel %vm196_vm2, %v7865_v39, 0.0  ;;  %v7870_v46 = vpop.eup %6683 }
 0xfa7   :  { %3574 = vadd.xlane.f32.xlu0 %v3573_v9  ;;  %v3552_v13 = vsel %vm196_vm2, %v7870_v46, 0.0 }
 0xfa9   :  { %v7872_v22 = vpop.eup %6685 }
 0xfaa   :  { %v3579_v3 = vsel %vm196_vm2, %v7872_v22, 0.0  ;;  %v7878_v47 = vpop.eup %6687 }
 0xfab   :  { %3580 = vadd.xlane.f32.xlu0 %v3579_v3  ;;  %v3558_v23 = vsel %vm196_vm2, %v7878_v47, 0.0  ;;  %v7882_v45 = vpop.eup %6689 }
 0xfac   :  { %v3564_v27 = vsel %vm196_vm2, %v7882_v45, 0.0  ;;  %v7886_v26 = vpop.eup %6691 }
 0xfad   :  { %3553 = vadd.xlane.f32.xlu1 %v3552_v13  ;;  %v3570_v51 = vsel %vm196_vm2, %v7886_v26, 0.0  ;;  %v7890_v30 = vpop.eup %6693 }
 0xfae   :  { %v3576_v48 = vsel %vm196_vm2, %v7890_v30, 0.0 }
 0xfb1   :  { %3559 = vadd.xlane.f32.xlu1 %v3558_v23 }
 0xfb5   :  { %3565 = vadd.xlane.f32.xlu1 %v3564_v27 }
 0xfb9   :  { %3571 = vadd.xlane.f32.xlu1 %v3570_v51 }
 0xfbd   :  { %3577 = vadd.xlane.f32.xlu1 %v3576_v48 }
 0xfcb   :  { %v3491_v59 = vpop.xlane.xlu0 %3490 }
 0xfcc   :  { %v3515_v21 = vsub.f32 %v7819_v43, %v3491_v59  ;;  %v3488_v62 = vpop.xlane.xlu1 %3487 }
 0xfcd   :  { %v3514_v53 = vsub.f32 %v7821_v40, %v3488_v62 }
 0xfce   :  { %v3542_v1 = vmul.f32 1.442695, %v3515_v21 }
 0xfcf   :  { %v3540_v57 = vmul.f32 1.442695, %v3514_v53  ;;  %v3497_v32 = vpop.xlane.xlu0 %3496 }
 0xfd0   :  { %6695 = vpow2.f32 %v3542_v1  ;;  %v3517_v2 = vsub.f32 %v7827_v28, %v3497_v32  ;;  %v3494_v7 = vpop.xlane.xlu1 %3493 }
 0xfd1   :  { %6697 = vpow2.f32 %v3540_v57  ;;  %v3516_v60 = vsub.f32 %v7829_v25, %v3494_v7 }
 0xfd2   :  { %v3546_v8 = vmul.f32 1.442695, %v3517_v2 }
 0xfd3   :  { %v3544_v38 = vmul.f32 1.442695, %v3516_v60  ;;  %v3503_v14 = vpop.xlane.xlu0 %3502 }
 0xfd4   :  { %6699 = vpow2.f32 %v3546_v8  ;;  %v3519_v10 = vsub.f32 %v7835_v58, %v3503_v14  ;;  %v6567_v4 = vpop.permute.xlu1 %6566 }
 0xfd5   :  { %6701 = vpow2.f32 %v3544_v38  ;;  %v6569_v48 = vunpack.i.h.bf16 %v6567_v4  ;;  %v6568_v59 = vunpack.i.l.bf16 %v6567_v4 }
 0xfd6   :  { %v3550_v43 = vmul.f32 1.442695, %v3519_v10 }
 0xfd7   :  { %v6562_v31 = vpop.permute.xlu0 %6561  ;;  %v6298_v32 = vpack.c.bf16 %v6569_v48, %v6568_v59  ;;  %v5315_v48 = vld [vmem:[%s8215_s5 + $0x60] sm:$0xff]  ;;  %v5316_v59 = vld [vmem:[%s8215_s5 + $0x68] sm:$0xff] }
 0xfd8   :  { %6703 = vpow2.f32 %v3550_v43  ;;  %v6564_v40 = vunpack.i.h.bf16 %v6562_v31  ;;  %v6563_v35 = vunpack.i.l.bf16 %v6562_v31 }
 0xfda   :  { %v7899_v19 = vpop.eup %6695  ;;  %v6294_v20 = vpack.c.bf16 %v6564_v40, %v6563_v35 }
 0xfdb   :  { %v7901_v28 = vpop.eup %6697  ;;  %v3585_v25 = vsel %vm196_vm2, %v7899_v19, 0.0 }
 0xfdc   :  { %3586 = vadd.xlane.f32.xlu0 %v3585_v25  ;;  %6295 = vmatprep.subr.bf16.mxu0 %v6294_v20  ;;  %v3582_v50 = vsel %vm196_vm2, %v7901_v28, 0.0 }
 0xfdd   :  { %6297 = vmatpush3.bf16.msra.mxu0 %v6294_v20  ;;  %3583 = vadd.xlane.f32.xlu1 %v3582_v50 }
 0xfde   :  { %v7907_v58 = vpop.eup %6699  ;;  %6303 = vmatprep.subr.bf16.mxu0 %v7702_v56 }
 0xfdf   :  { %v7910_v42 = vpop.eup %6701  ;;  %v3591_v5 = vsel %vm196_vm2, %v7907_v58, 0.0 }
 0xfe0   :  { %3592 = vadd.xlane.f32.xlu0 %v3591_v5  ;;  %v3588_v54 = vsel %vm196_vm2, %v7910_v42, 0.0 }
 0xfe1   :  { %3589 = vadd.xlane.f32.xlu1 %v3588_v54 }
 0xfe2   :  { %v7916_v17 = vpop.eup %6703 }
 0xfe3   :  { %v3597_v18 = vsel %vm196_vm2, %v7916_v17, 0.0 }
 0xfe4   :  { %3598 = vadd.xlane.f32.xlu0 %v3597_v18 }
 0xffa   :  { %6576 = vrot.lane.b32.xlu0 %v7700_v24, %s6882_s15 }
0x1005   :  { %v3500_v34 = vpop.xlane.xlu1 %3499 }
0x1006   :  { %v3518_v6 = vsub.f32 %v7837_v29, %v3500_v34 }
0x1008   :  { %v3548_v63 = vmul.f32 1.442695, %v3518_v6  ;;  %v3557_v9 = vpop.xlane.xlu0 %3556 }
0x1009   :  { %v6572_v12 = vpop.permute.xlu1 %6571 }
0x100a   :  { %6705 = vpow2.f32 %v3548_v63  ;;  %v6574_v2 = vunpack.i.h.bf16 %v6572_v12  ;;  %v6573_v7 = vunpack.i.l.bf16 %v6572_v12 }
0x100b   :  { %6707 = vrcp.f32 %v3557_v9 }
0x100c   :  { %v6306_v14 = vpack.c.bf16 %v6574_v2, %v6573_v7 }
0x1014   :  { %v7923_v36 = vpop.eup %6705 }
0x1015   :  { %v3594_v37 = vsel %vm196_vm2, %v7923_v36, 0.0  ;;  %v6708_v27 = vpop.eup %6707 }
0x1016   :  { %3595 = vadd.xlane.f32.xlu1 %v3594_v37  ;;  %v3617_v62 = vmul.f32 %v6708_v27, %v7845_v15  ;;  %v5313_v27 = vld [vmem:[%s8215_s5 + $0x50] sm:$0xff] }
0x1027   :  { %6581 = vrot.lane.b32.xlu1 %v7700_v24, %s6883_s0 }
0x1028   :  { %v3563_v41 = vpop.xlane.xlu0 %3562 }
0x102c   :  { %v3569_v55 = vpop.xlane.xlu0 %3568 }
0x1034   :  { %v3575_v13 = vpop.xlane.xlu0 %3574 }
0x1038   :  { %v3581_v53 = vpop.xlane.xlu0 %3580 }
0x103a   :  { %v3554_v3 = vpop.xlane.xlu1 %3553 }
0x103b   :  { %6709 = vrcp.f32 %v3554_v3 }
0x103c   :  { %6711 = vrcp.f32 %v3563_v41 }
0x103e   :  { %v3560_v29 = vpop.xlane.xlu1 %3559 }
0x103f   :  { %6713 = vrcp.f32 %v3560_v29 }
0x1040   :  { %6715 = vrcp.f32 %v3569_v55 }
0x1042   :  { %v3566_v23 = vpop.xlane.xlu1 %3565 }
0x1043   :  { %6717 = vrcp.f32 %v3566_v23  ;;  %v5312_v23 = vld [vmem:[%s8215_s5 + $0x48] sm:$0xff] }
0x1044   :  { %6719 = vrcp.f32 %v3575_v13 }
0x1045   :  { %v6710_v51 = vpop.eup %6709 }
0x1046   :  { %v3572_v24 = vpop.xlane.xlu1 %3571  ;;  %v3616_v21 = vmul.f32 %v6710_v51, %v7870_v46  ;;  %v6712_v1 = vpop.eup %6711 }
0x1047   :  { %6721 = vrcp.f32 %v3572_v24  ;;  %v3619_v46 = vmul.f32 %v6712_v1, %v7854_v11  ;;  %v6326_v24 = vpack.c.bf16 %v5316_v59, %v5315_v48 }
0x1048   :  { %5879 = vmatprep.mubr.msk.f32.mxu1 %vm196_vm2, %v3616_v21  ;;  %6723 = vrcp.f32 %v3581_v53  ;;  %v5317_v21 = vld [vmem:[%s8215_s5 + $0x70] sm:$0xff] }
0x1049   :  { %v6714_v57 = vpop.eup %6713  ;;  %5880 = vmatmul.mubr.msk.f32.vlgmr.msra.gmra.mrb[42].mxu1 %vm196_vm2, %v3617_v62  ;;  %v5318_v62 = vld [vmem:[%s8215_s5 + $0x78] sm:$0xff] }
0x104a   :  { %6293 = vmatpush3.bf16.msra.mxu1 %v7786_v61  ;;  %v3578_v60 = vpop.xlane.xlu1 %3577  ;;  %v3618_v8 = vmul.f32 %v6714_v57, %v7878_v47  ;;  %v6716_v15 = vpop.eup %6715  ;;  %v6330_v53 = vpack.c.bf16 %v5318_v62, %v5317_v21 }
0x104b   :  { %6725 = vrcp.f32 %v3578_v60  ;;  %6299 = vmatprep.subr.bf16.mxu1 %v6298_v32  ;;  %v3621_v43 = vmul.f32 %v6716_v15, %v7859_v33 }
0x104c   :  { %5886 = vmatprep.mubr.msk.f32.mxu1 %vm196_vm2, %v3618_v8 }
0x104d   :  { %v6718_v38 = vpop.eup %6717  ;;  %5887 = vmatmul.mubr.msk.f32.vlgmr.msra.gmra.mrb[44].mxu1 %vm196_vm2, %v3619_v46 }
0x104e   :  { %6301 = vmatpush3.bf16.msra.mxu1 %v6298_v32  ;;  %v3620_v10 = vmul.f32 %v6718_v38, %v7882_v45  ;;  %v6720_v61 = vpop.eup %6719 }
0x104f   :  { %6307 = vmatprep.subr.bf16.mxu1 %v6306_v14  ;;  %v3623_v31 = vmul.f32 %v6720_v61, %v7865_v39 }
0x1050   :  { %5893 = vmatprep.mubr.msk.f32.mxu0 %vm196_vm2, %v3620_v10 }
0x1051   :  { %v6722_v47 = vpop.eup %6721  ;;  %5894 = vmatmul.mubr.msk.f32.vlgmr.msra.gmra.mrb[38].mxu0 %vm196_vm2, %v3621_v43 }
0x1052   :  { %6305 = vmatpush3.bf16.msra.mxu0 %v7702_v56  ;;  %v3622_v11 = vmul.f32 %v6722_v47, %v7886_v26  ;;  %v6724_v40 = vpop.eup %6723 }
0x1053   :  { %v3625_v45 = vmul.f32 %v6724_v40, %v7872_v22 }
0x1054   :  { %5900 = vmatprep.mubr.msk.f32.mxu1 %vm196_vm2, %v3622_v11 }
0x1055   :  { %v6726_v35 = vpop.eup %6725  ;;  %5901 = vmatmul.mubr.msk.f32.vlgmr.msra.gmra.mrb[46].mxu1 %vm196_vm2, %v3623_v31 }
0x1056   :  { %6309 = vmatpush3.bf16.msra.mxu1 %v6306_v14  ;;  %v3624_v33 = vmul.f32 %v6726_v35, %v7890_v30 }
0x1058   :  { %5907 = vmatprep.mubr.msk.f32.mxu0 %vm196_vm2, %v3624_v33 }
0x1059   :  { %5908 = vmatmul.mubr.msk.f32.vlgmr.msra.gmra.mrb[40].mxu0 %vm196_vm2, %v3625_v45 }
0x1069   :  { %v3587_v56 = vpop.xlane.xlu0 %3586 }
0x106a   :  { %6727 = vrcp.f32 %v3587_v56  ;;  %v3584_v26 = vpop.xlane.xlu1 %3583 }
0x106b   :  { %6729 = vrcp.f32 %v3584_v26 }
0x106d   :  { %v3593_v39 = vpop.xlane.xlu0 %3592 }
0x106e   :  { %6731 = vrcp.f32 %v3593_v39  ;;  %v3590_v20 = vpop.xlane.xlu1 %3589 }
0x106f   :  { %6733 = vrcp.f32 %v3590_v20 }
0x1071   :  { %v3599_v25 = vpop.xlane.xlu0 %3598 }
0x1072   :  { %6735 = vrcp.f32 %v3599_v25 }
0x1074   :  { %v6728_v50 = vpop.eup %6727 }
0x1075   :  { %v6730_v5 = vpop.eup %6729  ;;  %v6577_v54 = vpop.permute.xlu0 %6576  ;;  %v3627_v4 = vmul.f32 %v6728_v50, %v7899_v19 }
0x1076   :  { %v6579_v18 = vunpack.i.h.bf16 %v6577_v54  ;;  %v6578_v30 = vunpack.i.l.bf16 %v6577_v54  ;;  %v3626_v22 = vmul.f32 %v6730_v5, %v7901_v28 }
0x1078   :  { %v6732_v34 = vpop.eup %6731  ;;  %v6310_v6 = vpack.c.bf16 %v6579_v18, %v6578_v30  ;;  %5914 = vmatprep.mubr.msk.f32.mxu1 %vm196_vm2, %v3626_v22 }
0x1079   :  { %v6734_v63 = vpop.eup %6733  ;;  %5915 = vmatmul.mubr.msk.f32.vlgmr.msra.gmra.mrb[48].mxu1 %vm196_vm2, %v3627_v4  ;;  %v3629_v9 = vmul.f32 %v6732_v34, %v7907_v58  ;;  %v5311_v58 = vld [vmem:[%s8215_s5 + $0x40] sm:$0xff] }
0x107a   :  { %6311 = vmatprep.subr.bf16.mxu0 %v6310_v6  ;;  %v3628_v37 = vmul.f32 %v6734_v63, %v7910_v42  ;;  %v6318_v51 = vpack.c.bf16 %v5312_v23, %v5311_v58 }
0x107b   :  { %6313 = vmatpush3.bf16.msra.mxu0 %v6310_v6 }
0x107c   :  { %5921 = vmatprep.mubr.msk.f32.mxu0 %vm196_vm2, %v3628_v37  ;;  %v6736_v55 = vpop.eup %6735  ;;  %6319 = vmatprep.subr.bf16.mxu0 %v6318_v51 }
0x107d   :  { %v3631_v13 = vmul.f32 %v6736_v55, %v7916_v17  ;;  %v5314_v17 = vld [vmem:[%s8215_s5 + $0x58] sm:$0xff] }
0x107e   :  { %5922 = vmatmul.mubr.msk.f32.vlgmr.msra.gmra.mrb[42].mxu0 %vm196_vm2, %v3629_v9 }
0x107f   :  { %6321 = vmatpush3.bf16.msra.mxu0 %v6318_v51 }
0x10a3   :  { %v3596_v28 = vpop.xlane.xlu1 %3595 }
0x10a4   :  { %6737 = vrcp.f32 %v3596_v28 }
0x10a7   :  { %v6582_v19 = vpop.permute.xlu1 %6581 }
0x10a8   :  { %v6584_v12 = vunpack.i.h.bf16 %v6582_v19  ;;  %v6583_v41 = vunpack.i.l.bf16 %v6582_v19 }
0x10aa   :  { %v6314_v3 = vpack.c.bf16 %v6584_v12, %v6583_v41  ;;  %v5320_v12 = vld [vmem:[%s8216_s6 + $0x8] ss:$0 sm:$0xff] }
0x10ac   :  { %6315 = vmatprep.subr.bf16.mxu1 %v6314_v3 }
0x10ad   :  { %6317 = vmatpush3.bf16.msra.mxu1 %v6314_v3 }
0x10ae   :  { %v6738_v29 = vpop.eup %6737 }
0x10af   :  { %v3630_v42 = vmul.f32 %v6738_v29, %v7923_v36  ;;  %v6322_v36 = vpack.c.bf16 %v5314_v17, %v5313_v27 }
0x10b1   :  { %5928 = vmatprep.mubr.msk.f32.mxu1 %vm196_vm2, %v3630_v42  ;;  %6323 = vmatprep.subr.bf16.mxu0 %v6322_v36 }
0x10b2   :  { %5929 = vmatmul.mubr.msk.f32.vlgmr.msra.gmra.mrb[50].mxu1 %vm196_vm2, %v3631_v13  ;;  %6325 = vmatpush3.bf16.msra.mxu0 %v6322_v36 }
0x10b3   :  { %6327 = vmatprep.subr.bf16.mxu0 %v6326_v24 }
0x10b6   :  { %6329 = vmatpush3.bf16.msra.mxu0 %v6326_v24 }
0x10b7   :  { %6331 = vmatprep.subr.bf16.mxu0 %v6330_v53 }
0x10ba   :  { %6333 = vmatpush3.bf16.msra.mxu0 %v6330_v53 }
0x111c   :  { %v5881_v1 = vpop.f32.mrb[42].mxu1 }
0x111d   :  { %v3704_v57 = vpop.f32.mrb[43].mxu1 }
0x1120   :  { %v5888_v32 = vpop.f32.mrb[44].mxu1 }
0x1121   :  { %4284 = vrot.lane.b32.xlu1 %v5888_v32, %s6880_s1  ;;  %v3785_v2 = vpop.f32.mrb[45].mxu1 }
0x1122   :  { %4282 = vrot.lane.b32.xlu0 %v3785_v2, %s6880_s1 }
0x1124   :  { %v5895_v7 = vpop.f32.mrb[38].mxu0 }
0x1125   :  { %4292 = vrot.lane.b32.xlu1 %v5895_v7, %s6873_s7  ;;  %v3866_v60 = vpop.f32.mrb[39].mxu0  ;;  %v4527_v7 = vld [vmem:[#allocation5 + $0x40] sm:$0xff] }
0x1126   :  { %4290 = vrot.lane.b32.xlu0 %v3866_v60, %s6873_s7  ;;  %v4528_v60 = vld [vmem:[#allocation5 + $0x48] sm:$0xff] }
0x1128   :  { %v5902_v8 = vpop.f32.mrb[46].mxu1 }
0x1129   :  { %4300 = vrot.lane.b32.xlu1 %v5902_v8, %s6885_s14  ;;  %v3947_v46 = vpop.f32.mrb[47].mxu1  ;;  %v6334_v8 = vpack.c.bf16 %v4528_v60, %v4527_v7 }
0x112a   :  { %4298 = vrot.lane.b32.xlu0 %v3947_v46, %s6885_s14  ;;  %v4529_v46 = vld [vmem:[#allocation5 + $0x50] sm:$0xff] }
0x112b   :  { %6335 = vmatprep.subr.bf16.mxu1 %v6334_v8 }
0x112c   :  { %v5909_v15 = vpop.f32.mrb[40].mxu0  ;;  %6337 = vmatpush3.bf16.msra.mxu1 %v6334_v8 }
0x112d   :  { %v4028_v38 = vpop.f32.mrb[41].mxu0 }
0x114c   :  { %v5916_v14 = vpop.f32.mrb[48].mxu1 }
0x114d   :  { %4314 = vrot.lane.b32.xlu1 %v5916_v14, %s6880_s1  ;;  %v4109_v10 = vpop.f32.mrb[49].mxu1  ;;  %v4531_v14 = vld [vmem:[#allocation5 + $0x60] sm:$0xff] }
0x114e   :  { %4312 = vrot.lane.b32.xlu0 %v4109_v10, %s6880_s1  ;;  %v4532_v10 = vld [vmem:[#allocation5 + $0x68] sm:$0xff] }
0x1151   :  { %v5923_v43 = vpop.f32.mrb[42].mxu0 }
0x1152   :  { %v4190_v61 = vpop.f32.mrb[43].mxu0  ;;  %4322 = vrot.lane.b32.xlu1 %v5923_v43, %s6873_s7  ;;  %v4533_v43 = vld [vmem:[#allocation5 + $0x70] sm:$0xff] }
0x1153   :  { %4320 = vrot.lane.b32.xlu0 %v4190_v61, %s6873_s7  ;;  %v6342_v61 = vpack.c.bf16 %v4532_v10, %v4531_v14 }
0x1185   :  { %v5930_v47 = vpop.f32.mrb[50].mxu1 }
0x1186   :  { %4330 = vrot.lane.b32.xlu1 %v5930_v47, %s6885_s14  ;;  %v4271_v11 = vpop.f32.mrb[51].mxu1  ;;  %v4534_v47 = vld [vmem:[#allocation5 + $0x78] sm:$0xff] }
0x1187   :  { %4328 = vrot.lane.b32.xlu0 %v4271_v11, %s6885_s14  ;;  %v6346_v11 = vpack.c.bf16 %v4534_v47, %v4533_v43 }
0x1193   :  { %v4285_v31 = vpop.permute.xlu1 %4284 }
0x1194   :  { %v4283_v40 = vpop.permute.xlu0 %4282  ;;  %v4305_v26 = vsel %vm196_vm2, %v5881_v1, %v4285_v31 }
0x1195   :  { %v4304_v45 = vsel %vm196_vm2, %v3704_v57, %v4283_v40 }
0x1197   :  { %v4293_v35 = vpop.permute.xlu1 %4292 }
0x1198   :  { %v4291_v33 = vpop.permute.xlu0 %4290  ;;  %v4307_v25 = vsel %vm205_vm5, %v4305_v26, %v4293_v35 }
0x1199   :  { %v4306_v39 = vsel %vm205_vm5, %v4304_v45, %v4291_v33 }
0x119b   :  { %v4301_v56 = vpop.permute.xlu1 %4300 }
0x119c   :  { %v4299_v20 = vpop.permute.xlu0 %4298  ;;  %v4309_v5 = vsel %vm2049_vm9, %v4307_v25, %v4301_v56 }
0x119d   :  { %v4308_v50 = vsel %vm2049_vm9, %v4306_v39, %v4299_v20 }
0x119e   :  { %5947 = vmatprep.mubr.msk.f32.mxu0 %vm331_vm7, %v4308_v50  ;;  %v5335_v50 = vld [vmem:[%s8218_s8 + $0x80] sm:$0xff] }
0x119f   :  { %5948 = vmatmul.mubr.msk.f32.vlgmr.msra.gmra.mrb[44].mxu0 %vm331_vm7, %v4309_v5  ;;  %v5336_v5 = vld [vmem:[%s8218_s8 + $0x88] sm:$0xff] }
0x11bf   :  { %v4315_v54 = vpop.permute.xlu1 %4314 }
0x11c0   :  { %v4313_v18 = vpop.permute.xlu0 %4312  ;;  %v4335_v6 = vsel %vm196_vm2, %v5909_v15, %v4315_v54  ;;  %v4530_v15 = vld [vmem:[#allocation5 + $0x58] sm:$0xff]  ;;  %v5337_v54 = vld [vmem:[%s8218_s8 + $0x90] sm:$0xff] }
0x11c1   :  { %v4334_v4 = vsel %vm196_vm2, %v4028_v38, %v4313_v18  ;;  %v6338_v38 = vpack.c.bf16 %v4530_v15, %v4529_v46  ;;  %v6350_v18 = vpack.c.bf16 %v5336_v5, %v5335_v50  ;;  %v5349_v15 = vld [vmem:[%s8218_s8 + $0xf0] sm:$0xff] }
0x11c3   :  { %6339 = vmatprep.subr.bf16.mxu1 %v6338_v38  ;;  %6351 = vmatprep.subr.bf16.mxu0 %v6350_v18 }
0x11c4   :  { %v4323_v30 = vpop.permute.xlu1 %4322  ;;  %6341 = vmatpush3.bf16.msra.mxu1 %v6338_v38  ;;  %6353 = vmatpush3.bf16.msra.mxu0 %v6350_v18  ;;  %v5350_v38 = vld [vmem:[%s8218_s8 + $0xf8] sm:$0xff] }
0x11c5   :  { %v4321_v22 = vpop.permute.xlu0 %4320  ;;  %v4337_v9 = vsel %vm205_vm5, %v4335_v6, %v4323_v30  ;;  %6343 = vmatprep.subr.bf16.mxu1 %v6342_v61  ;;  %v5338_v30 = vld [vmem:[%s8218_s8 + $0x98] sm:$0xff]  ;;  %v6378_v14 = vpack.c.bf16 %v5350_v38, %v5349_v15 }
0x11c6   :  { %v4336_v63 = vsel %vm205_vm5, %v4334_v4, %v4321_v22  ;;  %v6354_v22 = vpack.c.bf16 %v5338_v30, %v5337_v54  ;;  %v5339_v4 = vld [vmem:[%s8218_s8 + $0xa0] sm:$0xff]  ;;  %v5352_v30 = vld [vmem:[%s8216_s6 + $0xc] ss:$0 sm:$0xff] }
0x11c8   :  { %6345 = vmatpush3.bf16.msra.mxu1 %v6342_v61  ;;  %6355 = vmatprep.subr.bf16.mxu0 %v6354_v22 }
0x11c9   :  { %6347 = vmatprep.subr.bf16.mxu1 %v6346_v11  ;;  %6357 = vmatpush3.bf16.msra.mxu0 %v6354_v22 }
0x11cc   :  { %6349 = vmatpush3.bf16.msra.mxu1 %v6346_v11 }
0x11f8   :  { %v4331_v34 = vpop.permute.xlu1 %4330 }
0x11f9   :  { %v4329_v37 = vpop.permute.xlu0 %4328  ;;  %v4339_v19 = vsel %vm2049_vm9, %v4337_v9, %v4331_v34  ;;  %v5340_v34 = vld [vmem:[%s8218_s8 + $0xa8] sm:$0xff] }
0x11fa   :  { %v4338_v28 = vsel %vm2049_vm9, %v4336_v63, %v4329_v37  ;;  %v6358_v6 = vpack.c.bf16 %v5340_v34, %v5339_v4  ;;  %v5341_v63 = vld [vmem:[%s8218_s8 + $0xb0] sm:$0xff]  ;;  %v5342_v37 = vld [vmem:[%s8218_s8 + $0xb8] sm:$0xff] }
0x11fb   :  { %5950 = vmatprep.mubr.msk.f32.mxu0 %vm331_vm7, %v4338_v28 }
0x11fc   :  { %5951 = vmatmul.mubr.msk.f32.gmra.mrb[46].mxu0 %vm331_vm7, %v4339_v19  ;;  %6359 = vmatprep.subr.bf16.mxu0 %v6358_v6 }
0x11fd   :  { %6361 = vmatpush3.bf16.msra.mxu0 %v6358_v6 }
0x1272   :  { %v5949_v41 = vpop.f32.mrb[44].mxu0 }
0x1273   :  { %v4439_v3 = vadd.f32 %v5949_v41, %v5320_v12  ;;  %v4433_v55 = vpop.f32.mrb[45].mxu0 }
0x1274   :  { %v4434_v29 = vadd.f32 %v5320_v12, %v4433_v55  ;;  %v5344_v55 = vld [vmem:[%s8218_s8 + $0xc8] sm:$0xff] }
0x1275   :  { %v4453_v42 = vadd.f32 %v4439_v3, %v7656_v49  ;;  %v5343_v3 = vld [vmem:[%s8218_s8 + $0xc0] sm:$0xff] }
0x1276   :  { %v4452_v13 = vadd.f32 %v4434_v29, %v7651_v44 }
0x1277   :  { %v4461_v58 = vsel %vm331_vm7, %v4453_v42, 0.0 }
0x1278   :  { %4462 = vadd.xlane.f32.xlu1 %v4461_v58  ;;  %v4458_v23 = vsel %vm331_vm7, %v4452_v13, 0.0  ;;  %v5345_v58 = vld [vmem:[%s8218_s8 + $0xd0] sm:$0xff] }
0x1279   :  { %4459 = vadd.xlane.f32.xlu0 %v4458_v23  ;;  %v5346_v23 = vld [vmem:[%s8218_s8 + $0xd8] sm:$0xff] }
0x12cf   :  { %v5952_v27 = vpop.f32.mrb[46].mxu0 }
0x12d0   :  { %v4443_v51 = vpop.f32.mrb[47].mxu0  ;;  %v4449_v17 = vadd.f32 %v5952_v27, %v5320_v12  ;;  %v6370_v27 = vpack.c.bf16 %v5346_v23, %v5345_v58 }
0x12d1   :  { %v4444_v36 = vadd.f32 %v5320_v12, %v4443_v51  ;;  %v6362_v12 = vpack.c.bf16 %v5342_v37, %v5341_v63  ;;  %v5347_v51 = vld [vmem:[%s8218_s8 + $0xe0] sm:$0xff] }
0x12d2   :  { %v4455_v59 = vadd.f32 %v4449_v17, %v7666_v0  ;;  %v5348_v17 = vld [vmem:[%s8218_s8 + $0xe8] sm:$0xff] }
0x12d3   :  { %v4454_v48 = vadd.f32 %v4444_v36, %v7661_v52  ;;  %6363 = vmatprep.subr.bf16.mxu0 %v6362_v12  ;;  %v6374_v36 = vpack.c.bf16 %v5348_v17, %v5347_v51 }
0x12d4   :  { %v4467_v49 = vsel %vm331_vm7, %v4455_v59, 0.0  ;;  %6365 = vmatpush3.bf16.msra.mxu0 %v6362_v12 }
0x12d5   :  { %v4464_v24 = vsel %vm331_vm7, %v4454_v48, 0.0 }
0x12d6   :  { %4465 = vadd.xlane.f32.xlu0 %v4464_v24 }
0x12da   :  { %4468 = vadd.xlane.f32.xlu0 %v4467_v49 }
0x1305   :  { %v4463_v44 = vpop.xlane.xlu1 %4462 }
0x1306   :  { %v4471_v21 = vmul.f32 0.015625, %v4463_v44  ;;  %v4460_v62 = vpop.xlane.xlu0 %4459 }
0x1307   :  { %v4470_v53 = vmul.f32 0.015625, %v4460_v62 }
0x1308   :  { %v8026_v1 = vsub.f32 %v4453_v42, %v4471_v21  ;;  %v5328_v21 = vld [vmem:[%s8216_s6 + $0xa] ss:$0 sm:$0xff] }
0x1309   :  { %v8028_v57 = vsub.f32 %v4452_v13, %v4470_v53  ;;  %v6366_v13 = vpack.c.bf16 %v5344_v55, %v5343_v3 }
0x130a   :  { %v4479_v32 = vmul.f32 %v8026_v1, %v8026_v1 }
0x130b   :  { %v4478_v52 = vmul.f32 %v8028_v57, %v8028_v57  ;;  %6367 = vmatprep.subr.bf16.mxu0 %v6366_v13 }
0x130c   :  { %v4485_v0 = vsel %vm331_vm7, %v4479_v32, 0.0  ;;  %6369 = vmatpush3.bf16.msra.mxu0 %v6366_v13 }
0x130d   :  { %4486 = vadd.xlane.f32.xlu0 %v4485_v0  ;;  %v4482_v2 = vsel %vm331_vm7, %v4478_v52, 0.0  ;;  %6371 = vmatprep.subr.bf16.mxu0 %v6370_v27 }
0x130e   :  { %4483 = vadd.xlane.f32.xlu1 %v4482_v2 }
0x1310   :  { %6373 = vmatpush3.bf16.msra.mxu0 %v6370_v27 }
0x1311   :  { %6375 = vmatprep.subr.bf16.mxu0 %v6374_v36 }
0x1314   :  { %6377 = vmatpush3.bf16.msra.mxu0 %v6374_v36 }
0x1315   :  { %6379 = vmatprep.subr.bf16.mxu0 %v6378_v14 }
0x1318   :  { %6381 = vmatpush3.bf16.msra.mxu0 %v6378_v14 }
0x1363   :  { %v4466_v31 = vpop.xlane.xlu0 %4465 }
0x1364   :  { %v4472_v40 = vmul.f32 0.015625, %v4466_v31 }
0x1366   :  { %v8036_v35 = vsub.f32 %v4454_v48, %v4472_v40  ;;  %v5330_v40 = vld [vmem:[%s8216_s6 + $0xb] ss:$0 sm:$0xff] }
0x1367   :  { %v4469_v33 = vpop.xlane.xlu0 %4468 }
0x1368   :  { %v4473_v45 = vmul.f32 0.015625, %v4469_v33  ;;  %v4480_v56 = vmul.f32 %v8036_v35, %v8036_v35 }
0x136a   :  { %v8040_v26 = vsub.f32 %v4455_v59, %v4473_v45  ;;  %v4488_v39 = vsel %vm331_vm7, %v4480_v56, 0.0  ;;  %v5327_v59 = vld [vmem:[%s8216_s6 + $0x9] ss:$0 sm:$0xff] }
0x136b   :  { %4489 = vadd.xlane.f32.xlu1 %v4488_v39 }
0x136c   :  { %v4481_v20 = vmul.f32 %v8040_v26, %v8040_v26 }
0x136e   :  { %v4491_v25 = vsel %vm331_vm7, %v4481_v20, 0.0 }
0x136f   :  { %4492 = vadd.xlane.f32.xlu0 %v4491_v25 }
0x139a   :  { %v4487_v9 = vpop.xlane.xlu0 %4486 }
0x139b   :  { %v4495_v28 = vmul.f32 0.015625, %v4487_v9  ;;  %v4484_v19 = vpop.xlane.xlu1 %4483 }
0x139c   :  { %v4494_v41 = vmul.f32 0.015625, %v4484_v19 }
0x139d   :  { %v4499_v29 = vadd.f32 1e-05, %v4495_v28 }
0x139e   :  { %v4498_v42 = vadd.f32 1e-05, %v4494_v41 }
0x139f   :  { %6739 = vrsqrt.f32 %v4499_v29 }
0x13a0   :  { %6741 = vrsqrt.f32 %v4498_v42 }
0x13a9   :  { %v6740_v48 = vpop.eup %6739 }
0x13aa   :  { %v6742_v24 = vpop.eup %6741  ;;  %v4507_v49 = vmul.f32 %v6740_v48, %v8026_v1 }
0x13ab   :  { %v4506_v44 = vmul.f32 %v6742_v24, %v8028_v57 }
0x13ac   :  { %v4515_v62 = vmul.f32 %v5327_v59, %v4507_v49 }
0x13ad   :  { %v4514_v53 = vmul.f32 %v5327_v59, %v4506_v44  ;;  %v4822_v44 = vld [vmem:[#allocation7] sm:$0xff] }
0x13ae   :  { %v4523_v52 = vadd.f32 %v5328_v21, %v4515_v62 }
0x13af   :  { %v4522_v32 = vadd.f32 %v5328_v21, %v4514_v53  ;;  %v4824_v53 = vld [vmem:[#allocation7 + $0x10] sm:$0xff] }
0x13b1   :  { %5969 = vmatprep.mubr.msk.f32.mxu1 %vm331_vm7, %v4522_v32 }
0x13b2   :  { %5970 = vmatmul.mubr.msk.f32.vlgmr.msra.gmra.mrb[52].mxu1 %vm331_vm7, %v4523_v52 }
0x13f8   :  { %v4490_v0 = vpop.xlane.xlu1 %4489 }
0x13f9   :  { %v4496_v2 = vmul.f32 0.015625, %v4490_v0  ;;  %v4826_v0 = vld [vmem:[#allocation7 + $0x20] sm:$0xff] }
0x13fb   :  { %v4500_v1 = vadd.f32 1e-05, %v4496_v2  ;;  %v4827_v2 = vld [vmem:[#allocation7 + $0x28] sm:$0xff] }
0x13fc   :  { %v4493_v7 = vpop.xlane.xlu0 %4492 }
0x13fd   :  { %6743 = vrsqrt.f32 %v4500_v1  ;;  %v4497_v57 = vmul.f32 0.015625, %v4493_v7  ;;  %v4828_v1 = vld [vmem:[#allocation7 + $0x30] sm:$0xff]  ;;  %v6390_v7 = vpack.c.bf16 %v4827_v2, %v4826_v0  ;;  %v5363_v2 = vld [vmem:[%s8220_s10 + $0x2] ss:$0 sm:$0xff] }
0x13ff   :  { %v4501_v60 = vadd.f32 1e-05, %v4497_v57  ;;  %v4829_v57 = vld [vmem:[#allocation7 + $0x38] sm:$0xff] }
0x1401   :  { %6745 = vrsqrt.f32 %v4501_v60  ;;  %v6394_v60 = vpack.c.bf16 %v4829_v57, %v4828_v1 }
0x1407   :  { %v6744_v8 = vpop.eup %6743 }
0x1408   :  { %v4508_v46 = vmul.f32 %v6744_v8, %v8036_v35 }
0x140a   :  { %v4516_v10 = vmul.f32 %v5327_v59, %v4508_v46 }
0x140b   :  { %v6746_v43 = vpop.eup %6745 }
0x140c   :  { %v4524_v61 = vadd.f32 %v5328_v21, %v4516_v10  ;;  %v4509_v47 = vmul.f32 %v6746_v43, %v8040_v26 }
0x140e   :  { %5972 = vmatprep.mubr.msk.f32.mxu1 %vm331_vm7, %v4524_v61  ;;  %v4517_v11 = vmul.f32 %v5327_v59, %v4509_v47 }
0x1410   :  { %v4525_v31 = vadd.f32 %v5328_v21, %v4517_v11  ;;  %v4823_v21 = vld [vmem:[#allocation7 + $0x8] sm:$0xff] }
0x1411   :  { %v6382_v62 = vpack.c.bf16 %v4823_v21, %v4822_v44 }
0x1412   :  { %5973 = vmatmul.mubr.msk.f32.gmra.mrb[54].mxu1 %vm331_vm7, %v4525_v31 }
0x1413   :  { %6383 = vmatprep.subr.bf16.mxu1 %v6382_v62 }
0x1414   :  { %6385 = vmatpush3.bf16.msra.mxu1 %v6382_v62 }
0x1485   :  { %v5971_v35 = vpop.f32.mrb[52].mxu1 }
0x1486   :  { %v4624_v33 = vadd.f32 %v5971_v35, %v5330_v40  ;;  %v4618_v45 = vpop.f32.mrb[53].mxu1 }
0x1487   :  { %v4619_v56 = vadd.f32 %v5330_v40, %v4618_v45 }
0x1488   :  { %v4638_v20 = vmax.f32 %v4624_v33, 0.0 }
0x1489   :  { %v4637_v39 = vmax.f32 %v4619_v56, 0.0 }
0x148b   :  { %6007 = vmatprep.mubr.f32.mxu0 %v4637_v39 }
0x148c   :  { %6008 = vmatmul.mubr.f32.vlgmr.msra.gmra.mrb[48].mxu0 %v4638_v20  ;;  %v5355_v20 = vld [vmem:[%s8216_s6 + $0xd] ss:$0 sm:$0xff] }
0x14e5   :  { %v5974_v26 = vpop.f32.mrb[54].mxu1 }
0x14e6   :  { %v4634_v25 = vadd.f32 %v5974_v26, %v5330_v40  ;;  %v4628_v50 = vpop.f32.mrb[55].mxu1 }
0x14e7   :  { %v4629_v5 = vadd.f32 %v5330_v40, %v4628_v50 }
0x14e8   :  { %v4640_v18 = vmax.f32 %v4634_v25, 0.0 }
0x14e9   :  { %v4639_v54 = vmax.f32 %v4629_v5, 0.0  ;;  %v5356_v5 = vld [vmem:[%s8216_s6 + $0xe] ss:$0 sm:$0xff] }
0x14eb   :  { %6010 = vmatprep.mubr.f32.mxu0 %v4639_v54 }
0x14ec   :  { %6011 = vmatmul.mubr.f32.gmra.mrb[50].mxu0 %v4640_v18 }
0x155f   :  { %v6009_v22 = vpop.f32.mrb[48].mxu0 }
0x1560   :  { %v4735_v4 = vadd.f32 %v6009_v22, %v5352_v30  ;;  %v4729_v34 = vpop.f32.mrb[49].mxu0 }
0x1561   :  { %v4730_v6 = vadd.f32 %v5352_v30, %v4729_v34 }
0x1562   :  { %v4749_v63 = vadd.f32 %v4735_v4, %v4523_v52 }
0x1563   :  { %v4748_v37 = vadd.f32 %v4730_v6, %v4522_v32  ;;  %v4825_v32 = vld [vmem:[#allocation7 + $0x18] sm:$0xff] }
0x1564   :  { %v4757_v9 = vsel %vm331_vm7, %v4749_v63, 0.0  ;;  %v6386_v52 = vpack.c.bf16 %v4825_v32, %v4824_v53 }
0x1565   :  { %4758 = vadd.xlane.f32.xlu0 %v4757_v9  ;;  %v4754_v28 = vsel %vm331_vm7, %v4748_v37, 0.0 }
0x1566   :  { %4755 = vadd.xlane.f32.xlu1 %v4754_v28  ;;  %6387 = vmatprep.subr.bf16.mxu1 %v6386_v52 }
0x1567   :  { %6389 = vmatpush3.bf16.msra.mxu1 %v6386_v52 }
0x1568   :  { %6391 = vmatprep.subr.bf16.mxu1 %v6390_v7 }
0x156b   :  { %6393 = vmatpush3.bf16.msra.mxu1 %v6390_v7 }
0x156c   :  { %6395 = vmatprep.subr.bf16.mxu1 %v6394_v60 }
0x156f   :  { %6397 = vmatpush3.bf16.msra.mxu1 %v6394_v60 }
0x15bf   :  { %v6012_v19 = vpop.f32.mrb[50].mxu0 }
0x15c0   :  { %v4745_v12 = vadd.f32 %v6012_v19, %v5352_v30  ;;  %v4739_v41 = vpop.f32.mrb[51].mxu0 }
0x15c1   :  { %v4740_v3 = vadd.f32 %v5352_v30, %v4739_v41 }
0x15c2   :  { %v4751_v55 = vadd.f32 %v4745_v12, %v4525_v31 }
0x15c3   :  { %v4750_v29 = vadd.f32 %v4740_v3, %v4524_v61 }
0x15c4   :  { %v4763_v42 = vsel %vm331_vm7, %v4751_v55, 0.0 }
0x15c5   :  { %4764 = vadd.xlane.f32.xlu0 %v4763_v42  ;;  %v4760_v13 = vsel %vm331_vm7, %v4750_v29, 0.0 }
0x15c6   :  { %4761 = vadd.xlane.f32.xlu1 %v4760_v13  ;;  %v5357_v13 = vld [vmem:[%s8220_s10] ss:$0 sm:$0xff] }
0x15f2   :  { %v4759_v58 = vpop.xlane.xlu0 %4758 }
0x15f3   :  { %v4767_v23 = vmul.f32 0.015625, %v4759_v58  ;;  %v4756_v27 = vpop.xlane.xlu1 %4755 }
0x15f4   :  { %v4766_v51 = vmul.f32 0.015625, %v4756_v27 }
0x15f5   :  { %v4771_v17 = vsub.f32 %v4749_v63, %v4767_v23 }
0x15f6   :  { %v4770_v36 = vsub.f32 %v4748_v37, %v4766_v51 }
0x15f7   :  { %v4775_v48 = vmul.f32 %v4771_v17, %v4771_v17 }
0x15f8   :  { %v4774_v59 = vmul.f32 %v4770_v36, %v4770_v36 }
0x15f9   :  { %v4781_v24 = vsel %vm331_vm7, %v4775_v48, 0.0 }
0x15fa   :  { %4782 = vadd.xlane.f32.xlu0 %v4781_v24  ;;  %v4778_v49 = vsel %vm331_vm7, %v4774_v59, 0.0 }
0x15fb   :  { %4779 = vadd.xlane.f32.xlu1 %v4778_v49 }
0x1652   :  { %v4765_v8 = vpop.xlane.xlu0 %4764 }
0x1653   :  { %v4769_v46 = vmul.f32 0.015625, %v4765_v8  ;;  %v4762_v15 = vpop.xlane.xlu1 %4761 }
0x1654   :  { %v4768_v38 = vmul.f32 0.015625, %v4762_v15 }
0x1655   :  { %v4773_v14 = vsub.f32 %v4751_v55, %v4769_v46 }
0x1656   :  { %v4772_v10 = vsub.f32 %v4750_v29, %v4768_v38 }
0x1657   :  { %v4777_v43 = vmul.f32 %v4773_v14, %v4773_v14 }
0x1658   :  { %v4776_v61 = vmul.f32 %v4772_v10, %v4772_v10 }
0x1659   :  { %v4787_v47 = vsel %vm331_vm7, %v4777_v43, 0.0 }
0x165a   :  { %4788 = vadd.xlane.f32.xlu0 %v4787_v47  ;;  %v4784_v11 = vsel %vm331_vm7, %v4776_v61, 0.0 }
0x165b   :  { %4785 = vadd.xlane.f32.xlu1 %v4784_v11 }
0x1687   :  { %v4783_v31 = vpop.xlane.xlu0 %4782 }
0x1688   :  { %v4791_v40 = vmul.f32 0.015625, %v4783_v31  ;;  %v4780_v35 = vpop.xlane.xlu1 %4779 }
0x1689   :  { %v4790_v33 = vmul.f32 0.015625, %v4780_v35 }
0x168a   :  { %v4795_v45 = vadd.f32 1e-05, %v4791_v40 }
0x168b   :  { %v4794_v56 = vadd.f32 1e-05, %v4790_v33 }
0x168c   :  { %6747 = vrsqrt.f32 %v4795_v45 }
0x168d   :  { %6749 = vrsqrt.f32 %v4794_v56 }
0x1696   :  { %v6748_v39 = vpop.eup %6747 }
0x1697   :  { %v6750_v26 = vpop.eup %6749  ;;  %v4803_v25 = vmul.f32 %v6748_v39, %v4771_v17  ;;  %v5362_v17 = vld [vmem:[%s8220_s10 + $0x1] ss:$0 sm:$0xff] }
0x1698   :  { %v4802_v50 = vmul.f32 %v6750_v26, %v4770_v36 }
0x1699   :  { %v4811_v54 = vmul.f32 %v5355_v20, %v4803_v25 }
0x169a   :  { %v4810_v18 = vmul.f32 %v5355_v20, %v4802_v50 }
0x169b   :  { %v8130_v22 = vadd.f32 %v5356_v5, %v4811_v54 }
0x169c   :  { %v8128_v30 = vadd.f32 %v5356_v5, %v4810_v18 }
0x169e   :  { %6029 = vmatprep.mubr.msk.f32.mxu1 %vm331_vm7, %v8128_v30 }
0x169f   :  { %6030 = vmatmul.mubr.msk.f32.vlgmr.msra.gmra.mrb[56].mxu1 %vm331_vm7, %v8130_v22 }
0x16e7   :  { %v4789_v4 = vpop.xlane.xlu0 %4788 }
0x16e8   :  { %v4793_v34 = vmul.f32 0.015625, %v4789_v4  ;;  %v4786_v6 = vpop.xlane.xlu1 %4785 }
0x16e9   :  { %v4792_v63 = vmul.f32 0.015625, %v4786_v6 }
0x16ea   :  { %v4797_v37 = vadd.f32 1e-05, %v4793_v34 }
0x16eb   :  { %v4796_v9 = vadd.f32 1e-05, %v4792_v63 }
0x16ec   :  { %6751 = vrsqrt.f32 %v4797_v37 }
0x16ed   :  { %6753 = vrsqrt.f32 %v4796_v9 }
0x16f6   :  { %v6752_v28 = vpop.eup %6751 }
0x16f7   :  { %v6754_v19 = vpop.eup %6753  ;;  %v4805_v12 = vmul.f32 %v6752_v28, %v4773_v14 }
0x16f8   :  { %v4804_v41 = vmul.f32 %v6754_v19, %v4772_v10 }
0x16f9   :  { %v4813_v3 = vmul.f32 %v5355_v20, %v4805_v12 }
0x16fa   :  { %v4812_v55 = vmul.f32 %v5355_v20, %v4804_v41 }
0x16fb   :  { %v8138_v42 = vadd.f32 %v5356_v5, %v4813_v3 }
0x16fc   :  { %v8136_v29 = vadd.f32 %v5356_v5, %v4812_v55 }
0x16fe   :  { %6032 = vmatprep.mubr.msk.f32.mxu1 %vm331_vm7, %v8136_v29 }
0x16ff   :  { %6033 = vmatmul.mubr.msk.f32.gmra.mrb[58].mxu1 %vm331_vm7, %v8138_v42 }
0x1700   :  { %6051 = vmatprep.mubr.msk.f32.mxu1 %vm6887_vm11, %v6879_v16 }
0x1772   :  { %v6031_v58 = vpop.f32.mrb[56].mxu1 }
0x1773   :  { %v4919_v23 = vadd.f32 %v6031_v58, %v5357_v13  ;;  %v4913_v27 = vpop.f32.mrb[57].mxu1 }
0x1774   :  { %v4914_v51 = vadd.f32 %v5357_v13, %v4913_v27 }
0x1775   :  { %6755 = vtanh.f32 %v4919_v23 }
0x1776   :  { %6757 = vtanh.f32 %v4914_v51 }
0x177f   :  { %v6756_v36 = vpop.eup %6755 }
0x1780   :  { %v6758_v48 = vpop.eup %6757  ;;  %v4942_v59 = vmul.f32 %v6756_v36, %v5362_v17 }
0x1781   :  { %v4941_v24 = vmul.f32 %v6758_v48, %v5362_v17 }
0x1782   :  { %4947 = vadd.xlane.f32.xlu0 %v4942_v59 }
0x1783   :  { %4945 = vadd.xlane.f32.xlu1 %v4941_v24 }
0x17d2   :  { %v6034_v49 = vpop.f32.mrb[58].mxu1 }
0x17d3   :  { %v4929_v44 = vadd.f32 %v6034_v49, %v5357_v13  ;;  %v4923_v21 = vpop.f32.mrb[59].mxu1 }
0x17d4   :  { %v4924_v62 = vadd.f32 %v5357_v13, %v4923_v21 }
0x17d5   :  { %6759 = vtanh.f32 %v4929_v44 }
0x17d6   :  { %6761 = vtanh.f32 %v4924_v62 }
0x17df   :  { %v6760_v53 = vpop.eup %6759 }
0x17e0   :  { %v6762_v32 = vpop.eup %6761  ;;  %v4944_v52 = vmul.f32 %v6760_v53, %v5362_v17 }
0x17e1   :  { %v4943_v0 = vmul.f32 %v6762_v32, %v5362_v17 }
0x17e2   :  { %4951 = vadd.xlane.f32.xlu0 %v4944_v52 }
0x17e3   :  { %4949 = vadd.xlane.f32.xlu1 %v4943_v0 }
0x180f   :  { %v4948_v1 = vpop.xlane.xlu0 %4947 }
0x1810   :  { %v4959_v7 = vadd.f32 %v5363_v2, %v4948_v1  ;;  %v4946_v57 = vpop.xlane.xlu1 %4945 }
0x1811   :  { %v4958_v60 = vadd.f32 %v5363_v2, %v4946_v57 }
0x1812   :  { %v4964_v8 = vsel %vm4962_vm10, %v4959_v7, -inf }
0x1813   :  { %v4963_v46 = vsel %vm4962_vm10, %v4958_v60, -inf }
0x1814   :  { %v4965_v15 = vmax.f32 %v4963_v46, %v4964_v8  ;;  %v5060_v8 = vld [vmem:[%s8221_s11 + $0x8] sm:$0xff] }
0x1816   :  { %v4966_v38 = vrot.slane %v4965_v15, 4 }
0x1818   :  { %v4967_v14 = vmax.f32 %v4965_v15, %v4966_v38  ;;  %v6886_v15 = vmov 0.0|0.0   ;;  %v5061_v38 = vld [vmem:[%s8221_s11 + $0x10] sm:$0xff] }
0x1819   :  { %6398 = vmatprep.subr.bf16.mxu1 %v6886_v15 }
0x181a   :  { %v4968_v10 = vrot.slane %v4967_v14, 2 }
0x181c   :  { %v4969_v43 = vmax.f32 %v4967_v14, %v4968_v10  ;;  %v5062_v14 = vld [vmem:[%s8221_s11 + $0x18] sm:$0xff] }
0x181d   :  { %v6402_v10 = vpack.c.bf16 %v5062_v14, %v5061_v38 }
0x181e   :  { %v4970_v61 = vrot.slane %v4969_v43, 1 }
0x1820   :  { %v4971_v47 = vmax.f32 %v4969_v43, %v4970_v61  ;;  %v5063_v43 = vld [vmem:[%s8221_s11 + $0x20] sm:$0xff]  ;;  %v5064_v61 = vld [vmem:[%s8221_s11 + $0x28] sm:$0xff] }
0x1822   :  { %v4981_v11 = vsub.f32 %v4958_v60, %v4971_v47  ;;  %v4982_v31 = vsub.f32 %v4959_v7, %v4971_v47  ;;  %v5059_v60 = vld [vmem:[%s8221_s11] sm:$0xff]  ;;  %v6405_v47 = vpack.c.bf16 %v5064_v61, %v5063_v43 }
0x1823   :  { %v6399_v46 = vpack.c.bf16 %v5060_v8, %v5059_v60 }
0x1824   :  { %v4985_v40 = vmul.f32 1.442695, %v4981_v11  ;;  %v4987_v35 = vmul.f32 1.442695, %v4982_v31  ;;  %v5065_v11 = vld [vmem:[%s8221_s11 + $0x30] sm:$0xff]  ;;  %v5066_v31 = vld [vmem:[%s8221_s11 + $0x38] sm:$0xff] }
0x1825   :  { %6400 = vmatpush3.bf16.msra.mxu1 %v6399_v46 }
0x1826   :  { %6763 = vpow2.f32 %v4985_v40  ;;  %6401 = vmatprep.subr.bf16.mxu1 %v6886_v15  ;;  %v6408_v40 = vpack.c.bf16 %v5066_v31, %v5065_v11 }
0x1827   :  { %6765 = vpow2.f32 %v4987_v35 }
0x1829   :  { %6403 = vmatpush3.bf16.msra.mxu1 %v6402_v10 }
0x182a   :  { %6404 = vmatprep.subr.bf16.mxu1 %v6886_v15 }
0x182d   :  { %6406 = vmatpush3.bf16.msra.mxu1 %v6405_v47 }
0x182e   :  { %6407 = vmatprep.subr.bf16.mxu1 %v6886_v15 }
0x1830   :  { %v6764_v33 = vpop.eup %6763 }
0x1831   :  { %v6766_v45 = vpop.eup %6765  ;;  %v4993_v56 = vsel %vm4962_vm10, %v6764_v33, 0.0  ;;  %6409 = vmatpush3.bf16.msra.mxu1 %v6408_v40 }
0x1832   :  { %v4994_v39 = vsel %vm4962_vm10, %v6766_v45, 0.0 }
0x1833   :  { %v4995_v20 = vadd.f32 %v4994_v39, %v4993_v56 }
0x1835   :  { %v4996_v26 = vrot.slane %v4995_v20, 4 }
0x1837   :  { %v4997_v25 = vadd.f32 %v4996_v26, %v4995_v20 }
0x1839   :  { %v4998_v50 = vrot.slane %v4997_v25, 2 }
0x183b   :  { %v4999_v5 = vadd.f32 %v4998_v50, %v4997_v25 }
0x183d   :  { %v5000_v54 = vrot.slane %v4999_v5, 1 }
0x183f   :  { %v5001_v18 = vadd.f32 %v5000_v54, %v4999_v5 }
0x1841   :  { %6767 = vrcp.f32 %v5001_v18 }
0x184b   :  { %v6768_v4 = vpop.eup %6767 }
0x184c   :  { %v5014_v34 = vmul.f32 %v6768_v4, %v6766_v45  ;;  %v5013_v6 = vmul.f32 %v6768_v4, %v6764_v33 }
0x184e   :  { %5024 = vperm.xlu0 %6586, %v5014_v34   ;;  %5019 = vperm.xlu1 %6585, %v5013_v6  }
0x186f   :  { %v4952_v63 = vpop.xlane.xlu0 %4951 }
0x1870   :  { %v4961_v37 = vadd.f32 %v5363_v2, %v4952_v63  ;;  %v4950_v9 = vpop.xlane.xlu1 %4949 }
0x1871   :  { %v4960_v28 = vadd.f32 %v5363_v2, %v4950_v9 }
0x1872   :  { %v4973_v19 = vsel %vm4962_vm10, %v4961_v37, -inf }
0x1873   :  { %v4972_v12 = vsel %vm4962_vm10, %v4960_v28, -inf }
0x1874   :  { %v4974_v41 = vmax.f32 %v4972_v12, %v4973_v19 }
0x1876   :  { %v4975_v3 = vrot.slane %v4974_v41, 4 }
0x1878   :  { %v4976_v55 = vmax.f32 %v4974_v41, %v4975_v3 }
0x187a   :  { %v4977_v13 = vrot.slane %v4976_v55, 2 }
0x187c   :  { %v4978_v58 = vmax.f32 %v4976_v55, %v4977_v13 }
0x187e   :  { %v4979_v23 = vrot.slane %v4978_v58, 1 }
0x1880   :  { %v4980_v27 = vmax.f32 %v4978_v58, %v4979_v23 }
0x1882   :  { %v4983_v51 = vsub.f32 %v4960_v28, %v4980_v27  ;;  %v4984_v17 = vsub.f32 %v4961_v37, %v4980_v27 }
0x1884   :  { %v4989_v36 = vmul.f32 1.442695, %v4983_v51  ;;  %v4991_v48 = vmul.f32 1.442695, %v4984_v17 }
0x1886   :  { %6769 = vpow2.f32 %v4989_v36 }
0x1887   :  { %6771 = vpow2.f32 %v4991_v48 }
0x1890   :  { %v6770_v59 = vpop.eup %6769 }
0x1891   :  { %v6772_v24 = vpop.eup %6771  ;;  %v5002_v49 = vsel %vm4962_vm10, %v6770_v59, 0.0 }
0x1892   :  { %v5003_v44 = vsel %vm4962_vm10, %v6772_v24, 0.0 }
0x1893   :  { %v5004_v21 = vadd.f32 %v5003_v44, %v5002_v49 }
0x1895   :  { %v5005_v62 = vrot.slane %v5004_v21, 4 }
0x1897   :  { %v5006_v53 = vadd.f32 %v5005_v62, %v5004_v21 }
0x1899   :  { %v5007_v32 = vrot.slane %v5006_v53, 2 }
0x189b   :  { %v5008_v52 = vadd.f32 %v5007_v32, %v5006_v53 }
0x189d   :  { %v5009_v0 = vrot.slane %v5008_v52, 1 }
0x189f   :  { %v5010_v2 = vadd.f32 %v5009_v0, %v5008_v52 }
0x18a1   :  { %6773 = vrcp.f32 %v5010_v2 }
0x18ab   :  { %v6774_v1 = vpop.eup %6773 }
0x18ac   :  { %v5015_v7 = vmul.f32 %v6774_v1, %v6770_v59  ;;  %v5016_v57 = vmul.f32 %v6774_v1, %v6772_v24 }
0x18ae   :  { %5029 = vperm.xlu1 %6585, %v5015_v7  }
0x18b2   :  { %5034 = vperm.xlu1 %6585, %v5016_v57  }
0x18cd   :  { %v5020_v35 = vpop.permute.xlu1 %5019  ;;  %v5025_v33 = vpop.permute.xlu0 %5024 }
0x18ce   :  { %v5037_v45 = vmul.f32 %v5020_v35, %v8128_v30  ;;  %v5038_v56 = vmul.f32 %v5025_v33, %v8130_v22 }
0x18d0   :  { %v5041_v39 = vsel %vm331_vm7, %v5037_v45, 0.0  ;;  %v5042_v20 = vsel %vm331_vm7, %v5038_v56, 0.0 }
0x18d1   :  { %v5043_v26 = vadd.f32 %v5042_v20, %v5041_v39 }
0x18d3   :  { %v5044_v25 = vrot.slane %v5043_v26, 4 }
0x18d5   :  { %v5045_v54 = vadd.f32 %v5044_v25, %v5043_v26 }
0x18d7   :  { %v5046_v30 = vrot.slane %v5045_v54, 2 }
0x18d9   :  { %v5047_v63 = vadd.f32 %v5046_v30, %v5045_v54 }
0x18db   :  { %v5048_v28 = vrot.slane %v5047_v63, 1 }
0x18dd   :  { %v5049_v41 = vadd.f32 %v5048_v28, %v5047_v63 }
0x192d   :  { %v5030_v50 = vpop.permute.xlu1 %5029 }
0x192e   :  { %v5039_v5 = vmul.f32 %v5030_v50, %v8136_v29 }
0x1930   :  { %v5050_v4 = vsel %vm331_vm7, %v5039_v5, 0.0 }
0x1931   :  { %v5035_v18 = vpop.permute.xlu1 %5034 }
0x1932   :  { %v5040_v16 = vmul.f32 %v5035_v18, %v8138_v42  ;;  %v5364_v42 = vld [vmem:[%s8220_s10 + $0x3] ss:$0 sm:$0xff] }
0x1934   :  { %v5051_v34 = vsel %vm331_vm7, %v5040_v16, 0.0 }
0x1935   :  { %v5052_v6 = vadd.f32 %v5051_v34, %v5050_v4 }
0x1937   :  { %v5053_v22 = vrot.slane %v5052_v6, 4 }
0x1939   :  { %v5054_v37 = vadd.f32 %v5053_v22, %v5052_v6 }
0x193b   :  { %v5055_v9 = vrot.slane %v5054_v37, 2 }
0x193d   :  { %v5056_v19 = vadd.f32 %v5055_v9, %v5054_v37 }
0x193f   :  { %v5057_v12 = vrot.slane %v5056_v19, 1 }
0x1941   :  { %v5058_v29 = vadd.f32 %v5057_v12, %v5056_v19 }
0x1943   :  { %v5075_v3 = vsel %vm5074_vm12, %v5058_v29, %v5049_v41 }
0x1944   :  { %6052 = vmatmul.mubr.msk.f32.vlgmr.msra.gmra.mrb[60].mxu1 %vm331_vm7, %v5075_v3 }
0x1a17   :  { %v5144_v55 = vpop.f32.mrb[60].mxu1 }
0x1a18   :  { %v5145_v13 = vadd.f32 %v5364_v42, %v5144_v55  ;;  %v6053_v58 = vpop.f32.mrb[61].mxu1 }
0x1a1a   :  { %5149 = vst.msk [vmem:[#allocation8] sm:$0x3] %vm5148_vm13, %v5145_v13 }
0x1a1b   :  { %6852 = shalt.err (!%p6849_p0)
}
0x1a1c   :  { %s6853_s6 = scalar_lea.hbm %s8222_s12, 32 }
0x1a1d   :  { %p6854_p1 = scmp.ne.s32.totalorder %s8222_s12, %s6853_s6  ;;  %p6857_p2 = scmp.lt.u32.totalorder %s6853_s6, %s8222_s12 }
0x1a1f   :  { %p6859_p3 = pnand %p6857_p2, %p6854_p1 }
0x1a21   :  { %6862 = shalt.err (!%p6859_p3)
}
0x1a22   :  { %5159 = dma.vmem_to_hbm [thread:$0]  %s5157_s18, 32, %s8222_s12, [#allocation4]  }
0x1a23   :  { %6867 = dma.done.wait [#allocation4], 32  }
0x1a24   :  { %6868 = vsyncadd [#allocation4], 4294967264 }
0x1a25   :  { %5163 = vsyncpa [#allocation3], 1 }
0x1a26   :  { %5164 = vsyncpa [#allocation6], 1 }
0x1a27   :  { %5165 = vsyncpa [#allocation4], 1 }

</bundles_post_ra>
